<compile_context>
chip_gen: v7x
topology: tpu7x:2x2x1
jax: 0.10.0
libtpu: 0.0.40
codegen_flags: <defaults>
</compile_context>

<pallas_src>
import functools
import math

import jax
import jax.numpy as jnp
from jax.experimental import pallas as pl
from jax.experimental.pallas import tpu as pltpu


# --------------------------------------------------------------------------- #
# Kernel
# --------------------------------------------------------------------------- #
def _hdot(a, w):
    return jnp.dot(a, w, precision=jax.lax.Precision.HIGHEST,
                   preferred_element_type=jnp.float32)


def _ndp_kernel(x_ref, s_mat_ref, wx_ref, wsin_ref, wcos_ref, b_in_ref,
                w_hid_ref, b_hid_ref, w_out_ref, b_out_ref, o_ref,
                *, num_hidden):
    """Full NDPLayer forward for one (tile_n, pack*in_dim) block of packed rows."""
    x = x_ref[...].astype(jnp.float32)            # (tile_n, P*in_dim)

    # ---- FourierFeatsEncoding via a spread matmul (no lane slicing / concat) -- #
    # s_mat holds pure powers of two (the frequencies), block-diagonal per packed
    # sample, so the HIGHEST-precision matmul reproduces the elementwise
    # (2*pi*x) * 2**j products exactly.
    scaled = (2.0 * math.pi) * x
    s = _hdot(scaled, s_mat_ref[...])             # (tile_n, P*in_dim*m)
    sin_s = jnp.sin(s)
    cos_s = jnp.cos(s)                            # cos(s) instead of sin(s + pi/2)

    def swish(h):
        # h * sigmoid(h) == 0.5 * h * (tanh(0.5 h) + 1): one EUP transcendental
        # per element instead of exp + reciprocal/divide.
        return 0.5 * h * (jnp.tanh(0.5 * h) + 1.0)

    # ---- input layer: w_in pre-split into (x | sin | cos) row chunks --------- #
    h = (_hdot(x, wx_ref[...]) + _hdot(sin_s, wsin_ref[...])
         + _hdot(cos_s, wcos_ref[...]) + b_in_ref[...])
    h = swish(h)

    # ---- hidden layers (block-diagonal packed 128x128 MXU tiles) ------------- #
    for l in range(num_hidden):                   # static loop
        h = swish(_hdot(h, w_hid_ref[l]) + b_hid_ref[l])

    # ---- out_branch ----------------------------------------------------------- #
    out = _hdot(h, w_out_ref[...]) + b_out_ref[...]
    o_ref[...] = out.astype(o_ref.dtype)


# --------------------------------------------------------------------------- #
# Wrapper
# --------------------------------------------------------------------------- #
def ndp_forward(packed, x, *, row_tile: int = 4096):
    """Pallas NDPLayer forward on lane-packed parameters. x: (..., 4) -> (..., 3)."""
    orig_shape = x.shape
    in_dim = orig_shape[-1]

    pk_in = packed["s_mat"].shape[0]              # pack * in_dim
    pack = pk_in // in_dim
    pk_out = packed["w_out"].shape[-1]            # pack * out_dim
    out_dim = pk_out // pack
    num_hidden = packed["w_hid"].shape[0]

    x2d = x.reshape(-1, in_dim)
    n = x2d.shape[0]

    # Pad rows to a multiple of `pack` (zeros -> finite math; extra rows dropped).
    n_pad = ((n + pack - 1) // pack) * pack
    if n_pad != n:
        x2d = jnp.concatenate(
            [x2d, jnp.zeros((n_pad - n, in_dim), x2d.dtype)], axis=0)
    xp = x2d.reshape(n_pad // pack, pack * in_dim)   # lane-packed rows
    np_rows = xp.shape[0]

    # Row tile: as large as row_tile allows, but guarantee >= 2 grid steps so both
    # v7x TensorCores get work (and DMA/compute can pipeline).  The (possibly
    # partial) boundary block relies on Pallas padded-block semantics: rows are
    # independent, out-of-range output rows are discarded.
    half = (np_rows + 1) // 2
    tile_n = min(row_tile, max(8, ((half + 7) // 8) * 8))
    grid = (pl.cdiv(np_rows, tile_n),)

    kernel = functools.partial(_ndp_kernel, num_hidden=num_hidden)
    const2 = lambda i: (0, 0)
    const3 = lambda i: (0, 0, 0)

    out_p = pl.pallas_call(
        kernel,
        out_shape=jax.ShapeDtypeStruct((np_rows, pk_out), x.dtype),
        grid_spec=pltpu.PrefetchScalarGridSpec(
            num_scalar_prefetch=0,
            grid=grid,
            in_specs=[
                # streamed packed input rows
                pl.BlockSpec((tile_n, pk_in), lambda i: (i, 0)),
                # tiny constants / weights: full blocks, resident across the grid
                pl.BlockSpec(packed["s_mat"].shape, const2),
                pl.BlockSpec(packed["w_x"].shape, const2),
                pl.BlockSpec(packed["w_sin"].shape, const2),
                pl.BlockSpec(packed["w_cos"].shape, const2),
                pl.BlockSpec(packed["b_in"].shape, const2),
                pl.BlockSpec(packed["w_hid"].shape, const3),
                pl.BlockSpec(packed["b_hid"].shape, const3),
                pl.BlockSpec(packed["w_out"].shape, const2),
                pl.BlockSpec(packed["b_out"].shape, const2),
            ],
            out_specs=pl.BlockSpec((tile_n, pk_out), lambda i: (i, 0)),
        ),
        compiler_params=pltpu.CompilerParams(
            dimension_semantics=("parallel",),
            vmem_limit_bytes=32 * 1024 * 1024,
        ),
    )(xp, packed["s_mat"], packed["w_x"], packed["w_sin"], packed["w_cos"],
      packed["b_in"], packed["w_hid"], packed["b_hid"],
      packed["w_out"], packed["b_out"])

    out2d = out_p.reshape(n_pad, out_dim)[:n]
    return out2d.reshape(*orig_shape[:-1], out_dim)


# --------------------------------------------------------------------------- #
# Parameter init (mirrors PyTorch: xavier_uniform on weights, uniform biases)
# --------------------------------------------------------------------------- #
def init_ndp_params(key, *, depth, width, m, in_dim=4, out_dim=3,
                    dtype=jnp.float32):
    assert depth >= 2, "NDPLayer MLP needs at least one hidden linear (depth >= 2)"
    fourier_dim = in_dim * m * 2 + in_dim

    def xavier(k, fan_in, fan_out):
        limit = math.sqrt(6.0 / (fan_in + fan_out))
        return jax.random.uniform(k, (fan_in, fan_out), dtype, -limit, limit)

    def bias(k, fan_in, fan_out):
        bound = 1.0 / math.sqrt(fan_in)
        return jax.random.uniform(k, (1, fan_out), dtype, -bound, bound)

    num_hidden = depth - 1
    keys = jax.random.split(key, 2 * (num_hidden + 2))
    ki = iter(range(len(keys)))

    w_in = xavier(keys[next(ki)], fourier_dim, width)
    b_in = bias(keys[next(ki)], fourier_dim, width)
    w_hid = jnp.stack([xavier(keys[next(ki)], width, width)
                       for _ in range(num_hidden)], axis=0)          # (L, W, W)
    b_hid = jnp.stack([bias(keys[next(ki)], width, width)
                       for _ in range(num_hidden)], axis=0)          # (L, 1, W)
    w_out = xavier(keys[next(ki)], width, out_dim)
    b_out = bias(keys[next(ki)], width, out_dim)
    freqs = (2.0 ** jnp.arange(m, dtype=jnp.float32)).reshape(1, m)  # 2**linspace(0, m-1, m)

    return dict(freqs=freqs, w_in=w_in, b_in=b_in, w_hid=w_hid, b_hid=b_hid,
                w_out=w_out, b_out=b_out, in_dim=in_dim, out_dim=out_dim, m=m)


# --------------------------------------------------------------------------- #
# One-time host-side packing: 4 samples per vector row, block-diagonal weights
# --------------------------------------------------------------------------- #
def pack_ndp_params(params, pack=4):
    in_dim = params["in_dim"]
    m = params["m"]
    dt = params["w_in"].dtype
    eye_p = jnp.eye(pack, dtype=dt)

    freqs_row = params["freqs"].reshape(1, m).astype(dt)
    # s_mat[p*in_dim+i, p*in_dim*m + i*m + j] = 2**j
    s_mat = jnp.kron(jnp.eye(pack * in_dim, dtype=dt), freqs_row)

    w_in = params["w_in"]                               # rows: [x | sin | cos]
    w_x = w_in[:in_dim]
    w_sin = w_in[in_dim:in_dim + in_dim * m]
    w_cos = w_in[in_dim + in_dim * m:]

    num_hidden = params["w_hid"].shape[0]
    return dict(
        s_mat=s_mat,
        w_x=jnp.kron(eye_p, w_x),                       # (P*in_dim, P*W)
        w_sin=jnp.kron(eye_p, w_sin),                   # (P*in_dim*m, P*W)
        w_cos=jnp.kron(eye_p, w_cos),                   # (P*in_dim*m, P*W)
        b_in=jnp.tile(params["b_in"], (1, pack)),       # (1, P*W)
        w_hid=jnp.stack([jnp.kron(eye_p, params["w_hid"][l])
                         for l in range(num_hidden)]),  # (L, P*W, P*W)
        b_hid=jnp.tile(params["b_hid"], (1, 1, pack)),  # (L, 1, P*W)
        w_out=jnp.kron(eye_p, params["w_out"]),         # (P*W, P*out_dim)
        b_out=jnp.tile(params["b_out"], (1, pack)),     # (1, P*out_dim)
    )


# --------------------------------------------------------------------------- #
# Pure-JAX reference (literal transcription of the PyTorch forward)
# --------------------------------------------------------------------------- #
def ndp_forward_ref(params, x):
    m = params["m"]
    freqs = params["freqs"].reshape(m)
    scaled = 2.0 * jnp.pi * x
    s = scaled[..., None] * freqs
    s = s.reshape(*s.shape[:-2], -1)
    enc = jnp.sin(jnp.concatenate([s, s + 0.5 * jnp.pi], axis=-1))
    fea = jnp.concatenate([x, enc], axis=-1)

    def dense(a, w, b):
        return jnp.dot(a, w, precision=jax.lax.Precision.HIGHEST) + b

    def swish(h):
        return h * jax.nn.sigmoid(h)

    h = swish(dense(fea, params["w_in"], params["b_in"]))
    for l in range(params["w_hid"].shape[0]):
        h = swish(dense(h, params["w_hid"][l], params["b_hid"][l]))
    return dense(h, params["w_out"], params["b_out"])


# --------------------------------------------------------------------------- #
if __name__ == "__main__":
    key = jax.random.PRNGKey(0)
    depth, width, k0, m = 4, 32, 5, 8      # k0 is stored by NDPLayer but unused in forward
    pkey, xkey1, xkey2 = jax.random.split(key, 3)

    params = init_ndp_params(pkey, depth=depth, width=width, m=m)
    packed = pack_ndp_params(params, pack=4)   # P*width = 128, P*in_dim*m = 128

    # NeRF-style coordinates in [0, 1), last dim = 4.
    x1 = jax.random.uniform(xkey1, (2, 256, 4), dtype=jnp.float32)
    y1 = ndp_forward(packed, x1)
    jax.block_until_ready(y1)
    y1_ref = ndp_forward_ref(params, x1)
    assert y1.shape == (2, 256, 3) and y1.dtype == x1.dtype
    err1 = float(jnp.max(jnp.abs(y1 - y1_ref)))
    assert jnp.allclose(y1, y1_ref, atol=1e-4, rtol=1e-4), f"max abs err = {err1}"

    # Row count not a multiple of the pack factor (exercises host-side padding).
    x2 = jax.random.uniform(xkey2, (509, 4), dtype=jnp.float32)
    y2 = ndp_forward(packed, x2)
    jax.block_until_ready(y2)
    y2_ref = ndp_forward_ref(params, x2)
    assert y2.shape == (509, 3)
    err2 = float(jnp.max(jnp.abs(y2 - y2_ref)))
    assert jnp.allclose(y2, y2_ref, atol=1e-4, rtol=1e-4), f"max abs err = {err2}"

    print("KERNEL_OK")
</pallas_src>

<mosaic_0001>
module attributes {stable_mosaic.version = 11 : i64} {
  func.func @_ndp_kernel(%arg0: i32, %arg1: memref<64x16xf32, #tpu.memory_space<vmem>>, %arg2: memref<16x128xf32, #tpu.memory_space<vmem>>, %arg3: memref<16x128xf32, #tpu.memory_space<vmem>>, %arg4: memref<128x128xf32, #tpu.memory_space<vmem>>, %arg5: memref<128x128xf32, #tpu.memory_space<vmem>>, %arg6: memref<1x128xf32, #tpu.memory_space<vmem>>, %arg7: memref<3x128x128xf32, #tpu.memory_space<vmem>>, %arg8: memref<3x1x128xf32, #tpu.memory_space<vmem>>, %arg9: memref<128x12xf32, #tpu.memory_space<vmem>>, %arg10: memref<1x12xf32, #tpu.memory_space<vmem>>, %arg11: memref<64x12xf32, #tpu.memory_space<vmem>>) attributes {dimension_semantics = [#tpu.dimension_semantics<parallel>], iteration_bounds = array<i64: 2>, scalar_prefetch = 0 : i64, scratch_operands = 0 : i64, tpu.core_type = #tpu.core_type<tc>, window_params = [{transform_indices = @transform_0, window_bounds = array<i64: 64, 16>}, {pipeline_mode = #tpu.pipeline_mode<synchronous>, transform_indices = @transform_1, window_bounds = array<i64: 16, 128>}, {pipeline_mode = #tpu.pipeline_mode<synchronous>, transform_indices = @transform_2, window_bounds = array<i64: 16, 128>}, {pipeline_mode = #tpu.pipeline_mode<synchronous>, transform_indices = @transform_3, window_bounds = array<i64: 128, 128>}, {pipeline_mode = #tpu.pipeline_mode<synchronous>, transform_indices = @transform_4, window_bounds = array<i64: 128, 128>}, {pipeline_mode = #tpu.pipeline_mode<synchronous>, transform_indices = @transform_5, window_bounds = array<i64: 1, 128>}, {pipeline_mode = #tpu.pipeline_mode<synchronous>, transform_indices = @transform_6, window_bounds = array<i64: 3, 128, 128>}, {pipeline_mode = #tpu.pipeline_mode<synchronous>, transform_indices = @transform_7, window_bounds = array<i64: 3, 1, 128>}, {pipeline_mode = #tpu.pipeline_mode<synchronous>, transform_indices = @transform_8, window_bounds = array<i64: 128, 12>}, {pipeline_mode = #tpu.pipeline_mode<synchronous>, transform_indices = @transform_9, window_bounds = array<i64: 1, 12>}, {transform_indices = @transform_10, window_bounds = array<i64: 64, 12>}]} {
    %c0 = arith.constant 0 : index
    %c0_0 = arith.constant 0 : index
    %0 = vector.load %arg1[%c0, %c0_0] : memref<64x16xf32, #tpu.memory_space<vmem>>, vector<64x16xf32>
    %cst = arith.constant 6.28318548 : f32
    %1 = vector.broadcast %cst : f32 to vector<64x16xf32>
    %2 = arith.mulf %1, %0 : vector<64x16xf32>
    %c0_1 = arith.constant 0 : index
    %c0_2 = arith.constant 0 : index
    %3 = vector.load %arg2[%c0_1, %c0_2] : memref<16x128xf32, #tpu.memory_space<vmem>>, vector<16x128xf32>
    %cst_3 = arith.constant dense<0.000000e+00> : vector<64x128xf32>
    %4 = tpu.matmul %2, %3, %cst_3 {dimension_numbers = #tpu.dot_dimension_numbers<[1], [0], [0], [1], [0, 0, 1, 1], [], []>, precision = #tpu.contract_precision<fp32>} : vector<64x16xf32>, vector<16x128xf32>, vector<64x128xf32> -> vector<64x128xf32>
    %5 = math.sin %4 : vector<64x128xf32>
    %6 = math.cos %4 : vector<64x128xf32>
    %c0_4 = arith.constant 0 : index
    %c0_5 = arith.constant 0 : index
    %7 = vector.load %arg3[%c0_4, %c0_5] : memref<16x128xf32, #tpu.memory_space<vmem>>, vector<16x128xf32>
    %cst_6 = arith.constant dense<0.000000e+00> : vector<64x128xf32>
    %8 = tpu.matmul %0, %7, %cst_6 {dimension_numbers = #tpu.dot_dimension_numbers<[1], [0], [0], [1], [0, 0, 1, 1], [], []>, precision = #tpu.contract_precision<fp32>} : vector<64x16xf32>, vector<16x128xf32>, vector<64x128xf32> -> vector<64x128xf32>
    %c0_7 = arith.constant 0 : index
    %c0_8 = arith.constant 0 : index
    %9 = vector.load %arg4[%c0_7, %c0_8] : memref<128x128xf32, #tpu.memory_space<vmem>>, vector<128x128xf32>
    %cst_9 = arith.constant dense<0.000000e+00> : vector<64x128xf32>
    %10 = tpu.matmul %5, %9, %cst_9 {dimension_numbers = #tpu.dot_dimension_numbers<[1], [0], [0], [1], [0, 0, 1, 1], [], []>, precision = #tpu.contract_precision<fp32>} : vector<64x128xf32>, vector<128x128xf32>, vector<64x128xf32> -> vector<64x128xf32>
    %11 = arith.addf %8, %10 : vector<64x128xf32>
    %c0_10 = arith.constant 0 : index
    %c0_11 = arith.constant 0 : index
    %12 = vector.load %arg5[%c0_10, %c0_11] : memref<128x128xf32, #tpu.memory_space<vmem>>, vector<128x128xf32>
    %cst_12 = arith.constant dense<0.000000e+00> : vector<64x128xf32>
    %13 = tpu.matmul %6, %12, %cst_12 {dimension_numbers = #tpu.dot_dimension_numbers<[1], [0], [0], [1], [0, 0, 1, 1], [], []>, precision = #tpu.contract_precision<fp32>} : vector<64x128xf32>, vector<128x128xf32>, vector<64x128xf32> -> vector<64x128xf32>
    %14 = arith.addf %11, %13 : vector<64x128xf32>
    %c0_13 = arith.constant 0 : index
    %c0_14 = arith.constant 0 : index
    %15 = vector.load %arg6[%c0_13, %c0_14] : memref<1x128xf32, #tpu.memory_space<vmem>>, vector<1x128xf32>
    %16 = vector.broadcast %15 : vector<1x128xf32> to vector<64x128xf32>
    %17 = arith.addf %14, %16 : vector<64x128xf32>
    %cst_15 = arith.constant 5.000000e-01 : f32
    %18 = vector.broadcast %cst_15 : f32 to vector<64x128xf32>
    %19 = arith.mulf %18, %17 : vector<64x128xf32>
    %cst_16 = arith.constant 5.000000e-01 : f32
    %20 = vector.broadcast %cst_16 : f32 to vector<64x128xf32>
    %21 = arith.mulf %20, %17 : vector<64x128xf32>
    %22 = math.tanh %21 : vector<64x128xf32>
    %cst_17 = arith.constant 1.000000e+00 : f32
    %23 = vector.broadcast %cst_17 : f32 to vector<64x128xf32>
    %24 = arith.addf %22, %23 : vector<64x128xf32>
    %25 = arith.mulf %19, %24 : vector<64x128xf32>
    %c0_18 = arith.constant 0 : index
    %c0_19 = arith.constant 0 : index
    %c0_20 = arith.constant 0 : index
    %26 = vector.load %arg7[%c0_18, %c0_19, %c0_20] : memref<3x128x128xf32, #tpu.memory_space<vmem>>, vector<1x128x128xf32>
    %27 = vector.shape_cast %26 : vector<1x128x128xf32> to vector<128x128xf32>
    %cst_21 = arith.constant dense<0.000000e+00> : vector<64x128xf32>
    %28 = tpu.matmul %25, %27, %cst_21 {dimension_numbers = #tpu.dot_dimension_numbers<[1], [0], [0], [1], [0, 0, 1, 1], [], []>, precision = #tpu.contract_precision<fp32>} : vector<64x128xf32>, vector<128x128xf32>, vector<64x128xf32> -> vector<64x128xf32>
    %c0_22 = arith.constant 0 : index
    %c0_23 = arith.constant 0 : index
    %c0_24 = arith.constant 0 : index
    %29 = vector.load %arg8[%c0_22, %c0_23, %c0_24] : memref<3x1x128xf32, #tpu.memory_space<vmem>>, vector<1x1x128xf32>
    %30 = vector.shape_cast %29 : vector<1x1x128xf32> to vector<1x128xf32>
    %31 = vector.broadcast %30 : vector<1x128xf32> to vector<64x128xf32>
    %32 = arith.addf %28, %31 : vector<64x128xf32>
    %cst_25 = arith.constant 5.000000e-01 : f32
    %33 = vector.broadcast %cst_25 : f32 to vector<64x128xf32>
    %34 = arith.mulf %33, %32 : vector<64x128xf32>
    %cst_26 = arith.constant 5.000000e-01 : f32
    %35 = vector.broadcast %cst_26 : f32 to vector<64x128xf32>
    %36 = arith.mulf %35, %32 : vector<64x128xf32>
    %37 = math.tanh %36 : vector<64x128xf32>
    %cst_27 = arith.constant 1.000000e+00 : f32
    %38 = vector.broadcast %cst_27 : f32 to vector<64x128xf32>
    %39 = arith.addf %37, %38 : vector<64x128xf32>
    %40 = arith.mulf %34, %39 : vector<64x128xf32>
    %c1 = arith.constant 1 : index
    %c0_28 = arith.constant 0 : index
    %c0_29 = arith.constant 0 : index
    %41 = vector.load %arg7[%c1, %c0_28, %c0_29] : memref<3x128x128xf32, #tpu.memory_space<vmem>>, vector<1x128x128xf32>
    %42 = vector.shape_cast %41 : vector<1x128x128xf32> to vector<128x128xf32>
    %cst_30 = arith.constant dense<0.000000e+00> : vector<64x128xf32>
    %43 = tpu.matmul %40, %42, %cst_30 {dimension_numbers = #tpu.dot_dimension_numbers<[1], [0], [0], [1], [0, 0, 1, 1], [], []>, precision = #tpu.contract_precision<fp32>} : vector<64x128xf32>, vector<128x128xf32>, vector<64x128xf32> -> vector<64x128xf32>
    %c1_31 = arith.constant 1 : index
    %c0_32 = arith.constant 0 : index
    %c0_33 = arith.constant 0 : index
    %44 = vector.load %arg8[%c1_31, %c0_32, %c0_33] : memref<3x1x128xf32, #tpu.memory_space<vmem>>, vector<1x1x128xf32>
    %45 = vector.shape_cast %44 : vector<1x1x128xf32> to vector<1x128xf32>
    %46 = vector.broadcast %45 : vector<1x128xf32> to vector<64x128xf32>
    %47 = arith.addf %43, %46 : vector<64x128xf32>
    %cst_34 = arith.constant 5.000000e-01 : f32
    %48 = vector.broadcast %cst_34 : f32 to vector<64x128xf32>
    %49 = arith.mulf %48, %47 : vector<64x128xf32>
    %cst_35 = arith.constant 5.000000e-01 : f32
    %50 = vector.broadcast %cst_35 : f32 to vector<64x128xf32>
    %51 = arith.mulf %50, %47 : vector<64x128xf32>
    %52 = math.tanh %51 : vector<64x128xf32>
    %cst_36 = arith.constant 1.000000e+00 : f32
    %53 = vector.broadcast %cst_36 : f32 to vector<64x128xf32>
    %54 = arith.addf %52, %53 : vector<64x128xf32>
    %55 = arith.mulf %49, %54 : vector<64x128xf32>
    %c2 = arith.constant 2 : index
    %c0_37 = arith.constant 0 : index
    %c0_38 = arith.constant 0 : index
    %56 = vector.load %arg7[%c2, %c0_37, %c0_38] : memref<3x128x128xf32, #tpu.memory_space<vmem>>, vector<1x128x128xf32>
    %57 = vector.shape_cast %56 : vector<1x128x128xf32> to vector<128x128xf32>
    %cst_39 = arith.constant dense<0.000000e+00> : vector<64x128xf32>
    %58 = tpu.matmul %55, %57, %cst_39 {dimension_numbers = #tpu.dot_dimension_numbers<[1], [0], [0], [1], [0, 0, 1, 1], [], []>, precision = #tpu.contract_precision<fp32>} : vector<64x128xf32>, vector<128x128xf32>, vector<64x128xf32> -> vector<64x128xf32>
    %c2_40 = arith.constant 2 : index
    %c0_41 = arith.constant 0 : index
    %c0_42 = arith.constant 0 : index
    %59 = vector.load %arg8[%c2_40, %c0_41, %c0_42] : memref<3x1x128xf32, #tpu.memory_space<vmem>>, vector<1x1x128xf32>
    %60 = vector.shape_cast %59 : vector<1x1x128xf32> to vector<1x128xf32>
    %61 = vector.broadcast %60 : vector<1x128xf32> to vector<64x128xf32>
    %62 = arith.addf %58, %61 : vector<64x128xf32>
    %cst_43 = arith.constant 5.000000e-01 : f32
    %63 = vector.broadcast %cst_43 : f32 to vector<64x128xf32>
    %64 = arith.mulf %63, %62 : vector<64x128xf32>
    %cst_44 = arith.constant 5.000000e-01 : f32
    %65 = vector.broadcast %cst_44 : f32 to vector<64x128xf32>
    %66 = arith.mulf %65, %62 : vector<64x128xf32>
    %67 = math.tanh %66 : vector<64x128xf32>
    %cst_45 = arith.constant 1.000000e+00 : f32
    %68 = vector.broadcast %cst_45 : f32 to vector<64x128xf32>
    %69 = arith.addf %67, %68 : vector<64x128xf32>
    %70 = arith.mulf %64, %69 : vector<64x128xf32>
    %c0_46 = arith.constant 0 : index
    %c0_47 = arith.constant 0 : index
    %71 = vector.load %arg9[%c0_46, %c0_47] : memref<128x12xf32, #tpu.memory_space<vmem>>, vector<128x12xf32>
    %cst_48 = arith.constant dense<0.000000e+00> : vector<64x12xf32>
    %72 = tpu.matmul %70, %71, %cst_48 {dimension_numbers = #tpu.dot_dimension_numbers<[1], [0], [0], [1], [0, 0, 1, 1], [], []>, precision = #tpu.contract_precision<fp32>} : vector<64x128xf32>, vector<128x12xf32>, vector<64x12xf32> -> vector<64x12xf32>
    %c0_49 = arith.constant 0 : index
    %c0_50 = arith.constant 0 : index
    %73 = vector.load %arg10[%c0_49, %c0_50] : memref<1x12xf32, #tpu.memory_space<vmem>>, vector<1x12xf32>
    %74 = vector.broadcast %73 : vector<1x12xf32> to vector<64x12xf32>
    %75 = arith.addf %72, %74 : vector<64x12xf32>
    %c0_51 = arith.constant 0 : index
    %c0_52 = arith.constant 0 : index
    %76 = vector.load %arg11[%c0_51, %c0_52] : memref<64x12xf32, #tpu.memory_space<vmem>>, vector<64x12xf32>
    tpu.vector_store %arg11[%c0_51, %c0_52], %75 {strides = array<i32>} : memref<64x12xf32, #tpu.memory_space<vmem>>, vector<64x12xf32>,
    return
  }
  func.func @transform_0(%arg0: i32) -> (i32, i32) {
    %c0_i32 = arith.constant 0 : i32
    %c0_i32_0 = arith.constant 0 : i32
    return %arg0, %c0_i32 : i32, i32
  }
  func.func @transform_1(%arg0: i32) -> (i32, i32) {
    %c0_i32 = arith.constant 0 : i32
    %c0_i32_0 = arith.constant 0 : i32
    %c0_i32_1 = arith.constant 0 : i32
    return %c0_i32, %c0_i32_0 : i32, i32
  }
  func.func @transform_2(%arg0: i32) -> (i32, i32) {
    %c0_i32 = arith.constant 0 : i32
    %c0_i32_0 = arith.constant 0 : i32
    %c0_i32_1 = arith.constant 0 : i32
    return %c0_i32, %c0_i32_0 : i32, i32
  }
  func.func @transform_3(%arg0: i32) -> (i32, i32) {
    %c0_i32 = arith.constant 0 : i32
    %c0_i32_0 = arith.constant 0 : i32
    %c0_i32_1 = arith.constant 0 : i32
    return %c0_i32, %c0_i32_0 : i32, i32
  }
  func.func @transform_4(%arg0: i32) -> (i32, i32) {
    %c0_i32 = arith.constant 0 : i32
    %c0_i32_0 = arith.constant 0 : i32
    %c0_i32_1 = arith.constant 0 : i32
    return %c0_i32, %c0_i32_0 : i32, i32
  }
  func.func @transform_5(%arg0: i32) -> (i32, i32) {
    %c0_i32 = arith.constant 0 : i32
    %c0_i32_0 = arith.constant 0 : i32
    %c0_i32_1 = arith.constant 0 : i32
    return %c0_i32, %c0_i32_0 : i32, i32
  }
  func.func @transform_6(%arg0: i32) -> (i32, i32, i32) {
    %c0_i32 = arith.constant 0 : i32
    %c0_i32_0 = arith.constant 0 : i32
    %c0_i32_1 = arith.constant 0 : i32
    %c0_i32_2 = arith.constant 0 : i32
    return %c0_i32, %c0_i32_0, %c0_i32_1 : i32, i32, i32
  }
  func.func @transform_7(%arg0: i32) -> (i32, i32, i32) {
    %c0_i32 = arith.constant 0 : i32
    %c0_i32_0 = arith.constant 0 : i32
    %c0_i32_1 = arith.constant 0 : i32
    %c0_i32_2 = arith.constant 0 : i32
    return %c0_i32, %c0_i32_0, %c0_i32_1 : i32, i32, i32
  }
  func.func @transform_8(%arg0: i32) -> (i32, i32) {
    %c0_i32 = arith.constant 0 : i32
    %c0_i32_0 = arith.constant 0 : i32
    %c0_i32_1 = arith.constant 0 : i32
    return %c0_i32, %c0_i32_0 : i32, i32
  }
  func.func @transform_9(%arg0: i32) -> (i32, i32) {
    %c0_i32 = arith.constant 0 : i32
    %c0_i32_0 = arith.constant 0 : i32
    %c0_i32_1 = arith.constant 0 : i32
    return %c0_i32, %c0_i32_0 : i32, i32
  }
  func.func @transform_10(%arg0: i32) -> (i32, i32) {
    %c0_i32 = arith.constant 0 : i32
    %c0_i32_0 = arith.constant 0 : i32
    return %arg0, %c0_i32 : i32, i32
  }
}

</mosaic_0001>

<bundles_post_ra>
// kernel: tpu_custom_call.1
= control target key start
LH: loop header
LB: loop body
LE: loop exit
PB: predicated region body
PF: predicated region fallthrough
CT: control target
= control target key end

     0   :  { %15 = vsyncpa [#allocation3], 0  ;;  %s14310_s13 = smov 0   ;;  %s18324_s0 = inlined_call_operand.vmem [shape: f32[128,16], index: 0, kind: input, shape index: {}]   ;;  %s18325_s1 = inlined_call_operand.vmem [shape: f32[16,128], index: 1, kind: input, shape index: {}]   ;;  %s18326_s2 = inlined_call_operand.vmem [shape: f32[16,128], index: 2, kind: input, shape index: {}]   ;;  %s18327_s3 = inlined_call_operand.vmem [shape: f32[128,128], index: 3, kind: input, shape index: {}]   ;;  %s18328_s4 = inlined_call_operand.vmem [shape: f32[128,128], index: 4, kind: input, shape index: {}]   ;;  %s18329_s5 = inlined_call_operand.vmem [shape: f32[1,128], index: 5, kind: input, shape index: {}]   ;;  %s18330_s6 = inlined_call_operand.hbm [shape: f32[3,128,128], index: 6, kind: input, shape index: {}]   ;;  %s18331_s7 = inlined_call_operand.vmem [shape: f32[3,1,128], index: 7, kind: input, shape index: {}]   ;;  %s18332_s8 = inlined_call_operand.vmem [shape: f32[128,12], index: 8, kind: input, shape index: {}]   ;;  %s18333_s9 = inlined_call_operand.vmem [shape: f32[1,12], index: 9, kind: input, shape index: {}]   ;;  %s18334_s10 = inlined_call_operand.vmem [shape: f32[128,12], index: 10, kind: output, shape index: {}]  }
   0x1 LB: > { %s9631_s14 = sadd.s32 4294967295, %s14244_s13   ;;  %p9633_p0 = scmp.ge.s32.totalorder %s14244_s13, 1  ;;  %s14244_s13 = sphi %s14310_s13, %s21_s13  }
   0x2   : > { %p267_p1 = scmp.lt.s32.totalorder %s14244_s13, 3  ;;  %s14246_s15 = smov [#allocation2]  }
   0x3   : > { %s294_s16 = sshll.u32 %s14246_s15, 4  ;;  %p14324_p3 = scmp.eq.s32.totalorder %s9631_s14, 0  ;;  %s295_s16 = int_to_ptr.vmem [resolvable:$true] %s294_s16 }
   0x4   : > { %p14318_p2 = pnand %p9633_p0, %p267_p1  ;;  %s14206_s22 = scalar_lea.hbm %s18330_s6, 6144 }
   0x5   : > { %s18486_s18 = scalar_select %p14324_p3, 1, 0 }
   0x6   : > { %s18485_s17 = scalar_select %p14318_p2, 1, 0 }
   0x7   : > { %p14079_p4 = pneg %p14318_p2  ;;  %p14207_p6 = scmp.ne.s32.totalorder %s18330_s6, %s14206_s22 }
   0x8   : > { %p14213_p10 = scmp.lt.u32.totalorder %s14206_s22, %s18330_s6 }
   0x9   : > { %p14332_p5 = pnand %p14324_p3, %p14079_p4 }
   0xb   : > { %p14208_p7 = pneg %p14332_p5 }
   0xd   : > { %p14209_p8 = pnand %p14208_p7, %p14207_p6 }
   0xf   : > { %p14210_p9 = pneg %p14209_p8 }
  0x11   : > { %p14215_p11 = pnand %p14213_p10, %p14210_p9 }
  0x13   : > { %14218 = shalt.err (!%p14215_p11)
}
  0x14   : > { %s14219_s27 = scalar_lea.vmem %s295_s16, 6144  ;;  %p14227_p1 = scmp.lt.s32.totalorder %s295_s16, %s295_s16 }
  0x15   : > { %p14220_p12 = scmp.ne.s32.totalorder %s295_s16, %s14219_s27  ;;  %p14228_p4 = scmp.lt.s32.totalorder %s14219_s27, %s14219_s27 }
  0x17   : > { %p14222_p13 = pnand %p14220_p12, %p14208_p7  ;;  %p14229_p3 = por %p14228_p4, %p14227_p1 }
  0x19   : > { %p14223_p0 = pneg %p14222_p13 }
  0x1b   : > { %p14230_p2 = pnand %p14229_p3, %p14223_p0 }
  0x1d   : > { %14233 = shalt.err (!%p14230_p2)
}
  0x1e   : > { %s14247_s28 = smov 128   ;;  %s14248_s29 = smov 8  }
  0x1f   : > { %14082 = dma.hbm_to_vmem [thread:$0]  (!%p14332_p5), %s18330_s6, 6144, %s295_s16, [#allocation3], %s14247_s28, %s14247_s28, %s14248_s29  }
  0x20   : > { %p18488_p6 = scmp.ne.s32.totalorder %s18485_s17, 0 }
  0x22   : > { %328 = sbr.rel (%p18488_p6) target bundleno = 2880 (0xb40), region = 60 }
  0x29   : > { %p18489_p8 = scmp.ne.s32.totalorder %s18486_s18, 0 }
  0x2b   : > { %14239 = dma.done.wait (%p18489_p8), [#allocation3], 6144  }
  0x2c   : > { %14241 = vsyncadd (%p18489_p8), [#allocation3], 4294961152  ;;  %s9638_s12 = sshll.u32 %s9631_s14, 3  ;;  %v394_v0 = vld [vmem:[%s18325_s1] sm:$0xff]  ;;  %v395_v1 = vld [vmem:[%s18325_s1 + $0x8] sm:$0xff]  ;;  %vm396_vm0 = vcmask 130048  }
  0x2d   : > { %p367_p2 = scmp.lt.s32.totalorder %s9638_s12, 15  ;;  %v422_v3 = vand.u32 4294901760, %v394_v0  ;;  %v425_v4 = vand.u32 4294901760, %v395_v1 }
  0x2f   : > { %s18683_s12 = smov (!%p367_p2, %s9638_s12), 15  ;;  %v14379_v10 = vpack.c.bf16 %v425_v4, %v422_v3  ;;  %v14382_v12 = vsub.f32 %v394_v0, %v422_v3  ;;  %v14389_v17 = vsub.f32 %v395_v1, %v425_v4 }
  0x30   : > { %s9639_s15 = sshll.u32 %s18683_s12, 3 }
  0x31   : > { %s14368_s17 = scalar_lea.vmem %s18324_s0, %s9639_s15  ;;  %12476 = vmatprep.subr.bf16.mxu0 %v14379_v10  ;;  %v571_v21 = vand.u32 4294901760, %v14382_v12  ;;  %v578_v24 = vand.u32 4294901760, %v14389_v17  ;;  %v12483_v60 = vpack.c.bf16 %v14389_v17, %v14382_v12  ;;  %s376_s19 = scalar_lea.vmem %s18334_s10, %s9639_s15 }
  0x32   : > { %v378_v2 = vld [vmem:[%s14368_s17] sm:$0xff]  ;;  %v379_v6 = vld [vmem:[%s14368_s17 + $0x8] sm:$0xff]  ;;  %v380_v7 = vld [vmem:[%s14368_s17 + $0x10] sm:$0xff]  ;;  %12478 = vmatpush3.bf16.msra.mxu0 %v14379_v10 }
  0x33   : > { %v386_v5 = vmul.f32 6.2831855, %v378_v2  ;;  %v387_v8 = vmul.f32 6.2831855, %v379_v6  ;;  %v388_v9 = vmul.f32 6.2831855, %v380_v7  ;;  %v572_v28 = vsub.f32 %v14382_v12, %v571_v21 }
  0x34   : > { %v381_v13 = vld [vmem:[%s14368_s17 + $0x18] sm:$0xff]  ;;  %v382_v14 = vld [vmem:[%s14368_s17 + $0x20] sm:$0xff]  ;;  %v383_v19 = vld [vmem:[%s14368_s17 + $0x28] sm:$0xff]  ;;  %v579_v32 = vsub.f32 %v14389_v17, %v578_v24 }
  0x35   : > { %v398_v11 = vsel %vm396_vm0, %v386_v5, 0  ;;  %v401_v16 = vsel %vm396_vm0, %v387_v8, 0  ;;  %v404_v18 = vsel %vm396_vm0, %v388_v9, 0  ;;  %v389_v25 = vmul.f32 6.2831855, %v381_v13  ;;  %v384_v39 = vld [vmem:[%s14368_s17 + $0x30] sm:$0xff] }
  0x36   : > { %v14386_v15 = vand.u32 4294901760, %v398_v11  ;;  %v14394_v20 = vand.u32 4294901760, %v401_v16  ;;  %v14397_v22 = vand.u32 4294901760, %v404_v18  ;;  %v390_v26 = vmul.f32 6.2831855, %v382_v14  ;;  %v385_v48 = vld [vmem:[%s14368_s17 + $0x38] sm:$0xff] }
  0x37   : > { %v391_v30 = vmul.f32 6.2831855, %v383_v19  ;;  %v407_v33 = vsel %vm396_vm0, %v389_v25, 0  ;;  %v573_v36 = vand.u32 4294901760, %v572_v28  ;;  %v580_v41 = vand.u32 4294901760, %v579_v32 }
  0x38   : > { %v14401_v23 = vsub.f32 %v398_v11, %v14386_v15  ;;  %v14405_v27 = vsub.f32 %v401_v16, %v14394_v20  ;;  %v14411_v29 = vsub.f32 %v404_v18, %v14397_v22  ;;  %v410_v34 = vsel %vm396_vm0, %v390_v26, 0 }
  0x39   : > { %v14421_v38 = vand.u32 4294901760, %v407_v33  ;;  %v14427_v42 = vand.u32 4294901760, %v410_v34  ;;  %v413_v43 = vsel %vm396_vm0, %v391_v30, 0  ;;  %v12479_v50 = vpack.c.bf16 %v580_v41, %v573_v36 }
  0x3a   : > { %v490_v31 = vand.u32 4294901760, %v14401_v23  ;;  %v500_v35 = vand.u32 4294901760, %v14405_v27  ;;  %v510_v37 = vand.u32 4294901760, %v14411_v29  ;;  %v14439_v47 = vand.u32 4294901760, %v413_v43 }
  0x3b   : > { %v14437_v46 = vsub.f32 %v407_v33, %v14421_v38  ;;  %v14443_v51 = vsub.f32 %v410_v34, %v14427_v42  ;;  %v392_v52 = vmul.f32 6.2831855, %v384_v39  ;;  %12480 = vmatprep.subr.bf16.mxu0 %v12479_v50  ;;  %v393_v59 = vmul.f32 6.2831855, %v385_v48 }
  0x3c   : > { %v491_v40 = vsub.f32 %v14401_v23, %v490_v31  ;;  %v501_v44 = vsub.f32 %v14405_v27, %v500_v35  ;;  %v511_v45 = vsub.f32 %v14411_v29, %v510_v37  ;;  %v539_v56 = vsub.f32 %v413_v43, %v14439_v47 }
  0x3d   : > { %v520_v55 = vand.u32 4294901760, %v14437_v46  ;;  %v530_v57 = vand.u32 4294901760, %v14443_v51  ;;  %v416_v58 = vsel %vm396_vm0, %v392_v52, 0  ;;  %v419_v1 = vsel %vm396_vm0, %v393_v59, 0 }
  0x3e   : > { %v492_v49 = vand.u32 4294901760, %v491_v40  ;;  %v502_v53 = vand.u32 4294901760, %v501_v44  ;;  %v512_v54 = vand.u32 4294901760, %v511_v45  ;;  %v540_v62 = vand.u32 4294901760, %v539_v56 }
  0x3f   : > { %v521_v61 = vsub.f32 %v14437_v46, %v520_v55  ;;  %v14452_v63 = vand.u32 4294901760, %v416_v58  ;;  %v531_v0 = vsub.f32 %v14443_v51, %v530_v57  ;;  %v558_v5 = vand.u32 4294901760, %v419_v1 }
  0x40   : > { %10703 = vmatprep.mubr.f32.mxu0 %v492_v49  ;;  %v541_v3 = vsub.f32 %v539_v56, %v540_v62  ;;  %v12491_v19 = vpack.c.bf16 %v578_v24, %v571_v21  ;;  %v14249_v49 = vmov 683565275   ;;  %v14253_v59 = vmov 920167782  }
  0x41   : > { %10704 = vmatmul.mubr.f32.vlgmr.msra.gmra.mrb[0].mxu0 %v502_v53  ;;  %v522_v2 = vand.u32 4294901760, %v521_v61  ;;  %v549_v4 = vsub.f32 %v416_v58, %v14452_v63  ;;  %v532_v6 = vand.u32 4294901760, %v531_v0  ;;  %v559_v9 = vsub.f32 %v419_v1, %v558_v5 }
  0x42   : > { %12482 = vmatpush3.bf16.msra.mxu0 %v12479_v50  ;;  %10706 = vmatprep.mubr.f32.mxu0 %v512_v54  ;;  %v542_v7 = vand.u32 4294901760, %v541_v3  ;;  %v14250_v53 = vmov 2475754826  }
  0x43   : > { %12484 = vmatprep.subr.bf16.mxu0 %v12483_v60  ;;  %v550_v8 = vand.u32 4294901760, %v549_v4  ;;  %v560_v13 = vand.u32 4294901760, %v559_v9 }
  0x45   : > { %10707 = vmatmul.mubr.f32.gmra.mrb[2].mxu0 %v522_v2  ;;  %v551_v11 = vsub.f32 %v549_v4, %v550_v8  ;;  %v561_v16 = vsub.f32 %v559_v9, %v560_v13  ;;  %v14254_v2 = vmov 1326507024  }
  0x46   : > { %10709 = vmatprep.mubr.f32.mxu0 %v532_v6 }
  0x47   : > { %v552_v14 = vand.u32 4294901760, %v551_v11  ;;  %v562_v18 = vand.u32 4294901760, %v561_v16 }
  0x49   : > { %10710 = vmatmul.mubr.f32.gmra.mrb[4].mxu0 %v542_v7 }
  0x4a   : > { %10712 = vmatprep.mubr.f32.mxu0 %v552_v14 }
  0x4d   : > { %10713 = vmatmul.mubr.f32.gmra.mrb[6].mxu0 %v562_v18 }
  0x4e   : > { %10719 = vmatprep.mubr.f32.mxu0 %v14386_v15 }
  0x51   : > { %10720 = vmatmul.mubr.f32.vlgmr.msra.gmra.mrb[0].mxu0 %v14394_v20 }
  0x52   : > { %12486 = vmatpush3.bf16.msra.mxu0 %v12483_v60  ;;  %10722 = vmatprep.mubr.f32.mxu0 %v14397_v22 }
  0x53   : > { %12488 = vmatprep.subr.bf16.mxu0 %v14379_v10 }
  0x55   : > { %10723 = vmatmul.mubr.f32.gmra.mrb[2].mxu0 %v14421_v38 }
  0x56   : > { %10725 = vmatprep.mubr.f32.mxu0 %v14427_v42 }
  0x59   : > { %10726 = vmatmul.mubr.f32.gmra.mrb[4].mxu0 %v14439_v47 }
  0x5a   : > { %10728 = vmatprep.mubr.f32.mxu0 %v14452_v63 }
  0x5d   : > { %10729 = vmatmul.mubr.f32.gmra.mrb[6].mxu0 %v558_v5 }
  0x5e   : > { %10735 = vmatprep.mubr.f32.mxu0 %v14401_v23 }
  0x61   : > { %10736 = vmatmul.mubr.f32.vlgmr.msra.gmra.mrb[0].mxu0 %v14405_v27 }
  0x62   : > { %12490 = vmatpush3.bf16.msra.mxu0 %v14379_v10  ;;  %10738 = vmatprep.mubr.f32.mxu0 %v14411_v29 }
  0x63   : > { %12492 = vmatprep.subr.bf16.mxu0 %v12491_v19 }
  0x65   : > { %10739 = vmatmul.mubr.f32.gmra.mrb[2].mxu0 %v14437_v46 }
  0x66   : > { %10741 = vmatprep.mubr.f32.mxu0 %v14443_v51 }
  0x69   : > { %10742 = vmatmul.mubr.f32.gmra.mrb[4].mxu0 %v539_v56 }
  0x6a   : > { %10744 = vmatprep.mubr.f32.mxu0 %v549_v4 }
  0x6d   : > { %10745 = vmatmul.mubr.f32.gmra.mrb[6].mxu0 %v559_v9 }
  0x6e   : > { %10751 = vmatprep.mubr.f32.mxu0 %v490_v31 }
  0x71   : > { %10752 = vmatmul.mubr.f32.vlgmr.msra.gmra.mrb[0].mxu0 %v500_v35 }
  0x72   : > { %12494 = vmatpush3.bf16.msra.mxu0 %v12491_v19  ;;  %10754 = vmatprep.mubr.f32.mxu0 %v510_v37 }
  0x73   : > { %12496 = vmatprep.subr.bf16.mxu0 %v14379_v10 }
  0x75   : > { %10755 = vmatmul.mubr.f32.gmra.mrb[2].mxu0 %v520_v55  ;;  %v14251_v55 = vmov 2131351028  }
  0x76   : > { %10757 = vmatprep.mubr.f32.mxu0 %v530_v57  ;;  %v14252_v57 = vmov 2102212464  }
  0x79   : > { %10758 = vmatmul.mubr.f32.gmra.mrb[4].mxu0 %v540_v62 }
  0x7a   : > { %10760 = vmatprep.mubr.f32.mxu0 %v550_v8 }
  0x7d   : > { %10761 = vmatmul.mubr.f32.gmra.mrb[6].mxu0 %v560_v13 }
  0x7e   : > { %10767 = vmatprep.mubr.f32.mxu0 %v14386_v15 }
  0x81   : > { %10768 = vmatmul.mubr.f32.vlgmr.msra.gmra.mrb[0].mxu0 %v14394_v20 }
  0x82   : > { %12498 = vmatpush3.bf16.msra.mxu0 %v14379_v10  ;;  %10770 = vmatprep.mubr.f32.mxu0 %v14397_v22 }
  0x85   : > { %10771 = vmatmul.mubr.f32.gmra.mrb[2].mxu0 %v14421_v38 }
  0x86   : > { %10773 = vmatprep.mubr.f32.mxu0 %v14427_v42 }
  0x89   : > { %10774 = vmatmul.mubr.f32.gmra.mrb[4].mxu0 %v14439_v47 }
  0x8a   : > { %10776 = vmatprep.mubr.f32.mxu0 %v14452_v63 }
  0x8d   : > { %10777 = vmatmul.mubr.f32.gmra.mrb[6].mxu0 %v558_v5 }
  0x8e   : > { %10783 = vmatprep.mubr.f32.mxu0 %v14386_v15 }
  0x91   : > { %10784 = vmatmul.mubr.f32.vlgmr.msra.gmra.mrb[0].mxu0 %v14394_v20 }
  0x92   : > { %10786 = vmatprep.mubr.f32.mxu0 %v14397_v22 }
  0x95   : > { %10787 = vmatmul.mubr.f32.gmra.mrb[2].mxu0 %v14421_v38 }
  0x96   : > { %10789 = vmatprep.mubr.f32.mxu0 %v14427_v42 }
  0x99   : > { %10790 = vmatmul.mubr.f32.gmra.mrb[4].mxu0 %v14439_v47 }
  0x9a   : > { %10792 = vmatprep.mubr.f32.mxu0 %v14452_v63 }
  0x9d   : > { %10793 = vmatmul.mubr.f32.gmra.mrb[6].mxu0 %v558_v5 }
 0x164   : > { %v14497_v10 = vpop.f32.mrb[0].mxu0 }
 0x165   : > { %v1285_v12 = vand.u32 2147483647, %v14497_v10  ;;  %v1288_v17 = vand.u32 2139095040, %v14497_v10  ;;  %v14501_v15 = vpop.f32.mrb[1].mxu0 }
 0x166   : > { %v1181_v20 = vand.u32 2147483647, %v14501_v15  ;;  %v1184_v21 = vand.u32 2139095040, %v14501_v15 }
 0x167   : > { %v1289_v22 = vshrl.u32 %v1288_v17, 23  ;;  %v1292_v23 = vand.u32 8388607, %v1285_v12 }
 0x168   : > { %v1185_v24 = vshrl.u32 %v1184_v21, 23  ;;  %v1188_v25 = vand.u32 8388607, %v1181_v20  ;;  %v14509_v26 = vpop.f32.mrb[2].mxu0 }
 0x169   : > { %v9646_v27 = vadd.s32 4294967169, %v1289_v22  ;;  %v14511_v28 = vpop.f32.mrb[3].mxu0  ;;  %v1496_v30 = vand.u32 2139095040, %v14509_v26  ;;  %v1293_v32 = vor.u32 8388608, %v1292_v23  ;;  %v1493_v46 = vand.u32 2147483647, %v14509_v26 }
 0x16a   : > { %v9642_v29 = vadd.s32 4294967169, %v1185_v24  ;;  %v1189_v33 = vor.u32 8388608, %v1188_v25 }
 0x16b   : > { %v1295_v31 = vadd.s32 1, %v9646_v27  ;;  %v1497_v35 = vshrl.u32 %v1496_v30, 23  ;;  %v14518_v43 = vshll.u32 %v1293_v32, 8 }
 0x16c   : > { %v1191_v34 = vadd.s32 1, %v9642_v29  ;;  %v14514_v36 = vpop.f32.mrb[4].mxu0  ;;  %v14522_v45 = vshll.u32 %v1189_v33, 8 }
 0x16d   : > { %vm1296_vm1 = vcmp.gt.s32.totalorder %v1295_v31, 0  ;;  %v14516_v37 = vpop.f32.mrb[5].mxu0  ;;  %v9654_v39 = vadd.s32 4294967169, %v1497_v35 }
 0x16e   : > { %v1297_v38 = vsel %vm1296_vm1, %v1295_v31, 0  ;;  %vm1192_vm2 = vcmp.gt.s32.totalorder %v1191_v34, 0 }
 0x16f   : > { %v1298_v40 = vshrl.u32 %v1297_v38, 5  ;;  %v1299_v41 = vand.u32 31, %v1297_v38  ;;  %v1193_v42 = vsel %vm1192_vm2, %v1191_v34, 0  ;;  %v14528_v52 = vadd.s32 1, %v9654_v39 }
 0x170   : > { %v14520_v44 = vshrl.u32 %v1193_v42, 5  ;;  %v14525_v47 = vpop.f32.mrb[6].mxu0  ;;  %v1195_v51 = vand.u32 31, %v1193_v42 }
 0x171   : > { %v1300_v48 = vsub.s32 32, %v1299_v41  ;;  %v1302_v50 = vshll.u32 %v14249_v49, %v1299_v41  ;;  %v1305_v54 = vshll.u32 %v14250_v53, %v1299_v41  ;;  %v1308_v56 = vshll.u32 %v14251_v55, %v1299_v41  ;;  %v14540_v11 = vpop.f32.mrb[7].mxu0 }
 0x172   : > { %v1311_v58 = vshll.u32 %v14252_v57, %v1299_v41  ;;  %v1314_v60 = vshll.u32 %v14253_v59, %v1299_v41  ;;  %vm1317_vm3 = vcmp.lt.s32.totalorder %v1298_v40, 1  ;;  %vm1318_vm4 = vcmp.lt.s32.totalorder %v1298_v40, 2 }
 0x173   : > { %v1303_v61 = vshrl.u32 %v14250_v53, %v1300_v48  ;;  %v1306_v62 = vshrl.u32 %v14251_v55, %v1300_v48  ;;  %v1309_v63 = vshrl.u32 %v14252_v57, %v1300_v48  ;;  %v1301_v0 = vshrl.u32 %v14249_v49, %v1300_v48 }
 0x174   : > { %v1312_v1 = vshrl.u32 %v14253_v59, %v1300_v48  ;;  %v1315_v3 = vshrl.u32 %v14254_v2, %v1300_v48  ;;  %v1196_v7 = vsub.s32 32, %v1195_v51  ;;  %vm1319_vm5 = vcmp.lt.s32.totalorder %v1298_v40, 3 }
 0x175   : > { %v1304_v4 = vor.u32 %v1303_v61, %v1302_v50  ;;  %v1307_v5 = vor.u32 %v1306_v62, %v1305_v54  ;;  %v1310_v6 = vor.u32 %v1309_v63, %v1308_v56  ;;  %vm1320_vm6 = vcmp.lt.s32.totalorder %v1298_v40, 4 }
 0x176   : > { %v1313_v8 = vor.u32 %v1312_v1, %v1311_v58  ;;  %v1316_v9 = vor.u32 %v1315_v3, %v1314_v60  ;;  %v1198_v22 = vshll.u32 %v14249_v49, %v1195_v51  ;;  %v1199_v25 = vshrl.u32 %v14250_v53, %v1196_v7 }
 0x177   : > { %v1321_v13 = vsel %vm1317_vm3, %v1301_v0, %v1304_v4  ;;  %v1322_v14 = vsel %vm1320_vm6, %v1310_v6, 2102212464  ;;  %v1325_v16 = vsel %vm1317_vm3, %v1304_v4, %v1307_v5  ;;  %v1329_v18 = vsel %vm1317_vm3, %v1307_v5, %v1310_v6 }
 0x178   : > { %v1323_v19 = vsel %vm1319_vm5, %v1307_v5, %v1322_v14  ;;  %v1326_v17 = vsel %vm1320_vm6, %v1313_v8, 920167782  ;;  %v1330_v21 = vsel %vm1320_vm6, %v1316_v9, 1326507024  ;;  %v1201_v27 = vshll.u32 %v14250_v53, %v1195_v51 }
 0x179   : > { %v1327_v23 = vsel %vm1319_vm5, %v1310_v6, %v1326_v17  ;;  %v1331_v24 = vsel %vm1319_vm5, %v1313_v8, %v1330_v21  ;;  %v1324_v29 = vsel %vm1318_vm4, %v1321_v13, %v1323_v19  ;;  %v1202_v32 = vshrl.u32 %v14251_v55, %v1196_v7 }
 0x17a   : > { %v1328_v30 = vsel %vm1318_vm4, %v1325_v16, %v1327_v23  ;;  %v1332_v31 = vsel %vm1318_vm4, %v1329_v18, %v1331_v24  ;;  %v1200_v39 = vor.u32 %v1199_v25, %v1198_v22  ;;  %v1204_v42 = vshll.u32 %v14251_v55, %v1195_v51 }
 0x17b   : > { %v14553_v33 = vmul.u32.u64.low %v14518_v43, %v1332_v31  ;;  %v14554_v34 = vmul.u32.u64.high %v14518_v43, %v1332_v31, %v14553_v33  ;;  %v14557_v35 = vmul.u32.u64.low %v14518_v43, %v1328_v30  ;;  %v14558_v38 = vmul.u32.u64.high %v14518_v43, %v1328_v30, %v14557_v35 }
 0x17c   : > { %v1203_v41 = vor.u32 %v1202_v32, %v1201_v27  ;;  %v1205_v48 = vshrl.u32 %v14252_v57, %v1196_v7  ;;  %v1197_v50 = vshrl.u32 %v14249_v49, %v1196_v7  ;;  %v1207_v40 = vshll.u32 %v14252_v57, %v1195_v51 }
 0x17d   : > { %v1208_v54 = vshrl.u32 %v14253_v59, %v1196_v7  ;;  %v1211_v56 = vshrl.u32 %v14254_v2, %v1196_v7  ;;  %v1340_v58 = vmul.u32 %v14518_v43, %v1324_v29  ;;  %v1210_v61 = vshll.u32 %v14253_v59, %v1195_v51 }
 0x17e   : > { %v1206_v60 = vor.u32 %v1205_v48, %v1204_v42  ;;  %vm1213_vm7 = vcmp.lt.s32.totalorder %v14520_v44, 1  ;;  %vm1342_vm8 = vc.u32 %v14554_v34, %v14557_v35  ;;  %v1343_v62 = vadd.s32 1, %v14558_v38 }
 0x17f   : > { %v1209_v63 = vor.u32 %v1208_v54, %v1207_v40  ;;  %vm1214_vm9 = vcmp.lt.s32.totalorder %v14520_v44, 2  ;;  %v1212_v0 = vor.u32 %v1211_v56, %v1210_v61  ;;  %vm1215_vm10 = vcmp.lt.s32.totalorder %v14520_v44, 3 }
 0x180   : > { %vm1216_vm11 = vcmp.lt.s32.totalorder %v14520_v44, 4  ;;  %v1221_v1 = vsel %vm1213_vm7, %v1200_v39, %v1203_v41  ;;  %v1344_v43 = vsel %vm1342_vm8, %v1343_v62, %v14558_v38  ;;  %v1225_v51 = vsel %vm1213_vm7, %v1203_v41, %v1206_v60 }
 0x181   : > { %v1218_v3 = vsel %vm1216_vm11, %v1206_v60, 2102212464  ;;  %v1222_v4 = vsel %vm1216_vm11, %v1209_v63, 920167782  ;;  %v1345_v5 = vadd.s32 %v1344_v43, %v1340_v58  ;;  %v1217_v6 = vsel %vm1213_vm7, %v1197_v50, %v1200_v39 }
 0x182   : > { %v1223_v7 = vsel %vm1215_vm10, %v1206_v60, %v1222_v4  ;;  %v1226_v8 = vsel %vm1216_vm11, %v1212_v0, 1326507024  ;;  %v1219_v9 = vsel %vm1215_vm10, %v1203_v41, %v1218_v3  ;;  %vm1504_vm12 = vcmp.gt.s32.totalorder %v14528_v52, 0 }
 0x183   : > { %v1224_v13 = vsel %vm1214_vm9, %v1221_v1, %v1223_v7  ;;  %v1227_v14 = vsel %vm1215_vm10, %v1209_v63, %v1226_v8  ;;  %v1346_v16 = vadd.s32 536870912, %v1345_v5  ;;  %v1505_v23 = vsel %vm1504_vm12, %v14528_v52, 0 }
 0x184   : > { %v1228_v18 = vsel %vm1214_vm9, %v1225_v51, %v1227_v14  ;;  %v14581_v19 = vmul.u32.u64.low %v14522_v45, %v1224_v13  ;;  %v14582_v17 = vmul.u32.u64.high %v14522_v45, %v1224_v13, %v14581_v19  ;;  %v1220_v25 = vsel %vm1214_vm9, %v1217_v6, %v1219_v9 }
 0x185   : > { %v14586_v21 = vmul.u32.u64.low %v14522_v45, %v1228_v18  ;;  %v14587_v22 = vmul.u32.u64.high %v14522_v45, %v1228_v18, %v14586_v21  ;;  %v14590_v24 = vshrl.u32 %v1346_v16, 30  ;;  %v1500_v27 = vand.u32 8388607, %v1493_v46 }
 0x186   : > { %v1507_v29 = vand.u32 31, %v1505_v23  ;;  %v1239_v31 = vadd.s32 1, %v14582_v17  ;;  %v1392_v32 = vand.u32 2139095040, %v14511_v28  ;;  %v1236_v33 = vmul.u32 %v14522_v45, %v1220_v25 }
 0x187   : > { %v1348_v30 = vshll.u32 %v14590_v24, 30  ;;  %vm1238_vm13 = vc.u32 %v14587_v22, %v14581_v19  ;;  %v1501_v44 = vor.u32 8388608, %v1500_v27  ;;  %v1341_v40 = vadd.s32 %v14557_v35, %v14554_v34 }
 0x188   : > { %v1240_v38 = vsel %vm1238_vm13, %v1239_v31, %v14582_v17  ;;  %v1508_v41 = vsub.s32 32, %v1507_v29  ;;  %v1393_v48 = vshrl.u32 %v1392_v32, 23  ;;  %v1506_v63 = vshrl.u32 %v1505_v23, 5 }
 0x189   : > { %v1349_v52 = vsub.s32 %v1345_v5, %v1348_v30  ;;  %v1241_v39 = vadd.s32 %v1240_v38, %v1236_v33  ;;  %v14604_v56 = vshll.u32 %v1501_v44, 8  ;;  %v1510_v0 = vshll.u32 %v14249_v49, %v1507_v29 }
 0x18a   : > { %v1511_v45 = vshrl.u32 %v14250_v53, %v1508_v41  ;;  %v1514_v60 = vshrl.u32 %v14251_v55, %v1508_v41  ;;  %v1517_v61 = vshrl.u32 %v14252_v57, %v1508_v41  ;;  %v9650_v1 = vadd.s32 4294967169, %v1393_v48 }
 0x18b   : > { %v1351_v42 = vsub.s32 0, %v1349_v52  ;;  %v1242_v50 = vadd.s32 536870912, %v1241_v39  ;;  %v1513_v34 = vshll.u32 %v14250_v53, %v1507_v29  ;;  %v1516_v35 = vshll.u32 %v14251_v55, %v1507_v29 }
 0x18c   : > { %v1520_v3 = vshrl.u32 %v14253_v59, %v1508_v41  ;;  %v1509_v51 = vshrl.u32 %v14249_v49, %v1508_v41  ;;  %v1519_v5 = vshll.u32 %v14252_v57, %v1507_v29  ;;  %v1523_v6 = vshrl.u32 %v14254_v2, %v1508_v41 }
 0x18d   : > { %v9647_v54 = vmin.u32 %v1351_v42, %v1349_v52  ;;  %v14606_v58 = vshrl.u32 %v1242_v50, 30  ;;  %v1512_v8 = vor.u32 %v1511_v45, %v1510_v0  ;;  %v1515_v9 = vor.u32 %v1514_v60, %v1513_v34 }
 0x18e   : > { %v1518_v13 = vor.u32 %v1517_v61, %v1516_v35  ;;  %v1521_v14 = vor.u32 %v1520_v3, %v1519_v5  ;;  %v1522_v16 = vshll.u32 %v14253_v59, %v1507_v29  ;;  %vm1525_vm15 = vcmp.lt.s32.totalorder %v1506_v63, 1 }
 0x18f   : > { %v1353_v62 = vclz %v9647_v54  ;;  %v1244_v43 = vshll.u32 %v14606_v58, 30  ;;  %vm1526_vm1 = vcmp.lt.s32.totalorder %v1506_v63, 2  ;;  %vm1527_vm2 = vcmp.lt.s32.totalorder %v1506_v63, 3 }
 0x190   : > { %v1524_v25 = vor.u32 %v1523_v6, %v1522_v16  ;;  %vm1528_vm3 = vcmp.lt.s32.totalorder %v1506_v63, 4  ;;  %v1533_v32 = vsel %vm1525_vm15, %v1512_v8, %v1515_v9  ;;  %v1529_v29 = vsel %vm1525_vm15, %v1509_v51, %v1512_v8 }
 0x191   : > { %v9648_v4 = vadd.s32 4294967294, %v1353_v62  ;;  %v14619_v7 = vsub.s32 %v1241_v39, %v1244_v43  ;;  %v1530_v31 = vsel %vm1528_vm3, %v1518_v13, 2102212464  ;;  %v1534_v44 = vsel %vm1528_vm3, %v1521_v14, 920167782 }
 0x192   : > { %v1531_v41 = vsel %vm1527_vm2, %v1515_v9, %v1530_v31  ;;  %v1535_v42 = vsel %vm1527_vm2, %v1518_v13, %v1534_v44  ;;  %v1537_v48 = vsel %vm1525_vm15, %v1515_v9, %v1518_v13  ;;  %v1538_v45 = vsel %vm1528_vm3, %v1524_v25, 1326507024 }
 0x193   : > { %vm9649_vm14 = vcmp.lt.s32.totalorder %v9648_v4, 0  ;;  %v1247_v17 = vsub.s32 0, %v14619_v7  ;;  %v1536_v54 = vsel %vm1526_vm1, %v1533_v32, %v1535_v42  ;;  %v1371_v43 = vsub.s32 4, %v14590_v24 }
 0x194   : > { %v1356_v18 = vsel %vm9649_vm14, 0, %v9648_v4  ;;  %v14635_v60 = vmul.u32.u64.low %v14604_v56, %v1536_v54  ;;  %v14636_v61 = vmul.u32.u64.high %v14604_v56, %v1536_v54, %v14635_v60  ;;  %v1532_v34 = vsel %vm1526_vm1, %v1529_v29, %v1531_v41 }
 0x195   : > { %v1357_v21 = vsub.s32 32, %v1356_v18  ;;  %v1361_v23 = vsub.s32 4294967266, %v1356_v18  ;;  %v1358_v27 = vshll.u32 %v1349_v52, %v1356_v18  ;;  %v9643_v30 = vmin.u32 %v1247_v17, %v14619_v7 }
 0x196   : > { %v1399_v6 = vadd.s32 1, %v9650_v1  ;;  %v1551_v8 = vadd.s32 1, %v14636_v61  ;;  %vm1287_vm4 = vcmp.lt.s32.totalorder %v14497_v10, 0  ;;  %v1389_v13 = vand.u32 2147483647, %v14511_v28 }
 0x197   : > { %v1359_v33 = vshrl.u32 %v1341_v40, %v1357_v21  ;;  %v1362_v38 = vadd.s32 127, %v1361_v23  ;;  %v1249_v39 = vclz %v9643_v30  ;;  %v1539_v40 = vsel %vm1527_vm2, %v1521_v14, %v1538_v45 }
 0x198   : > { %v1540_v0 = vsel %vm1526_vm1, %v1537_v48, %v1539_v40  ;;  %vm1400_vm5 = vcmp.gt.s32.totalorder %v1399_v6, 0  ;;  %v1372_v14 = vsel %vm1287_vm4, %v1371_v43, %v14590_v24  ;;  %v1548_v63 = vmul.u32 %v14604_v56, %v1532_v34 }
 0x199   : > { %v1360_v52 = vor.u32 %v1359_v33, %v1358_v27  ;;  %v1363_v50 = vshll.u32 %v1362_v38, 23  ;;  %v14642_v35 = vmul.u32.u64.low %v14604_v56, %v1540_v0  ;;  %v14643_v3 = vmul.u32.u64.high %v14604_v56, %v1540_v0, %v14642_v35 }
 0x19a   : > { %v9644_v5 = vadd.s32 4294967294, %v1249_v39  ;;  %v1401_v17 = vsel %vm1400_vm5, %v1399_v6, 0  ;;  %vm1286_vm8 = vcmp.le.f32.partialorder %v1285_v12, 0.7853982  ;;  %v1396_v25 = vand.u32 8388607, %v1389_v13 }
 0x19b   : > { %v1364_v62 = vor.u32 4788187, %v1363_v50  ;;  %v1367_v51 = vcvt.s32.f32 %v1360_v52  ;;  %vm1550_vm6 = vc.u32 %v14643_v3, %v14635_v60  ;;  %v14654_v23 = vsel %vm1286_vm8, 0, %v1372_v14 }
 0x19c   : > { %vm9645_vm7 = vcmp.lt.s32.totalorder %v9644_v5, 0  ;;  %v1552_v18 = vsel %vm1550_vm6, %v1551_v8, %v14636_v61  ;;  %v1403_v24 = vand.u32 31, %v1401_v17  ;;  %v2209_v31 = vand.u32 3, %v14654_v23 }
 0x19d   : > { %v1365_v4 = vand.u32 2147483647, %v1364_v62  ;;  %v1553_v1 = vadd.s32 %v1552_v18, %v1548_v63  ;;  %v14659_v27 = vsel %vm9645_vm7, 0, %v9644_v5  ;;  %v1397_v33 = vor.u32 8388608, %v1396_v25 }
 0x19e   : > { %v1257_v12 = vsub.s32 4294967266, %v14659_v27  ;;  %v1404_v38 = vsub.s32 32, %v1403_v24  ;;  %v1253_v29 = vsub.s32 32, %v14659_v27  ;;  %v1704_v39 = vand.u32 2139095040, %v14514_v36 }
 0x19f   : > { %v1368_v9 = vmul.f32 %v1367_v51, %v1365_v4  ;;  %v1554_v30 = vadd.s32 536870912, %v1553_v1  ;;  %vm2211_vm9 = vcmp.eq.s32.totalorder %v2209_v31, 0  ;;  %v1237_v41 = vadd.s32 %v14581_v19, %v14587_v22 }
 0x1a0   : > { %vm2210_vm10 = vcmp.lt.s32.totalorder %v2209_v31, 2  ;;  %vm2214_vm11 = vcmp.eq.s32.totalorder %v2209_v31, 2  ;;  %v1258_v48 = vadd.s32 127, %v1257_v12  ;;  %v1407_v52 = vshrl.u32 %v14250_v53, %v1404_v38 }
 0x1a1   : > { %v1369_v16 = vxor.u32 2147483648, %v1368_v9  ;;  %v14662_v32 = vshrl.u32 %v1554_v30, 30  ;;  %v14673_v50 = vshll.u32 %v1397_v33, 8  ;;  %vm1377_vm12 = vweird.f32 %v14497_v10 }
 0x1a2   : > { %v14676_v54 = vshrl.u32 %v1237_v41, %v1253_v29  ;;  %v1410_v40 = vshrl.u32 %v14251_v55, %v1404_v38  ;;  %v1416_v61 = vshrl.u32 %v14253_v59, %v1404_v38  ;;  %v1549_v19 = vadd.s32 %v14635_v60, %v14643_v3 }
 0x1a3   : > { %v1370_v21 = vsel %vm1287_vm4, %v1369_v16, %v1368_v9  ;;  %v1556_v44 = vshll.u32 %v14662_v32, 30  ;;  %v1406_v22 = vshll.u32 %v14249_v49, %v1403_v24  ;;  %v1413_v62 = vshrl.u32 %v14252_v57, %v1404_v38 }
 0x1a4   : > { %v1373_v56 = vsel %vm1286_vm8, %v14497_v10, %v1370_v21  ;;  %v1705_v0 = vshrl.u32 %v1704_v39, 23  ;;  %v1402_v34 = vshrl.u32 %v1401_v17, 5  ;;  %v1409_v35 = vshll.u32 %v14250_v53, %v1403_v24 }
 0x1a5   : > { %14102 = vcosq.f32 %v1373_v56  ;;  %v14670_v42 = vsub.s32 %v1553_v1, %v1556_v44  ;;  %v1415_v4 = vshll.u32 %v14252_v57, %v1403_v24  ;;  %v1259_v5 = vshll.u32 %v1258_v48, 23 }
 0x1a6   : > { %14104 = vsinq.f32 %v1373_v56  ;;  %v1408_v6 = vor.u32 %v1407_v52, %v1406_v22  ;;  %v1412_v8 = vshll.u32 %v14251_v55, %v1403_v24  ;;  %v1419_v60 = vshrl.u32 %v14254_v2, %v1404_v38 }
 0x1a7   : > { %v1559_v45 = vsub.s32 0, %v14670_v42  ;;  %v1411_v63 = vor.u32 %v1410_v40, %v1409_v35  ;;  %v1417_v16 = vor.u32 %v1416_v61, %v1415_v4  ;;  %v1418_v1 = vshll.u32 %v14253_v59, %v1403_v24 }
 0x1a8   : > { %v1414_v17 = vor.u32 %v1413_v62, %v1412_v8  ;;  %v9662_v21 = vadd.s32 4294967169, %v1705_v0  ;;  %v1405_v30 = vshrl.u32 %v14249_v49, %v1404_v38  ;;  %vm1421_vm13 = vcmp.lt.s32.totalorder %v1402_v34, 1 }
 0x1a9   : > { %v9655_v43 = vmin.u32 %v1559_v45, %v14670_v42  ;;  %v1420_v33 = vor.u32 %v1419_v60, %v1418_v1  ;;  %vm1423_vm14 = vcmp.lt.s32.totalorder %v1402_v34, 3  ;;  %vm1424_vm15 = vcmp.lt.s32.totalorder %v1402_v34, 4 }
 0x1aa   : > { %v1429_v29 = vsel %vm1421_vm13, %v1408_v6, %v1411_v63  ;;  %v1430_v44 = vsel %vm1424_vm15, %v1417_v16, 920167782  ;;  %v1426_v41 = vsel %vm1424_vm15, %v1414_v17, 2102212464  ;;  %v1260_v52 = vor.u32 4788187, %v1259_v5 }
 0x1ab   : > { %v1561_v14 = vclz %v9655_v43  ;;  %v1431_v48 = vsel %vm1423_vm14, %v1414_v17, %v1430_v44  ;;  %vm1422_vm2 = vcmp.lt.s32.totalorder %v1402_v34, 2  ;;  %v1425_v31 = vsel %vm1421_vm13, %v1405_v30, %v1408_v6 }
 0x1ac   : > { %v1432_v61 = vsel %vm1422_vm2, %v1429_v29, %v1431_v48  ;;  %v1433_v22 = vsel %vm1421_vm13, %v1411_v63, %v1414_v17  ;;  %v1434_v62 = vsel %vm1424_vm15, %v1420_v33, 1326507024  ;;  %vm1183_vm3 = vcmp.lt.s32.totalorder %v14501_v15, 0 }
 0x1ad   : > { %v9656_v56 = vadd.s32 4294967294, %v1561_v14  ;;  %v1427_v35 = vsel %vm1423_vm14, %v1411_v63, %v1426_v41  ;;  %v1435_v4 = vsel %vm1423_vm14, %v1417_v16, %v1434_v62  ;;  %v1254_v14 = vshll.u32 %v14619_v7, %v14659_v27 }
 0x1ae   : > { %v1436_v8 = vsel %vm1422_vm2, %v1433_v22, %v1435_v4  ;;  %v14724_v6 = vmul.u32.u64.low %v14673_v50, %v1432_v61  ;;  %v14725_v60 = vmul.u32.u64.high %v14673_v50, %v1432_v61, %v14724_v6  ;;  %vm1495_vm4 = vcmp.lt.s32.totalorder %v14509_v26, 0 }
 0x1af   : > { %v14687_v51 = vpop.eup %14102  ;;  %vm9657_vm1 = vcmp.lt.s32.totalorder %v9656_v56, 0  ;;  %v1428_v16 = vsel %vm1422_vm2, %v1425_v31, %v1427_v35  ;;  %v1711_v1 = vadd.s32 1, %v9662_v21  ;;  %v1267_v30 = vsub.s32 4, %v14606_v58 }
 0x1b0   : > { %v14691_v3 = vpop.eup %14104  ;;  %v1385_v9 = vxor.u32 2147483648, %v14687_v51  ;;  %v1564_v38 = vsel %vm9657_vm1, 0, %v9656_v56  ;;  %v1261_v56 = vand.u32 2147483647, %v1260_v52  ;;  %v1579_v7 = vsub.s32 4, %v14662_v32 }
 0x1b1   : > { %v1382_v18 = vxor.u32 2147483648, %v14691_v3  ;;  %v1565_v45 = vsub.s32 32, %v1564_v38  ;;  %v1569_v40 = vsub.s32 4294967266, %v1564_v38  ;;  %v1566_v0 = vshll.u32 %v14670_v42, %v1564_v38 }
 0x1b2   : > { %v2216_v25 = vsel %vm2214_vm11, %v1385_v9, %v14691_v3  ;;  %v1447_v27 = vadd.s32 1, %v14725_v60  ;;  %vm1712_vm5 = vcmp.gt.s32.totalorder %v1711_v1, 0  ;;  %v1600_v21 = vand.u32 2139095040, %v14516_v37 }
 0x1b3   : > { %v2213_v12 = vsel %vm2211_vm9, %v14687_v51, %v1382_v18  ;;  %v1567_v43 = vshrl.u32 %v1549_v19, %v1565_v45  ;;  %v1570_v5 = vadd.s32 127, %v1569_v40  ;;  %v1713_v34 = vsel %vm1712_vm5, %v1711_v1, 0 }
 0x1b4   : > { %v2217_v24 = vsel %vm2210_vm10, %v2213_v12, %v2216_v25  ;;  %v14732_v42 = vmul.u32.u64.low %v14673_v50, %v1436_v8  ;;  %v14733_v19 = vmul.u32.u64.high %v14673_v50, %v1436_v8, %v14732_v42  ;;  %v1256_v25 = vor.u32 %v14676_v54, %v1254_v14 }
 0x1b5   : > { %v14710_v39 = vsel %vm1377_vm12, nan, %v2217_v24  ;;  %v1568_v63 = vor.u32 %v1567_v43, %v1566_v0  ;;  %v1571_v17 = vshll.u32 %v1570_v5, 23  ;;  %v1701_v12 = vand.u32 2147483647, %v14514_v36 }
 0x1b6   : > { %18490 = vst [vmem:[#allocation5_spill] sm:$0xff] %v14710_v39  ;;  %v1444_v24 = vmul.u32 %v14673_v50, %v1428_v16  ;;  %vm1446_vm6 = vc.u32 %v14733_v19, %v14724_v6  ;;  %v1715_v38 = vand.u32 31, %v1713_v34  ;;  %v1378_v41 = vadd.s32 3, %v14654_v23 }
 0x1b7   : > { %v1572_v33 = vor.u32 4788187, %v1571_v17  ;;  %v1575_v29 = vcvt.s32.f32 %v1568_v63  ;;  %v1448_v44 = vsel %vm1446_vm6, %v1447_v27, %v14725_v60  ;;  %vm14749_vm7 = vcmp.le.f32.partialorder %v1181_v20, 0.7853982 }
 0x1b8   : > { %v1263_v50 = vcvt.s32.f32 %v1256_v25  ;;  %vm14755_vm8 = vcmp.le.f32.partialorder %v1493_v46, 0.7853982  ;;  %v1449_v45 = vadd.s32 %v1448_v44, %v1444_v24  ;;  %v1268_v31 = vsel %vm1183_vm3, %v1267_v30, %v14606_v58 }
 0x1b9   : > { %v1573_v54 = vand.u32 2147483647, %v1572_v33  ;;  %v1708_v23 = vand.u32 8388607, %v1701_v12  ;;  %v1716_v20 = vsub.s32 32, %v1715_v38  ;;  %v1580_v22 = vsel %vm1495_vm4, %v1579_v7, %v14662_v32 }
 0x1ba   : > { %v1264_v61 = vmul.f32 %v1263_v50, %v1261_v56  ;;  %v1450_v62 = vadd.s32 536870912, %v1449_v45  ;;  %v1601_v46 = vshrl.u32 %v1600_v21, 23  ;;  %v14767_v43 = vshrl.u32 %v1713_v34, 5 }
 0x1bb   : > { %v1576_v40 = vmul.f32 %v1575_v29, %v1573_v54  ;;  %v1719_v35 = vshrl.u32 %v14250_v53, %v1716_v20  ;;  %v1722_v4 = vshrl.u32 %v14251_v55, %v1716_v20  ;;  %v1725_v5 = vshrl.u32 %v14252_v57, %v1716_v20 }
 0x1bc   : > { %v14771_v58 = vshrl.u32 %v1450_v62, 30  ;;  %v1728_v8 = vshrl.u32 %v14253_v59, %v1716_v20  ;;  %v1731_v60 = vshrl.u32 %v14254_v2, %v1716_v20  ;;  %v1718_v14 = vshll.u32 %v14249_v49, %v1715_v38 }
 0x1bd   : > { %v1577_v0 = vxor.u32 2147483648, %v1576_v40  ;;  %v1727_v42 = vshll.u32 %v14252_v57, %v1715_v38  ;;  %v1730_v63 = vshll.u32 %v14253_v59, %v1715_v38  ;;  %v1721_v1 = vshll.u32 %v14250_v53, %v1715_v38 }
 0x1be   : > { %v1452_v16 = vshll.u32 %v14771_v58, 30  ;;  %v1724_v25 = vshll.u32 %v14251_v55, %v1715_v38  ;;  %v1720_v56 = vor.u32 %v1719_v35, %v1718_v14  ;;  %v14789_v34 = vand.u32 3, %v1378_v41 }
 0x1bf   : > { %v1578_v32 = vsel %vm1495_vm4, %v1577_v0, %v1576_v40  ;;  %v1729_v30 = vor.u32 %v1728_v8, %v1727_v42  ;;  %v1732_v33 = vor.u32 %v1731_v60, %v1730_v63  ;;  %v1723_v27 = vor.u32 %v1722_v4, %v1721_v1 }
 0x1c0   : > { %v1581_v17 = vsel %vm14755_vm8, %v14509_v26, %v1578_v32  ;;  %v14787_v7 = vsub.s32 %v1449_v45, %v1452_v16  ;;  %v1726_v24 = vor.u32 %v1725_v5, %v1724_v25  ;;  %v1265_v21 = vxor.u32 2147483648, %v1264_v61 }
 0x1c1   : > { %14106 = vcosq.f32 %v1581_v17  ;;  %v1270_v54 = vsel %vm14749_vm7, 0, %v1268_v31  ;;  %v1582_v29 = vsel %vm14755_vm8, 0, %v1580_v22  ;;  %v1709_v38 = vor.u32 8388608, %v1708_v23 }
 0x1c2   : > { %14108 = vsinq.f32 %v1581_v17  ;;  %v1455_v44 = vsub.s32 0, %v14787_v7  ;;  %vm1736_vm9 = vcmp.lt.s32.totalorder %v14767_v43, 4  ;;  %vm1733_vm10 = vcmp.lt.s32.totalorder %v14767_v43, 1 }
 0x1c3   : > { %v1742_v50 = vsel %vm1736_vm9, %v1729_v30, 920167782  ;;  %v1746_v41 = vsel %vm1736_vm9, %v1732_v33, 1326507024  ;;  %v9658_v45 = vadd.s32 4294967169, %v1601_v46  ;;  %vm1735_vm11 = vcmp.lt.s32.totalorder %v14767_v43, 3 }
 0x1c4   : > { %v9651_v40 = vmin.u32 %v1455_v44, %v14787_v7  ;;  %v1741_v52 = vsel %vm1733_vm10, %v1720_v56, %v1723_v27  ;;  %v1745_v31 = vsel %vm1733_vm10, %v1723_v27, %v1726_v24  ;;  %v1266_v23 = vsel %vm1183_vm3, %v1265_v21, %v1264_v61 }
 0x1c5   : > { %v1274_v22 = vadd.s32 3, %v1270_v54  ;;  %v1743_v62 = vsel %vm1735_vm11, %v1726_v24, %v1742_v50  ;;  %v1747_v46 = vsel %vm1735_vm11, %v1729_v30, %v1746_v41  ;;  %vm1585_vm13 = vweird.f32 %v14509_v26 }
 0x1c6   : > { %v2415_v0 = vand.u32 3, %v1582_v29  ;;  %v1457_v35 = vclz %v9651_v40  ;;  %vm1734_vm14 = vcmp.lt.s32.totalorder %v14767_v43, 2  ;;  %v1749_v4 = vshll.u32 %v1709_v38, 8 }
 0x1c7   : > { %v1717_v5 = vshrl.u32 %v14249_v49, %v1716_v20  ;;  %v1738_v8 = vsel %vm1736_vm9, %v1726_v24, 2102212464  ;;  %v1744_v61 = vsel %vm1734_vm14, %v1741_v52, %v1743_v62  ;;  %v1748_v60 = vsel %vm1734_vm14, %v1745_v31, %v1747_v46 }
 0x1c8   : > { %v9652_v32 = vadd.s32 4294967294, %v1457_v35  ;;  %v14823_v14 = vmul.u32.u64.low %v1749_v4, %v1748_v60  ;;  %v14824_v42 = vmul.u32.u64.high %v1749_v4, %v1748_v60, %v14823_v14  ;;  %v1607_v63 = vadd.s32 1, %v9658_v45 }
 0x1c9   : > { %v1586_v16 = vadd.s32 3, %v1582_v29  ;;  %v1737_v20 = vsel %vm1733_vm10, %v1717_v5, %v1720_v56  ;;  %v14830_v1 = vmul.u32.u64.low %v1749_v4, %v1744_v61  ;;  %v14831_v25 = vmul.u32.u64.high %v1749_v4, %v1744_v61, %v14830_v1 }
 0x1ca   : > { %vm9653_vm15 = vcmp.lt.s32.totalorder %v9652_v32, 0  ;;  %v1739_v24 = vsel %vm1735_vm11, %v1723_v27, %v1738_v8  ;;  %vm1608_vm1 = vcmp.gt.s32.totalorder %v1607_v63, 0  ;;  %vm2416_vm2 = vcmp.lt.s32.totalorder %v2415_v0, 2 }
 0x1cb   : > { %v14826_v17 = vpop.eup %14106  ;;  %vm2420_vm3 = vcmp.eq.s32.totalorder %v2415_v0, 2  ;;  %v1460_v29 = vsel %vm9653_vm15, 0, %v9652_v32  ;;  %vm2417_vm4 = vcmp.eq.s32.totalorder %v2415_v0, 0  ;;  %v1445_v44 = vadd.s32 %v14724_v6, %v14733_v19 }
 0x1cc   : > { %v14834_v30 = vpop.eup %14108  ;;  %v1593_v33 = vxor.u32 2147483648, %v14826_v17  ;;  %v1461_v38 = vsub.s32 32, %v1460_v29  ;;  %v1465_v27 = vsub.s32 4294967266, %v1460_v29  ;;  %v1740_v41 = vsel %vm1734_vm14, %v1737_v20, %v1739_v24 }
 0x1cd   : > { %v1590_v21 = vxor.u32 2147483648, %v14834_v30  ;;  %v1609_v45 = vsel %vm1608_vm1, %v1607_v63, 0  ;;  %vm1391_vm5 = vcmp.lt.s32.totalorder %v14511_v28, 0  ;;  %v1462_v52 = vshll.u32 %v14787_v7, %v1460_v29 }
 0x1ce   : > { %v2422_v56 = vsel %vm2420_vm3, %v1593_v33, %v14834_v30  ;;  %v1463_v31 = vshrl.u32 %v1445_v44, %v1461_v38  ;;  %vm1758_vm6 = vc.u32 %v14824_v42, %v14830_v1  ;;  %v1466_v19 = vadd.s32 127, %v1465_v27 }
 0x1cf   : > { %v2419_v50 = vsel %vm2417_vm4, %v14826_v17, %v1590_v21  ;;  %v1759_v62 = vadd.s32 1, %v14831_v25  ;;  %v1597_v43 = vand.u32 2147483647, %v14516_v37  ;;  %vm1381_vm8 = vcmp.eq.s32.totalorder %v14789_v34, 0 }
 0x1d0   : > { %v2423_v40 = vsel %vm2416_vm2, %v2419_v50, %v2422_v56  ;;  %vm1384_vm9 = vcmp.eq.s32.totalorder %v14789_v34, 2  ;;  %v14862_v46 = vand.u32 3, %v1270_v54  ;;  %v1464_v7 = vor.u32 %v1463_v31, %v1462_v52 }
 0x1d1   : > { %v14856_v6 = vsel %vm1585_vm13, nan, %v2423_v40  ;;  %v1756_v0 = vmul.u32 %v1749_v4, %v1740_v41  ;;  %v14864_v35 = vand.u32 3, %v1274_v22  ;;  %vm14868_vm10 = vcmp.le.f32.partialorder %v1389_v13, 0.7853982 }
 0x1d2   : > { %18495 = vst [vmem:[#allocation6_spill] sm:$0xff] %v14856_v6  ;;  %v1467_v8 = vshll.u32 %v1466_v19, 23  ;;  %v1760_v61 = vsel %vm1758_vm6, %v1759_v62, %v14831_v25  ;;  %v1611_v60 = vand.u32 31, %v1609_v45  ;;  %v1386_v32 = vsel %vm1384_vm9, %v1385_v9, %v14691_v3 }
 0x1d3   : > { %v14879_v54 = vsel %vm14749_vm7, %v14501_v15, %v1266_v23  ;;  %v14881_v22 = vand.u32 3, %v1586_v16  ;;  %v1761_v4 = vadd.s32 %v1760_v61, %v1756_v0  ;;  %v1475_v14 = vsub.s32 4, %v14771_v58 }
 0x1d4   : > { %v1468_v13 = vor.u32 4788187, %v1467_v8  ;;  %v1604_v63 = vand.u32 8388607, %v1597_v43  ;;  %v1612_v20 = vsub.s32 32, %v1611_v60  ;;  %v1471_v25 = vcvt.s32.f32 %v1464_v7 }
 0x1d5   : > { %v1762_v24 = vadd.s32 536870912, %v1761_v4  ;;  %v14886_v29 = vshrl.u32 %v1609_v45, 5  ;;  %v1614_v9 = vshll.u32 %v14249_v49, %v1611_v60  ;;  %v1617_v23 = vshll.u32 %v14250_v53, %v1611_v60 }
 0x1d6   : > { %v1469_v56 = vand.u32 2147483647, %v1468_v13  ;;  %v1615_v48 = vshrl.u32 %v14250_v53, %v1612_v20  ;;  %v1618_v16 = vshrl.u32 %v14251_v55, %v1612_v20  ;;  %v1621_v38 = vshrl.u32 %v14252_v57, %v1612_v20 }
 0x1d7   : > { %v14892_v44 = vshrl.u32 %v1762_v24, 30  ;;  %v1623_v50 = vshll.u32 %v14252_v57, %v1611_v60  ;;  %v1624_v27 = vshrl.u32 %v14253_v59, %v1612_v20  ;;  %vm1380_vm7 = vcmp.lt.s32.totalorder %v14789_v34, 2 }
 0x1d8   : > { %v1472_v41 = vmul.f32 %v1471_v25, %v1469_v56  ;;  %v1476_v45 = vsel %vm1391_vm5, %v1475_v14, %v14771_v58  ;;  %v1620_v40 = vshll.u32 %v14251_v55, %v1611_v60  ;;  %v1627_v52 = vshrl.u32 %v14254_v2, %v1612_v20 }
 0x1d9   : > { %v1764_v31 = vshll.u32 %v14892_v44, 30  ;;  %v1616_v19 = vor.u32 %v1615_v48, %v1614_v9  ;;  %v1619_v62 = vor.u32 %v1618_v16, %v1617_v23  ;;  %v1625_v7 = vor.u32 %v1624_v27, %v1623_v50 }
 0x1da   : > { %v1383_v0 = vsel %vm1381_vm8, %v14687_v51, %v1382_v18  ;;  %v1473_v8 = vxor.u32 2147483648, %v1472_v41  ;;  %v1622_v61 = vor.u32 %v1621_v38, %v1620_v40  ;;  %v1626_v13 = vshll.u32 %v14253_v59, %v1611_v60 }
 0x1db   : > { %v1478_v58 = vsel %vm14868_vm10, 0, %v1476_v45  ;;  %v14912_v14 = vsub.s32 %v1761_v4, %v1764_v31  ;;  %v1605_v25 = vor.u32 8388608, %v1604_v63  ;;  %vm1632_vm11 = vcmp.lt.s32.totalorder %v14886_v29, 4 }
 0x1dc   : > { %v1474_v24 = vsel %vm1391_vm5, %v1473_v8, %v1472_v41  ;;  %v1628_v3 = vor.u32 %v1627_v52, %v1626_v13  ;;  %vm1629_vm14 = vcmp.lt.s32.totalorder %v14886_v29, 1  ;;  %v1638_v51 = vsel %vm1632_vm11, %v1625_v7, 920167782 }
 0x1dd   : > { %v1477_v18 = vsel %vm14868_vm10, %v14511_v28, %v1474_v24  ;;  %v1767_v60 = vsub.s32 0, %v14912_v14  ;;  %vm1631_vm15 = vcmp.lt.s32.totalorder %v14886_v29, 3  ;;  %v1637_v4 = vsel %vm1629_vm14, %v1616_v19, %v1619_v62 }
 0x1de   : > { %14110 = vcosq.f32 %v1477_v18  ;;  %vm1630_vm1 = vcmp.lt.s32.totalorder %v14886_v29, 2  ;;  %v1639_v63 = vsel %vm1631_vm15, %v1622_v61, %v1638_v51  ;;  %v1912_v9 = vand.u32 2139095040, %v14525_v47 }
 0x1df   : > { %14112 = vsinq.f32 %v1477_v18  ;;  %vm1703_vm2 = vcmp.lt.s32.totalorder %v14514_v36, 0  ;;  %v9663_v5 = vmin.u32 %v1767_v60, %v14912_v14  ;;  %v1613_v56 = vshrl.u32 %v14249_v49, %v1612_v20 }
 0x1e0   : > { %v1634_v48 = vsel %vm1632_vm11, %v1622_v61, 2102212464  ;;  %v1640_v23 = vsel %vm1630_vm1, %v1637_v4, %v1639_v63  ;;  %v1641_v16 = vsel %vm1629_vm14, %v1619_v62, %v1622_v61  ;;  %v1642_v38 = vsel %vm1632_vm11, %v1628_v3, 1326507024 }
 0x1e1   : > { %v1645_v50 = vshll.u32 %v1605_v25, 8  ;;  %v1387_v27 = vsel %vm1380_vm7, %v1383_v0, %v1386_v32  ;;  %v2312_v41 = vand.u32 3, %v1478_v58  ;;  %v1769_v45 = vclz %v9663_v5 }
 0x1e2   : > { %v1633_v20 = vsel %vm1629_vm14, %v1613_v56, %v1616_v19  ;;  %vm14948_vm3 = vcmp.le.f32.partialorder %v1701_v12, 0.7853982  ;;  %v1635_v52 = vsel %vm1631_vm15, %v1619_v62, %v1634_v48  ;;  %v1643_v31 = vsel %vm1631_vm15, %v1625_v7, %v1642_v38 }
 0x1e3   : > { %v14956_v8 = vmul.u32.u64.low %v1645_v50, %v1640_v23  ;;  %v14957_v34 = vmul.u32.u64.high %v1645_v50, %v1640_v23, %v14956_v8  ;;  %14114 = vcosq.f32 %v14879_v54  ;;  %v9664_v32 = vadd.s32 4294967294, %v1769_v45 }
 0x1e4   : > { %v1644_v19 = vsel %vm1630_vm1, %v1641_v16, %v1643_v31  ;;  %v1913_v12 = vshrl.u32 %v1912_v9, 23  ;;  %v14965_v0 = vsel %vm1377_vm12, nan, %v1387_v27  ;;  %vm1589_vm4 = vcmp.eq.s32.totalorder %v14881_v22, 0 }
 0x1e5   : > { %vm1592_vm5 = vcmp.eq.s32.totalorder %v14881_v22, 2  ;;  %v1787_v62 = vsub.s32 4, %v14892_v44  ;;  %v14970_v7 = vmul.u32.u64.low %v1645_v50, %v1644_v19  ;;  %v14971_v61 = vmul.u32.u64.high %v1645_v50, %v1644_v19, %v14970_v7 }
 0x1e6   : > { %vm1481_vm6 = vweird.f32 %v14511_v28  ;;  %v1482_v13 = vadd.s32 3, %v1478_v58  ;;  %vm9665_vm8 = vcmp.lt.s32.totalorder %v9664_v32, 0  ;;  %v1636_v25 = vsel %vm1630_vm1, %v1633_v20, %v1635_v52 }
 0x1e7   : > { %v9670_v24 = vadd.s32 4294967169, %v1913_v12  ;;  %vm2314_vm9 = vcmp.eq.s32.totalorder %v2312_v41, 0  ;;  %vm2317_vm12 = vcmp.eq.s32.totalorder %v2312_v41, 2  ;;  %v1772_v10 = vsel %vm9665_vm8, 0, %v9664_v32 }
 0x1e8   : > { %v1655_v3 = vadd.s32 1, %v14957_v34  ;;  %v1757_v51 = vadd.s32 %v14830_v1, %v14824_v42  ;;  %v1773_v18 = vsub.s32 32, %v1772_v10  ;;  %v1777_v60 = vsub.s32 4294967266, %v1772_v10  ;;  %v14979_v63 = vpop.eup %14110 }
 0x1e9   : > { %v1919_v4 = vadd.s32 1, %v9670_v24  ;;  %v1774_v58 = vshll.u32 %v14912_v14, %v1772_v10  ;;  %v1788_v29 = vsel %vm1703_vm2, %v1787_v62, %v14892_v44  ;;  %v1652_v9 = vmul.u32 %v1645_v50, %v1636_v25  ;;  %v14987_v5 = vpop.eup %14112 }
 0x1ea   : > { %vm1654_vm10 = vc.u32 %v14971_v61, %v14956_v8  ;;  %v1489_v56 = vxor.u32 2147483648, %v14979_v63  ;;  %v1775_v42 = vshrl.u32 %v1757_v51, %v1773_v18  ;;  %v1778_v1 = vadd.s32 127, %v1777_v60 }
 0x1eb   : > { %v1656_v48 = vsel %vm1654_vm10, %v1655_v3, %v14957_v34  ;;  %v1486_v23 = vxor.u32 2147483648, %v14987_v5  ;;  %v1909_v14 = vand.u32 2147483647, %v14525_v47  ;;  %vm1920_vm7 = vcmp.gt.s32.totalorder %v1919_v4, 0 }
 0x1ec   : > { %v1657_v16 = vadd.s32 %v1656_v48, %v1652_v9  ;;  %v2319_v44 = vsel %vm2317_vm12, %v1489_v56, %v14987_v5  ;;  %v1776_v38 = vor.u32 %v1775_v42, %v1774_v58  ;;  %v1779_v50 = vshll.u32 %v1778_v1, 23 }
 0x1ed   : > { %v1790_v27 = vsel %vm14948_vm3, 0, %v1788_v29  ;;  %vm2313_vm11 = vcmp.lt.s32.totalorder %v2312_v41, 2  ;;  %v2316_v45 = vsel %vm2314_vm9, %v14979_v63, %v1486_v23  ;;  %v1921_v52 = vsel %vm1920_vm7, %v1919_v4, 0  ;;  %v15003_v31 = vpop.eup %14114 }
 0x1ee   : > { %v1658_v20 = vadd.s32 536870912, %v1657_v16  ;;  %v1591_v34 = vsel %vm1589_vm4, %v14826_v17, %v1590_v21  ;;  %v1594_v32 = vsel %vm1592_vm5, %v1593_v33, %v14834_v30  ;;  %v2320_v19 = vsel %vm2313_vm11, %v2316_v45, %v2319_v44 }
 0x1ef   : > { %v1780_v12 = vor.u32 4788187, %v1779_v50  ;;  %v15017_v41 = vsel %vm1481_vm6, nan, %v2320_v19  ;;  %v1794_v62 = vadd.s32 3, %v1790_v27  ;;  %v1916_v25 = vand.u32 8388607, %v1909_v14 }
 0x1f0   : > { %18500 = vst [vmem:[#allocation7_spill] sm:$0xff] %v15017_v41  ;;  %v15019_v7 = vshrl.u32 %v1658_v20, 30  ;;  %v1783_v21 = vcvt.s32.f32 %v1776_v38  ;;  %v1923_v10 = vand.u32 31, %v1921_v52  ;;  %v1808_v17 = vand.u32 2139095040, %v14540_v11 }
 0x1f1   : > { %v1781_v24 = vand.u32 2147483647, %v1780_v12  ;;  %v15025_v3 = vand.u32 4294901760, %v14965_v0  ;;  %14116 = vsinq.f32 %v14879_v54  ;;  %vm1588_vm14 = vcmp.lt.s32.totalorder %v14881_v22, 2 }
 0x1f2   : > { %v1660_v30 = vshll.u32 %v15019_v7, 30  ;;  %v15030_v33 = vsel %vm1588_vm14, %v1591_v34, %v1594_v32  ;;  %v15032_v51 = vand.u32 3, %v1482_v13  ;;  %v1924_v60 = vsub.s32 32, %v1923_v10 }
 0x1f3   : > { %v1784_v18 = vmul.f32 %v1783_v21, %v1781_v24  ;;  %v15034_v4 = vand.u32 3, %v1794_v62  ;;  %v15036_v58 = vand.u32 3, %v1790_v27  ;;  %v1917_v9 = vor.u32 8388608, %v1916_v25 }
 0x1f4   : > { %v15038_v29 = vsub.s32 %v1657_v16, %v1660_v30  ;;  %v1653_v54 = vadd.s32 %v14956_v8, %v14971_v61  ;;  %v1927_v22 = vshrl.u32 %v14250_v53, %v1924_v60  ;;  %v1809_v1 = vshrl.u32 %v1808_v17, 23 }
 0x1f5   : > { %v1785_v42 = vxor.u32 2147483648, %v1784_v18  ;;  %vm1599_vm15 = vcmp.lt.s32.totalorder %v14516_v37, 0  ;;  %v15045_v48 = vshrl.u32 %v1921_v52, 5  ;;  %v1926_v44 = vshll.u32 %v14249_v49, %v1923_v10 }
 0x1f6   : > { %v1663_v13 = vsub.s32 0, %v15038_v29  ;;  %v1930_v38 = vshrl.u32 %v14251_v55, %v1924_v60  ;;  %v1929_v50 = vshll.u32 %v14250_v53, %v1923_v10  ;;  %v1933_v8 = vshrl.u32 %v14252_v57, %v1924_v60 }
 0x1f7   : > { %v1786_v16 = vsel %vm1703_vm2, %v1785_v42, %v1784_v18  ;;  %v1936_v61 = vshrl.u32 %v14253_v59, %v1924_v60  ;;  %v1932_v20 = vshll.u32 %v14251_v55, %v1923_v10  ;;  %v15059_v52 = vshll.u32 %v1917_v9, 8 }
 0x1f8   : > { %v1789_v27 = vsel %vm14948_vm3, %v14514_v36, %v1786_v16  ;;  %v9659_v45 = vmin.u32 %v1663_v13, %v15038_v29  ;;  %v1928_v34 = vor.u32 %v1927_v22, %v1926_v44  ;;  %v1931_v32 = vor.u32 %v1930_v38, %v1929_v50 }
 0x1f9   : > { %14118 = vcosq.f32 %v1789_v27  ;;  %v1935_v19 = vshll.u32 %v14252_v57, %v1923_v10  ;;  %vm15064_vm1 = vcmp.le.f32.partialorder %v1597_v43, 0.7853982  ;;  %v1683_v62 = vsub.s32 4, %v15019_v7 }
 0x1fa   : > { %14120 = vsinq.f32 %v1789_v27  ;;  %v1665_v40 = vclz %v9659_v45  ;;  %v9666_v25 = vadd.s32 4294967169, %v1809_v1  ;;  %v1934_v24 = vor.u32 %v1933_v8, %v1932_v20 }
 0x1fb   : > { %v1937_v21 = vor.u32 %v1936_v61, %v1935_v19  ;;  %vm1941_vm2 = vcmp.lt.s32.totalorder %v15045_v48, 1  ;;  %vm1942_vm3 = vcmp.lt.s32.totalorder %v15045_v48, 2  ;;  %v15071_v17 = vpop.eup %14116  ;;  %vm1488_vm4 = vcmp.eq.s32.totalorder %v15032_v51, 2 }
 0x1fc   : > { %v9660_v30 = vadd.s32 4294967294, %v1665_v40  ;;  %v1938_v43 = vshll.u32 %v14253_v59, %v1923_v10  ;;  %v1939_v18 = vshrl.u32 %v14254_v2, %v1924_v60  ;;  %vm1944_vm5 = vcmp.lt.s32.totalorder %v15045_v48, 4 }
 0x1fd   : > { %vm1485_vm8 = vcmp.eq.s32.totalorder %v15032_v51, 0  ;;  %vm2626_vm9 = vcmp.eq.s32.totalorder %v15036_v58, 2  ;;  %v1925_v9 = vshrl.u32 %v14249_v49, %v1924_v60  ;;  %vm1943_vm12 = vcmp.lt.s32.totalorder %v15045_v48, 3 }
 0x1fe   : > { %v1949_v42 = vsel %vm1941_vm2, %v1928_v34, %v1931_v32  ;;  %v1950_v22 = vsel %vm1944_vm5, %v1937_v21, 920167782  ;;  %vm2623_vm10 = vcmp.eq.s32.totalorder %v15036_v58, 0  ;;  %vm9661_vm7 = vcmp.lt.s32.totalorder %v9660_v30, 0 }
 0x1ff   : > { %v1940_v10 = vor.u32 %v1939_v18, %v1938_v43  ;;  %v1946_v1 = vsel %vm1944_vm5, %v1934_v24, 2102212464  ;;  %v1951_v13 = vsel %vm1943_vm12, %v1934_v24, %v1950_v22  ;;  %vm2622_vm11 = vcmp.lt.s32.totalorder %v15036_v58, 2 }
 0x200   : > { %v1668_v60 = vsel %vm9661_vm7, 0, %v9660_v30  ;;  %v1684_v44 = vsel %vm1599_vm15, %v1683_v62, %v15019_v7  ;;  %v1952_v38 = vsel %vm1942_vm3, %v1949_v42, %v1951_v13  ;;  %v1953_v16 = vsel %vm1941_vm2, %v1931_v32, %v1934_v24 }
 0x201   : > { %vm1793_vm14 = vweird.f32 %v14514_v36  ;;  %v1669_v50 = vsub.s32 32, %v1668_v60  ;;  %v1673_v8 = vsub.s32 4294967266, %v1668_v60  ;;  %v1945_v61 = vsel %vm1941_vm2, %v1925_v9, %v1928_v34 }
 0x202   : > { %v1954_v27 = vsel %vm1944_vm5, %v1940_v10, 1326507024  ;;  %v1947_v45 = vsel %vm1943_vm12, %v1931_v32, %v1946_v1  ;;  %v15108_v20 = vmul.u32.u64.low %v15059_v52, %v1952_v38  ;;  %v15109_v19 = vmul.u32.u64.high %v15059_v52, %v1952_v38, %v15108_v20 }
 0x203   : > { %v1955_v7 = vsel %vm1943_vm12, %v1937_v21, %v1954_v27  ;;  %v1670_v40 = vshll.u32 %v15038_v29, %v1668_v60  ;;  %v1671_v62 = vshrl.u32 %v1653_v54, %v1669_v50  ;;  %v1674_v24 = vadd.s32 127, %v1673_v8  ;;  %v14119_v30 = vpop.eup %14118 }
 0x204   : > { %v1956_v34 = vsel %vm1942_vm3, %v1953_v16, %v1955_v7  ;;  %v1686_v43 = vsel %vm15064_vm1, 0, %v1684_v44  ;;  %v1815_v21 = vadd.s32 1, %v9666_v25  ;;  %v14121_v9 = vpop.eup %14120  ;;  %v1801_v42 = vxor.u32 2147483648, %v14119_v30 }
 0x205   : > { %v15118_v32 = vmul.u32.u64.low %v15059_v52, %v1956_v34  ;;  %v15119_v18 = vmul.u32.u64.high %v15059_v52, %v1956_v34, %v15118_v32  ;;  %v1672_v22 = vor.u32 %v1671_v62, %v1670_v40  ;;  %v1675_v10 = vshll.u32 %v1674_v24, 23 }
 0x206   : > { %v1948_v29 = vsel %vm1942_vm3, %v1945_v61, %v1947_v45  ;;  %v1490_v54 = vsel %vm1488_vm4, %v1489_v56, %v14987_v5  ;;  %v1798_v1 = vxor.u32 2147483648, %v14121_v9  ;;  %v1967_v13 = vadd.s32 1, %v15109_v19 }
 0x207   : > { %v1805_v60 = vand.u32 2147483647, %v14540_v11  ;;  %v1487_v25 = vsel %vm1485_vm8, %v14979_v63, %v1486_v23  ;;  %v2628_v48 = vsel %vm2626_vm9, %v1801_v42, %v14121_v9  ;;  %v1676_v44 = vor.u32 4788187, %v1675_v10 }
 0x208   : > { %vm1816_vm2 = vcmp.gt.s32.totalorder %v1815_v21, 0  ;;  %v2625_v38 = vsel %vm2623_vm10, %v14119_v30, %v1798_v1  ;;  %v1690_v56 = vadd.s32 3, %v1686_v43  ;;  %v1964_v16 = vmul.u32 %v15059_v52, %v1948_v29 }
 0x209   : > { %vm1966_vm3 = vc.u32 %v15119_v18, %v15108_v20  ;;  %v2629_v5 = vsel %vm2622_vm11, %v2625_v38, %v2628_v48  ;;  %v1677_v50 = vand.u32 2147483647, %v1676_v44  ;;  %v1679_v8 = vcvt.s32.f32 %v1672_v22 }
 0x20a   : > { %v1968_v63 = vsel %vm1966_vm3, %v1967_v13, %v15109_v19  ;;  %v15147_v23 = vsel %vm1793_vm14, nan, %v2629_v5  ;;  %v1812_v27 = vand.u32 8388607, %v1805_v60  ;;  %v1817_v45 = vsel %vm1816_vm2, %v1815_v21, 0 }
 0x20b   : > { %18503 = vst [vmem:[#allocation8_spill] sm:$0xff] %v15147_v23  ;;  %v1969_v61 = vadd.s32 %v1968_v63, %v1964_v16  ;;  %v15154_v52 = vsel %vm1585_vm13, nan, %v15030_v33  ;;  %vm1484_vm4 = vcmp.lt.s32.totalorder %v15032_v51, 2  ;;  %vm1796_vm5 = vcmp.lt.s32.totalorder %v15034_v4, 2 }
 0x20c   : > { %v1680_v58 = vmul.f32 %v1679_v8, %v1677_v50  ;;  %vm1797_vm8 = vcmp.eq.s32.totalorder %v15034_v4, 0  ;;  %vm1800_vm9 = vcmp.eq.s32.totalorder %v15034_v4, 2  ;;  %v1819_v19 = vand.u32 31, %v1817_v45 }
 0x20d   : > { %v1970_v7 = vadd.s32 536870912, %v1969_v61  ;;  %v15160_v40 = vsel %vm1484_vm4, %v1487_v25, %v1490_v54  ;;  %v15162_v24 = vand.u32 3, %v1690_v56  ;;  %v15164_v34 = vand.u32 3, %v1686_v43 }
 0x20e   : > { %v1681_v62 = vxor.u32 2147483648, %v1680_v58  ;;  %v1802_v26 = vsel %vm1800_vm9, %v1801_v42, %v14121_v9  ;;  %v1813_v51 = vor.u32 8388608, %v1812_v27  ;;  %v1820_v32 = vsub.s32 32, %v1819_v19 }
 0x20f   : > { %v15166_v33 = vshrl.u32 %v1970_v7, 30  ;;  %v1799_v21 = vsel %vm1797_vm8, %v14119_v30, %v1798_v1  ;;  %v15170_v10 = vshrl.u32 %v1817_v45, 5  ;;  %v1822_v29 = vshll.u32 %v14249_v49, %v1819_v19  ;;  %v15182_v30 = vld [vmem:[%s18327_s3] sm:$0xff] }
 0x210   : > { %v1682_v22 = vsel %vm1599_vm15, %v1681_v62, %v1680_v58  ;;  %v1825_v9 = vshll.u32 %v14250_v53, %v1819_v19  ;;  %v1828_v42 = vshll.u32 %v14251_v55, %v1819_v19  ;;  %v1823_v1 = vshrl.u32 %v14250_v53, %v1820_v32 }
 0x211   : > { %v1685_v54 = vsel %vm15064_vm1, %v14516_v37, %v1682_v22  ;;  %v1972_v43 = vshll.u32 %v15166_v33, 30  ;;  %v1826_v13 = vshrl.u32 %v14251_v55, %v1820_v32  ;;  %v1829_v25 = vshrl.u32 %v14252_v57, %v1820_v32 }
 0x212   : > { %14122 = vcosq.f32 %v1685_v54  ;;  %vm1911_vm13 = vcmp.lt.s32.totalorder %v14525_v47, 0  ;;  %v1831_v48 = vshll.u32 %v14252_v57, %v1819_v19  ;;  %v1832_v44 = vshrl.u32 %v14253_v59, %v1820_v32 }
 0x213   : > { %14124 = vsinq.f32 %v1685_v54  ;;  %v15188_v12 = vsub.s32 %v1969_v61, %v1972_v43  ;;  %v1824_v38 = vor.u32 %v1823_v1, %v1822_v29  ;;  %v1827_v56 = vor.u32 %v1826_v13, %v1825_v9 }
 0x214   : > { %v1830_v16 = vor.u32 %v1829_v25, %v1828_v42  ;;  %v18347_v5 = vand.u32 4294901760, %v15182_v30  ;;  %v15195_v53 = vsel %vm1796_vm5, %v1799_v21, %v1802_v26  ;;  %v1965_v55 = vadd.s32 %v15108_v20, %v15119_v18  ;;  %v15216_v18 = vld [vmem:[%s18327_s3 + $0x8] sm:$0xff] }
 0x215   : > { %v1975_v50 = vsub.s32 0, %v15188_v12  ;;  %v1833_v8 = vor.u32 %v1832_v44, %v1831_v48  ;;  %vm1696_vm15 = vcmp.eq.s32.totalorder %v15162_v24, 2  ;;  %vm2523_vm1 = vcmp.eq.s32.totalorder %v15164_v34, 2 }
 0x216   : > { %vm15204_vm12 = vcmp.le.f32.partialorder %v1909_v14, 0.7853982  ;;  %v1834_v4 = vshll.u32 %v14253_v59, %v1819_v19  ;;  %v1835_v63 = vshrl.u32 %v14254_v2, %v1820_v32  ;;  %vm1837_vm10 = vcmp.lt.s32.totalorder %v15170_v10, 1 }
 0x217   : > { %v15211_v20 = vshll.u32 %v1813_v51, 8  ;;  %vm1693_vm7 = vcmp.eq.s32.totalorder %v15162_v24, 0  ;;  %vm2520_vm11 = vcmp.eq.s32.totalorder %v15164_v34, 0  ;;  %v9671_v14 = vmin.u32 %v1975_v50, %v15188_v12 }
 0x218   : > { %v1995_v61 = vsub.s32 4, %v15166_v33  ;;  %v1821_v59 = vshrl.u32 %v14249_v49, %v1820_v32  ;;  %vm1840_vm2 = vcmp.lt.s32.totalorder %v15170_v10, 4  ;;  %vm2519_vm3 = vcmp.lt.s32.totalorder %v15164_v34, 2 }
 0x219   : > { %v1836_v2 = vor.u32 %v1835_v63, %v1834_v4  ;;  %v1842_v27 = vsel %vm1840_vm2, %v1830_v16, 2102212464  ;;  %v1845_v45 = vsel %vm1837_vm10, %v1824_v38, %v1827_v56  ;;  %v1846_v58 = vsel %vm1840_vm2, %v1833_v8, 920167782 }
 0x21a   : > { %vm1689_vm4 = vweird.f32 %v14516_v37  ;;  %v1977_v7 = vclz %v9671_v14  ;;  %vm1838_vm5 = vcmp.lt.s32.totalorder %v15170_v10, 2  ;;  %vm1839_vm8 = vcmp.lt.s32.totalorder %v15170_v10, 3  ;;  %v15269_v10 = vld [vmem:[%s18327_s3 + $0x10] sm:$0xff] }
 0x21b   : > { %v18346_v19 = vand.u32 4294901760, %v15216_v18  ;;  %vm1692_vm9 = vcmp.lt.s32.totalorder %v15162_v24, 2  ;;  %v1841_v49 = vsel %vm1837_vm10, %v1821_v59, %v1824_v38  ;;  %v1847_v62 = vsel %vm1839_vm8, %v1830_v16, %v1846_v58 }
 0x21c   : > { %v1849_v26 = vsel %vm1837_vm10, %v1827_v56, %v1830_v16  ;;  %v1850_v51 = vsel %vm1840_vm2, %v1836_v2, 1326507024  ;;  %v9672_v32 = vadd.s32 4294967294, %v1977_v7  ;;  %v1843_v21 = vsel %vm1839_vm8, %v1827_v56, %v1842_v27  ;;  %v14123_v54 = vpop.eup %14122 }
 0x21d   : > { %v1848_v22 = vsel %vm1838_vm5, %v1845_v45, %v1847_v62  ;;  %v1851_v29 = vsel %vm1839_vm8, %v1833_v8, %v1850_v51  ;;  %v1996_v43 = vsel %vm1911_vm13, %v1995_v61, %v15166_v33  ;;  %v14125_v13 = vpop.eup %14124  ;;  %v1697_v25 = vxor.u32 2147483648, %v14123_v54  ;;  %v15290_v62 = vld [vmem:[%s18327_s3 + $0x20] sm:$0xff] }
 0x21e   : > { %v1852_v9 = vsel %vm1838_vm5, %v1849_v26, %v1851_v29  ;;  %v15244_v42 = vmul.u32.u64.low %v15211_v20, %v1848_v22  ;;  %v15245_v1 = vmul.u32.u64.high %v15211_v20, %v1848_v22, %v15244_v42  ;;  %vm9673_vm10 = vcmp.lt.s32.totalorder %v9672_v32, 0  ;;  %v15307_v26 = vld [vmem:[%s18327_s3 + $0x30] sm:$0xff]  ;;  %v15320_v29 = vld [vmem:[%s18327_s3 + $0x38] sm:$0xff] }
 0x21f   : > { %v15249_v48 = vmul.u32.u64.low %v15211_v20, %v1852_v9  ;;  %v15250_v44 = vmul.u32.u64.high %v15211_v20, %v1852_v9, %v15249_v48  ;;  %v1694_v38 = vxor.u32 2147483648, %v14125_v13  ;;  %v1980_v56 = vsel %vm9673_vm10, 0, %v9672_v32 }
 0x220   : > { %v1844_v33 = vsel %vm1838_vm5, %v1841_v49, %v1843_v21  ;;  %v15258_v16 = vpack.c.bf16 %v18346_v19, %v18347_v5  ;;  %v1698_v50 = vsel %vm1696_vm15, %v1697_v25, %v14125_v13  ;;  %v2525_v8 = vsel %vm2523_vm1, %v1697_v25, %v14125_v13  ;;  %v15285_v49 = vld [vmem:[%s18327_s3 + $0x18] sm:$0xff]  ;;  %v15334_v25 = vld [vmem:[%s18327_s3 + $0x40] sm:$0xff]  ;;  %v15339_v48 = vld [vmem:[%s18327_s3 + $0x48] sm:$0xff] }
 0x221   : > { %v1981_v4 = vsub.s32 32, %v1980_v56  ;;  %v1998_v63 = vsel %vm15204_vm12, 0, %v1996_v43  ;;  %v1695_v14 = vsel %vm1693_vm7, %v14123_v54, %v1694_v38  ;;  %v2522_v61 = vsel %vm2520_vm11, %v14123_v54, %v1694_v38 }
 0x222   : > { %v1985_v59 = vsub.s32 4294967266, %v1980_v56  ;;  %v1863_v2 = vadd.s32 1, %v15245_v1  ;;  %12500 = vmatprep.subr.bf16.mxu1 %v15258_v16  ;;  %v2526_v27 = vsel %vm2519_vm3, %v2522_v61, %v2525_v8  ;;  %v1982_v45 = vshll.u32 %v15188_v12, %v1980_v56 }
 0x223   : > { %v1983_v58 = vshrl.u32 %v1965_v55, %v1981_v4  ;;  %v1860_v7 = vmul.u32 %v15211_v20, %v1844_v33  ;;  %12502 = vmatpush3.bf16.msra.mxu1 %v15258_v16  ;;  %v15294_v34 = vsel %vm1689_vm4, nan, %v2526_v27  ;;  %vm1862_vm15 = vc.u32 %v15250_v44, %v15244_v42  ;;  %v15302_v20 = vld [vmem:[%s18327_s3 + $0x28] sm:$0xff]  ;;  %v15372_v27 = vld [vmem:[%s18327_s3 + $0x58] sm:$0xff] }
 0x224   : > { %18506 = vst [vmem:[#allocation9_spill] sm:$0xff] %v15294_v34  ;;  %v1986_v12 = vadd.s32 127, %v1985_v59  ;;  %v18345_v55 = vand.u32 4294901760, %v15269_v10  ;;  %v15312_v51 = vsel %vm1481_vm6, nan, %v15160_v40  ;;  %v1699_v32 = vsel %vm1692_vm9, %v1695_v14, %v1698_v50  ;;  %v15364_v14 = vld [vmem:[%s18327_s3 + $0x50] sm:$0xff] }
 0x225   : > { %v1984_v21 = vor.u32 %v1983_v58, %v1982_v45  ;;  %v1864_v22 = vsel %vm1862_vm15, %v1863_v2, %v15245_v1  ;;  %v18344_v9 = vand.u32 4294901760, %v15285_v49  ;;  %v18341_v13 = vand.u32 4294901760, %v15290_v62 }
 0x226   : > { %v1987_v54 = vshll.u32 %v1986_v12, 23  ;;  %v1865_v43 = vadd.s32 %v1864_v22, %v1860_v7  ;;  %v15327_v28 = vsel %vm1793_vm14, nan, %v15195_v53  ;;  %v2002_v40 = vadd.s32 3, %v1998_v63  ;;  %v15387_v12 = vld [vmem:[%s18327_s3 + $0x60] sm:$0xff] }
 0x227   : > { %v18338_v24 = vand.u32 4294901760, %v15302_v20  ;;  %v18340_v1 = vand.u32 4294901760, %v15307_v26  ;;  %v15345_v36 = vpack.c.bf16 %v18344_v9, %v18345_v55  ;;  %v18339_v53 = vand.u32 4294901760, %v15320_v29 }
 0x228   : > { %v1988_v38 = vor.u32 4788187, %v1987_v54  ;;  %v1866_v56 = vadd.s32 536870912, %v1865_v43  ;;  %v15349_v33 = vand.u32 4294901760, %v15154_v52  ;;  %v15353_v50 = vsel %vm1689_vm4, nan, %v1699_v32  ;;  %v15401_v54 = vld [vmem:[%s18327_s3 + $0x68] sm:$0xff] }
 0x229   : > { %v1991_v8 = vcvt.s32.f32 %v1984_v21  ;;  %v15359_v4 = vpack.c.bf16 %v18338_v24, %v18341_v13  ;;  %12504 = vmatprep.subr.bf16.mxu1 %v15345_v36  ;;  %v18343_v37 = vand.u32 4294901760, %v15334_v25  ;;  %v18342_v2 = vand.u32 4294901760, %v15339_v48 }
 0x22a   : > { %v1989_v61 = vand.u32 2147483647, %v1988_v38  ;;  %v1867_v59 = vshrl.u32 %v1866_v56, 30  ;;  %v15375_v45 = vand.u32 4294901760, %v15312_v51  ;;  %v15378_v58 = vand.u32 4294901760, %v15327_v28  ;;  %12506 = vmatpush3.bf16.msra.mxu1 %v15345_v36 }
 0x22b   : > { %v15380_v7 = vand.u32 3, %v1998_v63  ;;  %vm1807_vm6 = vcmp.lt.s32.totalorder %v14540_v11, 0  ;;  %v15389_v21 = vand.u32 3, %v2002_v40  ;;  %12508 = vmatprep.subr.bf16.mxu1 %v15359_v4  ;;  %v15396_v63 = vpack.c.bf16 %v18339_v53, %v18340_v1 }
 0x22c   : > { %v1992_v32 = vmul.f32 %v1991_v8, %v1989_v61  ;;  %v1868_v22 = vshll.u32 %v1867_v59, 30  ;;  %v15404_v38 = vand.u32 4294901760, %v15353_v50  ;;  %v15408_v40 = vadd.s32 %v15244_v42, %v15250_v44  ;;  %v15424_v42 = vld [vmem:[%s18327_s3 + $0x70] sm:$0xff] }
 0x22d   : > { %v18352_v56 = vand.u32 4294901760, %v15364_v14  ;;  %v18351_v8 = vand.u32 4294901760, %v15372_v27  ;;  %v15418_v53 = vpack.c.bf16 %v18342_v2, %v18343_v37  ;;  %v1891_v44 = vsub.s32 4, %v1867_v59 }
 0x22e   : > { %v1993_v61 = vxor.u32 2147483648, %v1992_v32  ;;  %v15412_v24 = vsub.s32 %v1865_v43, %v1868_v22  ;;  %12510 = vmatpush3.bf16.msra.mxu1 %v15359_v4  ;;  %v15431_v43 = vld [vmem:[%s18327_s3 + $0x78] sm:$0xff]  ;;  %v1278_v22 = vxor.u32 2147483648, %v15071_v17  ;;  %v1281_v2 = vxor.u32 2147483648, %v15003_v31 }
 0x22f   : > { %12512 = vmatprep.subr.bf16.mxu1 %v15396_v63  ;;  %vm1277_vm14 = vcmp.eq.s32.totalorder %v14864_v35, 0  ;;  %vm1280_vm1 = vcmp.eq.s32.totalorder %v14864_v35, 2  ;;  %vm15446_vm7 = vcmp.le.f32.partialorder %v1805_v60, 0.7853982  ;;  %v18350_v1 = vand.u32 4294901760, %v15431_v43 }
 0x230   : > { %v1994_v37 = vsel %vm1911_vm13, %v1993_v61, %v1992_v32  ;;  %v1871_v9 = vsub.s32 0, %v15412_v24  ;;  %v1279_v61 = vsel %vm1277_vm14, %v15003_v31, %v1278_v22  ;;  %v1282_v5 = vsel %vm1280_vm1, %v1281_v2, %v15071_v17 }
 0x231   : > { %v1997_v55 = vsel %vm15204_vm12, %v14525_v47, %v1994_v37  ;;  %vm1276_vm13 = vcmp.lt.s32.totalorder %v14864_v35, 2  ;;  %v15461_v60 = vpack.c.bf16 %v18351_v8, %v18352_v56  ;;  %v18509_v57 = vand.u32 4294901760, %v15387_v12 }
 0x232   : > { %14126 = vcosq.f32 %v1997_v55  ;;  %v9667_v13 = vmin.u32 %v1871_v9, %v15412_v24  ;;  %12514 = vmatpush3.bf16.msra.mxu1 %v15396_v63  ;;  %v18510_v37 = vand.u32 4294901760, %v15401_v54  ;;  %v1283_v9 = vsel %vm1276_vm13, %v1279_v61, %v1282_v5 }
 0x233   : > { %14128 = vsinq.f32 %v1997_v55  ;;  %v1892_v35 = vsel %vm1807_vm6, %v1891_v44, %v1867_v59  ;;  %12516 = vmatprep.subr.bf16.mxu1 %v15418_v53  ;;  %vm1273_vm12 = vweird.f32 %v14501_v15  ;;  %vm2107_vm11 = vcmp.lt.s32.totalorder %v14862_v46, 2 }
 0x234   : > { %v15467_v32 = vpack.c.bf16 %v18510_v37, %v18509_v57  ;;  %v1873_v23 = vclz %v9667_v13  ;;  %v1284_v55 = vsel %vm1273_vm12, nan, %v1283_v9  ;;  %vm2108_vm2 = vcmp.eq.s32.totalorder %v14862_v46, 0 }
 0x235   : > { %vm2111_vm3 = vcmp.eq.s32.totalorder %v14862_v46, 2  ;;  %v18512_v57 = vand.u32 4294901760, %v15182_v30  ;;  %vm2008_vm4 = vcmp.eq.s32.totalorder %v15389_v21, 2  ;;  %vm2832_vm5 = vcmp.eq.s32.totalorder %v15380_v7, 2 }
 0x236   : > { %18511 = vst [vmem:[#allocation10_spill] sm:$0xff] %v15467_v32  ;;  %v9668_v13 = vadd.s32 4294967294, %v1873_v23  ;;  %v2110_v59 = vsel %vm2108_vm2, %v15003_v31, %v1278_v22  ;;  %v2113_v44 = vsel %vm2111_vm3, %v1281_v2, %v15071_v17  ;;  %v15487_v61 = vand.u32 4294901760, %v1284_v55  ;;  %12518 = vmatpush3.bf16.msra.mxu1 %v15418_v53 }
 0x237   : > { %v15481_v5 = vsub.f32 %v15182_v30, %v18512_v57  ;;  %vm2005_vm8 = vcmp.eq.s32.totalorder %v15389_v21, 0  ;;  %vm2829_vm9 = vcmp.eq.s32.totalorder %v15380_v7, 0  ;;  %v2114_v46 = vsel %vm2107_vm11, %v2110_v59, %v2113_v44  ;;  %12520 = vmatprep.subr.bf16.mxu1 %v15461_v60 }
 0x238   : > { %v18513_v37 = vand.u32 4294901760, %v15216_v18  ;;  %v15500_v31 = vsub.f32 %v14965_v0, %v15025_v3  ;;  %vm2828_vm10 = vcmp.lt.s32.totalorder %v15380_v7, 2  ;;  %vm9669_vm15 = vcmp.lt.s32.totalorder %v9668_v13, 0 }
 0x239   : > { %v18349_v30 = vand.u32 4294901760, %v15481_v5  ;;  %v15506_v17 = vsel %vm1273_vm12, nan, %v2114_v46  ;;  %v15509_v23 = vsub.f32 %v1284_v55, %v15487_v61  ;;  %vm2001_vm14 = vweird.f32 %v14525_v47 }
 0x23a   : > { %v15496_v9 = vsub.f32 %v15216_v18, %v18513_v37  ;;  %18514 = vst [vmem:[#allocation11_spill] sm:$0xff] %v15506_v17  ;;  %v15513_v18 = vsub.f32 %v15312_v51, %v15375_v45  ;;  %v1876_v0 = vsel %vm9669_vm15, 0, %v9668_v13  ;;  %v18515_v2 = vand.u32 4294901760, %v15424_v42  ;;  %12522 = vmatpush3.bf16.msra.mxu1 %v15461_v60 }
 0x23b   : > { %v3020_v15 = vsub.f32 %v15481_v5, %v18349_v30  ;;  %vm2004_vm1 = vcmp.lt.s32.totalorder %v15389_v21, 2  ;;  %v1877_v57 = vsub.s32 32, %v1876_v0  ;;  %v1881_v51 = vsub.s32 4294967266, %v1876_v0  ;;  %12524 = vmatprep.subr.bf16.mxu1 %v15467_v32 }
 0x23c   : > { %v15520_v22 = vpack.c.bf16 %v18350_v1, %v18515_v2  ;;  %v18354_v55 = vand.u32 4294901760, %v15496_v9  ;;  %v1894_v59 = vsel %vm15446_vm7, 0, %v1892_v35  ;;  %v18357_v13 = vand.u32 4294901760, %v15509_v23  ;;  %v14127_v30 = vpop.eup %14126 }
 0x23d   : > { %v1878_v44 = vshll.u32 %v15412_v24, %v1876_v0  ;;  %v18358_v37 = vand.u32 4294901760, %v15500_v31  ;;  %v1879_v1 = vshrl.u32 %v15408_v40, %v1877_v57  ;;  %v1882_v8 = vadd.s32 127, %v1881_v51  ;;  %v14129_v0 = vpop.eup %14128 }
 0x23e   : > { %v3027_v46 = vsub.f32 %v15496_v9, %v18354_v55  ;;  %v2939_v24 = vsub.f32 %v15509_v23, %v18357_v13  ;;  %v3021_v35 = vand.u32 4294901760, %v3020_v15  ;;  %v2009_v56 = vxor.u32 2147483648, %v14127_v30  ;;  %12526 = vmatpush3.bf16.msra.mxu1 %v15467_v32 }
 0x23f   : > { %v2949_v55 = vsub.f32 %v15500_v31, %v18358_v37  ;;  %v18516_v2 = vand.u32 4294901760, %v15269_v10  ;;  %v2006_v40 = vxor.u32 2147483648, %v14129_v0  ;;  %v1880_v57 = vor.u32 %v1879_v1, %v1878_v44  ;;  %12528 = vmatprep.subr.bf16.mxu1 %v15520_v22 }
 0x240   : > { %v3028_v34 = vand.u32 4294901760, %v3027_v46  ;;  %v1883_v51 = vshll.u32 %v1882_v8, 23  ;;  %v2940_v41 = vand.u32 4294901760, %v2939_v24  ;;  %v2010_v13 = vsel %vm2008_vm4, %v2009_v56, %v14129_v0 }
 0x241   : > { %v15548_v6 = vsub.f32 %v15269_v10, %v18516_v2  ;;  %v2834_v15 = vsel %vm2832_vm5, %v2009_v56, %v14129_v0  ;;  %v1898_v46 = vadd.s32 3, %v1894_v59  ;;  %v18517_v37 = vand.u32 4294901760, %v15513_v18 }
 0x242   : > { %v2007_v10 = vsel %vm2005_vm8, %v14127_v30, %v2006_v40  ;;  %v2831_v1 = vsel %vm2829_vm9, %v14127_v30, %v2006_v40  ;;  %v1884_v8 = vor.u32 4788187, %v1883_v51  ;;  %10827 = vmatprep.mubr.f32.mxu1 %v2940_v41  ;;  %v12531_v44 = vpack.c.bf16 %v3028_v34, %v3021_v35  ;;  %12530 = vmatpush3.bf16.msra.mxu1 %v15520_v22 }
 0x243   : > { %v2959_v39 = vsub.f32 %v15513_v18, %v18517_v37  ;;  %v2835_v56 = vsel %vm2828_vm10, %v2831_v1, %v2834_v15  ;;  %v15565_v2 = vand.u32 3, %v1894_v59  ;;  %v2950_v24 = vand.u32 4294901760, %v2949_v55 }
 0x244   : > { %v18374_v0 = vand.u32 4294901760, %v15548_v6  ;;  %v15570_v37 = vsel %vm2001_vm14, nan, %v2835_v56  ;;  %v1885_v17 = vand.u32 2147483647, %v1884_v8  ;;  %v1887_v32 = vcvt.s32.f32 %v1880_v57  ;;  %12532 = vmatprep.subr.bf16.mxu1 %v12531_v44 }
 0x245   : > { %18518 = vst [vmem:[#allocation12_spill] sm:$0xff] %v15570_v37  ;;  %v18519_v30 = vand.u32 4294901760, %v15285_v49  ;;  %v2011_v41 = vsel %vm2004_vm1, %v2007_v10, %v2010_v13  ;;  %v2960_v34 = vand.u32 4294901760, %v2959_v39  ;;  %v15585_v55 = vsub.f32 %v15154_v52, %v15349_v33  ;;  %10828 = vmatmul.mubr.f32.vlgmr.msra.gmra.mrb[0].mxu1 %v2950_v24 }
 0x246   : > { %v3034_v7 = vsub.f32 %v15548_v6, %v18374_v0  ;;  %v1888_v59 = vmul.f32 %v1887_v32, %v1885_v17  ;;  %v18520_v21 = vand.u32 4294901760, %v15290_v62  ;;  %v18521_v51 = vand.u32 4294901760, %v15302_v20  ;;  %12534 = vmatpush3.bf16.msra.mxu1 %v12531_v44 }
 0x247   : > { %v15575_v40 = vsub.f32 %v15285_v49, %v18519_v30  ;;  %v15590_v49 = vsub.f32 %v15353_v50, %v15404_v38  ;;  %v18365_v57 = vand.u32 4294901760, %v15585_v55  ;;  %v15605_v32 = vsub.f32 %v15327_v28, %v15378_v58  ;;  %10830 = vmatprep.mubr.f32.mxu1 %v2960_v34 }
 0x248   : > { %v15595_v39 = vsub.f32 %v15290_v62, %v18520_v21  ;;  %v3035_v13 = vand.u32 4294901760, %v3034_v7  ;;  %v15601_v52 = vsub.f32 %v15302_v20, %v18521_v51  ;;  %v1889_v17 = vxor.u32 2147483648, %v1888_v59 }
 0x249   : > { %v18373_v35 = vand.u32 4294901760, %v15575_v40  ;;  %v18363_v62 = vand.u32 4294901760, %v15590_v49  ;;  %v2969_v20 = vsub.f32 %v15585_v55, %v18365_v57  ;;  %v18364_v28 = vand.u32 4294901760, %v15605_v32 }
 0x24a   : > { %v18372_v15 = vand.u32 4294901760, %v15595_v39  ;;  %v18371_v10 = vand.u32 4294901760, %v15601_v52  ;;  %v18522_v1 = vand.u32 4294901760, %v15307_v26  ;;  %v1890_v56 = vsel %vm1807_vm6, %v1889_v17, %v1888_v59 }
 0x24b   : > { %v3041_v50 = vsub.f32 %v15575_v40, %v18373_v35  ;;  %v2979_v44 = vsub.f32 %v15590_v49, %v18363_v62  ;;  %v1893_v34 = vsel %vm15446_vm7, %v14540_v11, %v1890_v56  ;;  %v2970_v7 = vand.u32 4294901760, %v2969_v20 }
 0x24c   : > { %v15620_v8 = vsub.f32 %v15307_v26, %v18522_v1  ;;  %v3048_v30 = vsub.f32 %v15595_v39, %v18372_v15  ;;  %v3055_v26 = vsub.f32 %v15601_v52, %v18371_v10  ;;  %v2989_v59 = vsub.f32 %v15605_v32, %v18364_v28 }
 0x24d   : > { %v3042_v24 = vand.u32 4294901760, %v3041_v50  ;;  %14130 = vcosq.f32 %v1893_v34  ;;  %v2980_v51 = vand.u32 4294901760, %v2979_v44  ;;  %v15639_v50 = vand.u32 3, %v1898_v46  ;;  %10831 = vmatmul.mubr.f32.gmra.mrb[2].mxu1 %v2970_v7 }
 0x24e   : > { %v3049_v17 = vand.u32 4294901760, %v3048_v30  ;;  %14132 = vsinq.f32 %v1893_v34  ;;  %v3056_v1 = vand.u32 4294901760, %v3055_v26  ;;  %v18370_v19 = vand.u32 4294901760, %v15620_v8 }
 0x24f   : > { %v12535_v21 = vpack.c.bf16 %v3042_v24, %v3035_v13  ;;  %v2012_v20 = vsel %vm2001_vm14, nan, %v2011_v41  ;;  %10833 = vmatprep.mubr.f32.mxu1 %v2980_v51  ;;  %v2990_v56 = vand.u32 4294901760, %v2989_v59  ;;  %v18523_v62 = vand.u32 4294901760, %v15320_v29 }
 0x250   : > { %v18524_v13 = vand.u32 4294901760, %v15334_v25  ;;  %v12539_v24 = vpack.c.bf16 %v3056_v1, %v3049_v17  ;;  %v3062_v47 = vsub.f32 %v15620_v8, %v18370_v19  ;;  %v18525_v41 = vand.u32 4294901760, %v15339_v48 }
 0x251   : > { %12536 = vmatprep.subr.bf16.mxu1 %v12535_v21  ;;  %v15647_v28 = vsub.f32 %v15320_v29, %v18523_v62  ;;  %v18526_v30 = vand.u32 4294901760, %v15364_v14  ;;  %vm2729_vm6 = vcmp.eq.s32.totalorder %v15565_v2, 2  ;;  %v18527_v34 = vand.u32 4294901760, %v15372_v27  ;;  %10834 = vmatmul.mubr.f32.gmra.mrb[4].mxu1 %v2990_v56 }
 0x252   : > { %v15652_v46 = vsub.f32 %v15334_v25, %v18524_v13  ;;  %12538 = vmatpush3.bf16.msra.mxu1 %v12535_v21  ;;  %v15660_v44 = vsub.f32 %v15339_v48, %v18525_v41  ;;  %v15675_v26 = vand.u32 4294901760, %v2012_v20  ;;  %vm1901_vm7 = vcmp.eq.s32.totalorder %v15639_v50, 0 }
 0x253   : > { %v15665_v29 = vsub.f32 %v15364_v14, %v18526_v30  ;;  %v18369_v25 = vand.u32 4294901760, %v15647_v28  ;;  %v15673_v7 = vsub.f32 %v15372_v27, %v18527_v34  ;;  %vm2726_vm13 = vcmp.eq.s32.totalorder %v15565_v2, 0  ;;  %12540 = vmatprep.subr.bf16.mxu1 %v12539_v24 }
 0x254   : > { %v18367_v62 = vand.u32 4294901760, %v15652_v46  ;;  %v18366_v48 = vand.u32 4294901760, %v15660_v44  ;;  %v18528_v59 = vand.u32 4294901760, %v15387_v12  ;;  %vm1900_vm12 = vcmp.lt.s32.totalorder %v15639_v50, 2 }
 0x255   : > { %v18368_v14 = vand.u32 4294901760, %v15665_v29  ;;  %vm2725_vm11 = vcmp.lt.s32.totalorder %v15565_v2, 2  ;;  %v3063_v27 = vand.u32 4294901760, %v3062_v47  ;;  %v3069_v51 = vsub.f32 %v15647_v28, %v18369_v25 }
 0x256   : > { %v15684_v21 = vsub.f32 %v15387_v12, %v18528_v59  ;;  %v3076_v17 = vsub.f32 %v15652_v46, %v18367_v62  ;;  %v3096_v1 = vand.u32 4294901760, %v15673_v7  ;;  %12542 = vmatpush3.bf16.msra.mxu1 %v12539_v24  ;;  %v3083_v12 = vsub.f32 %v15660_v44, %v18366_v48 }
 0x257   : > { %v3090_v56 = vsub.f32 %v15665_v29, %v18368_v14  ;;  %v18529_v47 = vand.u32 4294901760, %v15401_v54  ;;  %vm1904_vm2 = vcmp.eq.s32.totalorder %v15639_v50, 2  ;;  %v3070_v30 = vand.u32 4294901760, %v3069_v51  ;;  %v14131_v14 = vpop.eup %14130 }
 0x258   : > { %v3103_v13 = vand.u32 4294901760, %v15684_v21  ;;  %v3077_v34 = vand.u32 4294901760, %v3076_v17  ;;  %v3097_v24 = vsub.f32 %v15673_v7, %v3096_v1  ;;  %v3084_v59 = vand.u32 4294901760, %v3083_v12  ;;  %v14133_v17 = vpop.eup %14132 }
 0x259   : > { %v15705_v41 = vsub.f32 %v15401_v54, %v18529_v47  ;;  %v3091_v57 = vand.u32 4294901760, %v3090_v56  ;;  %v12543_v25 = vpack.c.bf16 %v3070_v30, %v3063_v27  ;;  %v18530_v10 = vand.u32 4294901760, %v15424_v42 }
 0x25a   : > { %v3104_v48 = vsub.f32 %v15684_v21, %v3103_v13  ;;  %v3098_v19 = vand.u32 4294901760, %v3097_v24  ;;  %v18531_v47 = vand.u32 4294901760, %v15431_v43  ;;  %v1905_v12 = vxor.u32 2147483648, %v14131_v14 }
 0x25b   : > { %v3110_v62 = vand.u32 4294901760, %v15705_v41  ;;  %v15714_v54 = vsub.f32 %v15424_v42, %v18530_v10  ;;  %v15722_v56 = vsub.f32 %v2012_v20, %v15675_v26  ;;  %v12547_v15 = vpack.c.bf16 %v3084_v59, %v3077_v34  ;;  %12544 = vmatprep.subr.bf16.mxu1 %v12543_v25 }
 0x25c   : > { %v15719_v51 = vsub.f32 %v15431_v43, %v18531_v47  ;;  %v1902_v27 = vxor.u32 2147483648, %v14133_v17  ;;  %v3105_v30 = vand.u32 4294901760, %v3104_v48  ;;  %v1906_v10 = vsel %vm1904_vm2, %v1905_v12, %v14133_v17  ;;  %12546 = vmatpush3.bf16.msra.mxu1 %v12543_v25 }
 0x25d   : > { %v3111_v35 = vsub.f32 %v15705_v41, %v3110_v62  ;;  %v3117_v24 = vand.u32 4294901760, %v15714_v54  ;;  %v2731_v43 = vsel %vm2729_vm6, %v1905_v12, %v14133_v17  ;;  %v12551_v47 = vpack.c.bf16 %v3098_v19, %v3091_v57  ;;  %12548 = vmatprep.subr.bf16.mxu1 %v12547_v15 }
 0x25e   : > { %v3124_v42 = vand.u32 4294901760, %v15719_v51  ;;  %v1903_v34 = vsel %vm1901_vm7, %v14131_v14, %v1902_v27  ;;  %v2728_v59 = vsel %vm2726_vm13, %v14131_v14, %v1902_v27  ;;  %vm1897_vm3 = vweird.f32 %v14540_v11 }
 0x25f   : > { %v3112_v20 = vand.u32 4294901760, %v3111_v35  ;;  %v3118_v48 = vsub.f32 %v15714_v54, %v3117_v24  ;;  %v1907_v37 = vsel %vm1900_vm12, %v1903_v34, %v1906_v10  ;;  %v2732_v57 = vsel %vm2725_vm11, %v2728_v59, %v2731_v43 }
 0x260   : > { %v3125_v0 = vsub.f32 %v15719_v51, %v3124_v42  ;;  %v1908_v35 = vsel %vm1897_vm3, nan, %v1907_v37  ;;  %v15742_v19 = vsel %vm1897_vm3, nan, %v2732_v57  ;;  %12550 = vmatpush3.bf16.msra.mxu1 %v12547_v15  ;;  %v3008_v14 = vand.u32 4294901760, %v15722_v56 }
 0x261   : > { %v15744_v25 = vand.u32 4294901760, %v1908_v35  ;;  %12552 = vmatprep.subr.bf16.mxu1 %v12551_v47  ;;  %v12555_v17 = vpack.c.bf16 %v3112_v20, %v3105_v30  ;;  %v3119_v12 = vand.u32 4294901760, %v3118_v48  ;;  %v18532_v50 = vand.u32 4294901760, %v15481_v5 }
 0x262   : > { %v3126_v27 = vand.u32 4294901760, %v3125_v0  ;;  %v18533_v2 = vand.u32 4294901760, %v15496_v9  ;;  %v18534_v37 = vand.u32 4294901760, %v15548_v6  ;;  %v18535_v43 = vand.u32 4294901760, %v15575_v40 }
 0x263   : > { %v15748_v11 = vsub.f32 %v1908_v35, %v15744_v25  ;;  %v18536_v34 = vand.u32 4294901760, %v15595_v39  ;;  %v18537_v30 = vand.u32 4294901760, %v15601_v52  ;;  %v18538_v20 = vand.u32 4294901760, %v15620_v8 }
 0x264   : > { %v15754_v10 = vpack.c.bf16 %v18533_v2, %v18532_v50  ;;  %v15760_v15 = vpack.c.bf16 %v18535_v43, %v18534_v37  ;;  %v18539_v59 = vand.u32 4294901760, %v15647_v28  ;;  %v18540_v57 = vand.u32 4294901760, %v15652_v46  ;;  %12554 = vmatpush3.bf16.msra.mxu1 %v12551_v47 }
 0x265   : > { %v15766_v0 = vpack.c.bf16 %v18537_v30, %v18536_v34  ;;  %v18541_v35 = vand.u32 4294901760, %v15660_v44  ;;  %v18542_v2 = vand.u32 4294901760, %v15665_v29  ;;  %v2998_v43 = vand.u32 4294901760, %v15748_v11  ;;  %12556 = vmatprep.subr.bf16.mxu1 %v12555_v17 }
 0x266   : > { %v15772_v48 = vpack.c.bf16 %v18539_v59, %v18538_v20  ;;  %v15785_v34 = vpack.c.bf16 %v3110_v62, %v3103_v13  ;;  %v15787_v30 = vpack.c.bf16 %v3124_v42, %v3117_v24  ;;  %v3009_v20 = vsub.f32 %v15722_v56, %v3008_v14  ;;  %v14200_v42 = vld [vmem:[%s14368_s17 + $0x10] sm:$0xff] }
 0x267   : > { %v15778_v50 = vpack.c.bf16 %v18541_v35, %v18540_v57  ;;  %v15782_v37 = vpack.c.bf16 %v3096_v1, %v18542_v2  ;;  %v12559_v59 = vpack.c.bf16 %v3126_v27, %v3119_v12  ;;  %v2999_v57 = vsub.f32 %v15748_v11, %v2998_v43  ;;  %v14201_v27 = vld [vmem:[%s14368_s17 + $0x18] sm:$0xff] }
 0x268   : > { %12558 = vmatpush3.bf16.msra.mxu1 %v12555_v17  ;;  %v3010_v1 = vand.u32 4294901760, %v3009_v20  ;;  %v12563_v62 = vpack.c.bf16 %v15496_v9, %v15481_v5  ;;  %v12567_v13 = vpack.c.bf16 %v15575_v40, %v15548_v6  ;;  %v12571_v24 = vpack.c.bf16 %v15601_v52, %v15595_v39 }
 0x269   : > { %v3000_v35 = vand.u32 4294901760, %v2999_v57  ;;  %12560 = vmatprep.subr.bf16.mxu1 %v12559_v59  ;;  %v12575_v5 = vpack.c.bf16 %v15647_v28, %v15620_v8  ;;  %v12579_v6 = vpack.c.bf16 %v15660_v44, %v15652_v46  ;;  %v12583_v9 = vpack.c.bf16 %v15673_v7, %v15665_v29  ;;  %v18544_v28 = vld [vmem:[#allocation10_spill] sm:$0xff] }
 0x26a   : > { %v12587_v40 = vpack.c.bf16 %v15705_v41, %v15684_v21  ;;  %v12591_v39 = vpack.c.bf16 %v15719_v51, %v15714_v54  ;;  %v18543_v52 = vand.u32 4294901760, %v15509_v23  ;;  %v18546_v8 = vand.u32 4294901760, %v15513_v18  ;;  %v14199_v41 = vld [vmem:[%s14368_s17 + $0x8] sm:$0xff] }
 0x26b   : > { %10836 = vmatprep.mubr.f32.mxu1 %v3000_v35  ;;  %v18547_v46 = vand.u32 4294901760, %v15585_v55  ;;  %v18548_v44 = vand.u32 4294901760, %v15590_v49  ;;  %v3801_v54 = vsel %vm396_vm0, %v14199_v41, 0  ;;  %v3804_v47 = vsel %vm396_vm0, %v14200_v42, 0 }
 0x26c   : > { %10837 = vmatmul.mubr.f32.gmra.mrb[6].mxu1 %v3010_v1  ;;  %v15933_v12 = vand.u32 4294901760, %v3804_v47 }
 0x26d   : > { %10871 = vmatprep.mubr.f32.mxu1 %v15487_v61  ;;  %12562 = vmatpush3.bf16.msra.mxu1 %v12559_v59 }
 0x26e   : > { %12564 = vmatprep.subr.bf16.mxu1 %v12563_v62  ;;  %v15950_v2 = vsub.f32 %v3804_v47, %v15933_v12  ;;  %v18550_v47 = vld [vmem:[#allocation11_spill] sm:$0xff] }
 0x270   : > { %10872 = vmatmul.mubr.f32.vlgmr.msra.gmra.mrb[0].mxu1 %v15025_v3  ;;  %v3910_v35 = vand.u32 4294901760, %v15950_v2 }
 0x271   : > { %10874 = vmatprep.mubr.f32.mxu1 %v15375_v45  ;;  %12566 = vmatpush3.bf16.msra.mxu1 %v12563_v62 }
 0x272   : > { %12568 = vmatprep.subr.bf16.mxu1 %v12567_v13 }
 0x274   : > { %10875 = vmatmul.mubr.f32.gmra.mrb[2].mxu1 %v15349_v33 }
 0x275   : > { %10877 = vmatprep.mubr.f32.mxu1 %v15404_v38  ;;  %12570 = vmatpush3.bf16.msra.mxu1 %v12567_v13 }
 0x276   : > { %12572 = vmatprep.subr.bf16.mxu1 %v12571_v24 }
 0x278   : > { %10878 = vmatmul.mubr.f32.gmra.mrb[4].mxu1 %v15378_v58 }
 0x279   : > { %10880 = vmatprep.mubr.f32.mxu1 %v15744_v25  ;;  %12574 = vmatpush3.bf16.msra.mxu1 %v12571_v24 }
 0x27a   : > { %12576 = vmatprep.subr.bf16.mxu1 %v12575_v5 }
 0x27c   : > { %10881 = vmatmul.mubr.f32.gmra.mrb[6].mxu1 %v15675_v26 }
 0x27d   : > { %12578 = vmatpush3.bf16.msra.mxu1 %v12575_v5  ;;  %10915 = vmatprep.mubr.f32.mxu1 %v15509_v23  ;;  %v18545_v23 = vand.u32 4294901760, %v15500_v31 }
 0x27e   : > { %12580 = vmatprep.subr.bf16.mxu1 %v12579_v6 }
 0x281   : > { %12582 = vmatpush3.bf16.msra.mxu1 %v12579_v6 }
 0x282   : > { %12584 = vmatprep.subr.bf16.mxu1 %v12583_v9 }
 0x285   : > { %12586 = vmatpush3.bf16.msra.mxu1 %v12583_v9 }
 0x286   : > { %12588 = vmatprep.subr.bf16.mxu1 %v12587_v40 }
 0x289   : > { %12590 = vmatpush3.bf16.msra.mxu1 %v12587_v40  ;;  %v3911_v40 = vsub.f32 %v15950_v2, %v3910_v35 }
 0x28a   : > { %12592 = vmatprep.subr.bf16.mxu1 %v12591_v39 }
 0x28d   : > { %12594 = vmatpush3.bf16.msra.mxu1 %v12591_v39 }
 0x28e   : > { %12596 = vmatprep.subr.bf16.mxu1 %v15258_v16 }
 0x290   : > { %10916 = vmatmul.mubr.f32.vlgmr.msra.gmra.mrb[0].mxu1 %v15500_v31  ;;  %v18549_v31 = vand.u32 4294901760, %v15605_v32 }
 0x291   : > { %10918 = vmatprep.mubr.f32.mxu1 %v15513_v18  ;;  %12598 = vmatpush3.bf16.msra.mxu1 %v15258_v16  ;;  %v2838_v18 = vld [vmem:[%s18326_s2 + $0x8] sm:$0xff] }
 0x292   : > { %12600 = vmatprep.subr.bf16.mxu1 %v15345_v36 }
 0x294   : > { %10919 = vmatmul.mubr.f32.gmra.mrb[2].mxu1 %v15585_v55  ;;  %v3825_v55 = vand.u32 4294901760, %v2838_v18 }
 0x295   : > { %10921 = vmatprep.mubr.f32.mxu1 %v15590_v49  ;;  %12602 = vmatpush3.bf16.msra.mxu1 %v15345_v36 }
 0x296   : > { %12604 = vmatprep.subr.bf16.mxu1 %v15359_v4  ;;  %v15901_v49 = vsub.f32 %v2838_v18, %v3825_v55 }
 0x298   : > { %10922 = vmatmul.mubr.f32.gmra.mrb[4].mxu1 %v15605_v32  ;;  %v3978_v29 = vand.u32 4294901760, %v15901_v49 }
 0x299   : > { %10924 = vmatprep.mubr.f32.mxu1 %v15748_v11  ;;  %12606 = vmatpush3.bf16.msra.mxu1 %v15359_v4  ;;  %v3807_v11 = vsel %vm396_vm0, %v14201_v27, 0  ;;  %v16057_v27 = vld [vmem:[%s18328_s4 + $0x20] sm:$0xff] }
 0x29a   : > { %12608 = vmatprep.subr.bf16.mxu1 %v15396_v63 }
 0x29c   : > { %10925 = vmatmul.mubr.f32.gmra.mrb[6].mxu1 %v15722_v56 }
 0x29d   : > { %12610 = vmatpush3.bf16.msra.mxu1 %v15396_v63  ;;  %10959 = vmatprep.mubr.f32.mxu1 %v18543_v52 }
 0x29e   : > { %12612 = vmatprep.subr.bf16.mxu1 %v15418_v53 }
 0x2a1   : > { %12614 = vmatpush3.bf16.msra.mxu1 %v15418_v53 }
 0x2a2   : > { %12616 = vmatprep.subr.bf16.mxu1 %v15461_v60 }
 0x2a5   : > { %12618 = vmatpush3.bf16.msra.mxu1 %v15461_v60 }
 0x2a6   : > { %12620 = vmatprep.subr.bf16.mxu1 %v18544_v28 }
 0x2a9   : > { %12622 = vmatpush3.bf16.msra.mxu1 %v18544_v28 }
 0x2aa   : > { %12624 = vmatprep.subr.bf16.mxu1 %v15520_v22 }
 0x2ad   : > { %12626 = vmatpush3.bf16.msra.mxu1 %v15520_v22 }
 0x2ae   : > { %12628 = vmatprep.subr.bf16.mxu1 %v15754_v10 }
 0x2b0   : > { %10960 = vmatmul.mubr.f32.vlgmr.msra.gmra.mrb[0].mxu1 %v18545_v23 }
 0x2b1   : > { %10962 = vmatprep.mubr.f32.mxu1 %v18546_v8  ;;  %12630 = vmatpush3.bf16.msra.mxu1 %v15754_v10 }
 0x2b2   : > { %12632 = vmatprep.subr.bf16.mxu1 %v15760_v15 }
 0x2b4   : > { %10963 = vmatmul.mubr.f32.gmra.mrb[2].mxu1 %v18547_v46 }
 0x2b5   : > { %10965 = vmatprep.mubr.f32.mxu1 %v18548_v44  ;;  %12634 = vmatpush3.bf16.msra.mxu1 %v15760_v15  ;;  %v14202_v15 = vld [vmem:[%s14368_s17 + $0x20] sm:$0xff] }
 0x2b6   : > { %12636 = vmatprep.subr.bf16.mxu1 %v15766_v0 }
 0x2b8   : > { %10966 = vmatmul.mubr.f32.gmra.mrb[4].mxu1 %v18549_v31 }
 0x2b9   : > { %10968 = vmatprep.mubr.f32.mxu1 %v2998_v43  ;;  %12638 = vmatpush3.bf16.msra.mxu1 %v15766_v0  ;;  %v3810_v0 = vsel %vm396_vm0, %v14202_v15, 0  ;;  %v14203_v43 = vld [vmem:[%s14368_s17 + $0x28] sm:$0xff]  ;;  %v4610_v15 = vand.u32 4294901760, %v16057_v27 }
 0x2ba   : > { %12640 = vmatprep.subr.bf16.mxu1 %v15772_v48 }
 0x2bc   : > { %10969 = vmatmul.mubr.f32.gmra.mrb[6].mxu1 %v3008_v14  ;;  %v15927_v14 = vand.u32 4294901760, %v3801_v54 }
 0x2bd   : > { %12642 = vmatpush3.bf16.msra.mxu1 %v15772_v48  ;;  %11003 = vmatprep.mubr.f32.mxu1 %v15487_v61 }
 0x2be   : > { %12644 = vmatprep.subr.bf16.mxu1 %v15778_v50  ;;  %v15941_v48 = vsub.f32 %v3801_v54, %v15927_v14 }
 0x2c0   : > { %v3900_v20 = vand.u32 4294901760, %v15941_v48 }
 0x2c1   : > { %12646 = vmatpush3.bf16.msra.mxu1 %v15778_v50  ;;  %v15945_v50 = vand.u32 4294901760, %v3807_v11 }
 0x2c2   : > { %12648 = vmatprep.subr.bf16.mxu1 %v15782_v37  ;;  %v3901_v24 = vsub.f32 %v15941_v48, %v3900_v20 }
 0x2c3   : > { %v15964_v59 = vsub.f32 %v3807_v11, %v15945_v50  ;;  %v16062_v11 = vld [vmem:[%s18328_s4 + $0x28] sm:$0xff] }
 0x2c4   : > { %v3902_v52 = vand.u32 4294901760, %v3901_v24  ;;  %v16156_v24 = vld [vmem:[%s18328_s4 + $0x68] sm:$0xff] }
 0x2c5   : > { %12650 = vmatpush3.bf16.msra.mxu1 %v15782_v37  ;;  %v15952_v37 = vand.u32 4294901760, %v3810_v0  ;;  %v3920_v5 = vand.u32 4294901760, %v15964_v59 }
 0x2c6   : > { %12652 = vmatprep.subr.bf16.mxu1 %v15785_v34 }
 0x2c7   : > { %v15971_v1 = vsub.f32 %v3810_v0, %v15952_v37  ;;  %v4613_v0 = vand.u32 4294901760, %v16062_v11 }
 0x2c9   : > { %12654 = vmatpush3.bf16.msra.mxu1 %v15785_v34  ;;  %v3813_v34 = vsel %vm396_vm0, %v14203_v43, 0 }
 0x2ca   : > { %12656 = vmatprep.subr.bf16.mxu1 %v15787_v30  ;;  %v15966_v57 = vand.u32 4294901760, %v3813_v34 }
 0x2cd   : > { %12658 = vmatpush3.bf16.msra.mxu1 %v15787_v30  ;;  %v14204_v30 = vld [vmem:[%s14368_s17 + $0x30] sm:$0xff] }
 0x2ce   : > { %12660 = vmatprep.subr.bf16.mxu1 %v15258_v16 }
 0x2d0   : > { %11004 = vmatmul.mubr.f32.vlgmr.msra.gmra.mrb[0].mxu1 %v15025_v3 }
 0x2d1   : > { %11006 = vmatprep.mubr.f32.mxu1 %v15375_v45  ;;  %12662 = vmatpush3.bf16.msra.mxu1 %v15258_v16  ;;  %v2837_v16 = vld [vmem:[%s18326_s2] sm:$0xff] }
 0x2d2   : > { %12664 = vmatprep.subr.bf16.mxu1 %v15345_v36 }
 0x2d4   : > { %11007 = vmatmul.mubr.f32.gmra.mrb[2].mxu1 %v15349_v33 }
 0x2d5   : > { %11009 = vmatprep.mubr.f32.mxu1 %v15404_v38  ;;  %12666 = vmatpush3.bf16.msra.mxu1 %v15345_v36  ;;  %v3822_v36 = vand.u32 4294901760, %v2837_v16 }
 0x2d6   : > { %12668 = vmatprep.subr.bf16.mxu1 %v15359_v4 }
 0x2d8   : > { %11010 = vmatmul.mubr.f32.gmra.mrb[4].mxu1 %v15378_v58 }
 0x2d9   : > { %11012 = vmatprep.mubr.f32.mxu1 %v15744_v25  ;;  %12670 = vmatpush3.bf16.msra.mxu1 %v15359_v4  ;;  %v15899_v4 = vsub.f32 %v2837_v16, %v3822_v36 }
 0x2da   : > { %12672 = vmatprep.subr.bf16.mxu1 %v15396_v63 }
 0x2db   : > { %v3971_v32 = vand.u32 4294901760, %v15899_v4  ;;  %v12699_v31 = vpack.c.bf16 %v15901_v49, %v15899_v4 }
 0x2dc   : > { %11013 = vmatmul.mubr.f32.gmra.mrb[6].mxu1 %v15675_v26 }
 0x2dd   : > { %12674 = vmatpush3.bf16.msra.mxu1 %v15396_v63  ;;  %11047 = vmatprep.mubr.f32.mxu1 %v15487_v61  ;;  %v14198_v63 = vld [vmem:[%s14368_s17] sm:$0xff]  ;;  %v3972_v7 = vsub.f32 %v15899_v4, %v3971_v32  ;;  %v12707_v41 = vpack.c.bf16 %v3978_v29, %v3971_v32 }
 0x2de   : > { %12676 = vmatprep.subr.bf16.mxu1 %v15418_v53  ;;  %v3798_v61 = vsel %vm396_vm0, %v14198_v63, 0  ;;  %v4581_v4 = vld [vmem:[%s18328_s4] sm:$0xff] }
 0x2df   : > { %v15917_v21 = vand.u32 4294901760, %v3798_v61  ;;  %v3973_v51 = vand.u32 4294901760, %v3972_v7  ;;  %v4598_v32 = vand.u32 4294901760, %v4581_v4 }
 0x2e1   : > { %12678 = vmatpush3.bf16.msra.mxu1 %v15418_v53  ;;  %v3979_v53 = vsub.f32 %v15901_v49, %v3978_v29  ;;  %v15930_v17 = vsub.f32 %v3798_v61, %v15917_v21  ;;  %v4582_v49 = vld [vmem:[%s18328_s4 + $0x8] sm:$0xff] }
 0x2e2   : > { %12680 = vmatprep.subr.bf16.mxu1 %v15461_v60  ;;  %v4601_v29 = vand.u32 4294901760, %v4582_v49 }
 0x2e3   : > { %v3980_v56 = vand.u32 4294901760, %v3979_v53 }
 0x2e4   : > { %v16035_v54 = vpack.c.bf16 %v4601_v29, %v4598_v32 }
 0x2e5   : > { %12682 = vmatpush3.bf16.msra.mxu1 %v15461_v60  ;;  %v15923_v60 = vpack.c.bf16 %v3825_v55, %v3822_v36  ;;  %v12695_v10 = vpack.c.bf16 %v3980_v56, %v3973_v51  ;;  %v4583_v51 = vld [vmem:[%s18328_s4 + $0x10] sm:$0xff]  ;;  %v4584_v56 = vld [vmem:[%s18328_s4 + $0x18] sm:$0xff] }
 0x2e6   : > { %12684 = vmatprep.subr.bf16.mxu1 %v18544_v28  ;;  %v4607_v42 = vand.u32 4294901760, %v4584_v56 }
 0x2e9   : > { %12686 = vmatpush3.bf16.msra.mxu1 %v18544_v28  ;;  %v3921_v28 = vsub.f32 %v15964_v59, %v3920_v5 }
 0x2ea   : > { %12688 = vmatprep.subr.bf16.mxu1 %v15520_v22 }
 0x2eb   : > { %v3922_v16 = vand.u32 4294901760, %v3921_v28 }
 0x2ed   : > { %12690 = vmatpush3.bf16.msra.mxu1 %v15520_v22  ;;  %v3890_v22 = vand.u32 4294901760, %v15930_v17 }
 0x2ee   : > { %12692 = vmatprep.subr.bf16.mxu1 %v15923_v60 }
 0x2f0   : > { %11048 = vmatmul.mubr.f32.vlgmr.msra.gmra.mrb[0].mxu1 %v15025_v3  ;;  %v3816_v3 = vsel %vm396_vm0, %v14204_v30, 0 }
 0x2f1   : > { %11050 = vmatprep.mubr.f32.mxu1 %v15375_v45  ;;  %12694 = vmatpush3.bf16.msra.mxu1 %v15923_v60  ;;  %v3891_v45 = vsub.f32 %v15930_v17, %v3890_v22  ;;  %v15973_v62 = vand.u32 4294901760, %v3816_v3 }
 0x2f2   : > { %12696 = vmatprep.subr.bf16.mxu1 %v12695_v10 }
 0x2f3   : > { %v3892_v9 = vand.u32 4294901760, %v3891_v45  ;;  %v3949_v39 = vsub.f32 %v3816_v3, %v15973_v62 }
 0x2f4   : > { %11051 = vmatmul.mubr.f32.gmra.mrb[2].mxu1 %v15349_v33  ;;  %v14205_v33 = vld [vmem:[%s14368_s17 + $0x38] sm:$0xff] }
 0x2f5   : > { %11053 = vmatprep.mubr.f32.mxu1 %v15404_v38  ;;  %v3819_v13 = vsel %vm396_vm0, %v14205_v33, 0  ;;  %v15983_v38 = vsub.f32 %v3813_v34, %v15966_v57  ;;  %v3950_v44 = vand.u32 4294901760, %v3949_v39  ;;  %vm9554_vm0 = vcmask 97280  }
 0x2f6   : > { %v15985_v6 = vand.u32 4294901760, %v3819_v13 }
 0x2f7   : > { %v3940_v23 = vand.u32 4294901760, %v15983_v38  ;;  %v3951_v55 = vsub.f32 %v3949_v39, %v3950_v44 }
 0x2f8   : > { %11054 = vmatmul.mubr.f32.gmra.mrb[4].mxu1 %v15378_v58  ;;  %v3930_v58 = vand.u32 4294901760, %v15971_v1  ;;  %v3959_v8 = vsub.f32 %v3819_v13, %v15985_v6 }
 0x2f9   : > { %11056 = vmatprep.mubr.f32.mxu1 %v15744_v25  ;;  %v3912_v25 = vand.u32 4294901760, %v3911_v40  ;;  %v3941_v18 = vsub.f32 %v15983_v38, %v3940_v23  ;;  %v3952_v7 = vand.u32 4294901760, %v3951_v55 }
 0x2fa   : > { %v3931_v46 = vsub.f32 %v15971_v1, %v3930_v58 }
 0x2fb   : > { %v3942_v63 = vand.u32 4294901760, %v3941_v18 }
 0x2fc   : > { %11057 = vmatmul.mubr.f32.gmra.mrb[6].mxu1 %v15675_v26  ;;  %v3960_v26 = vand.u32 4294901760, %v3959_v8  ;;  %v3932_v36 = vand.u32 4294901760, %v3931_v46 }
 0x2fd   : > { %11063 = vmatprep.mubr.f32.mxu1 %v3892_v9 }
 0x2fe   : > { %v3961_v61 = vsub.f32 %v3959_v8, %v3960_v26 }
 0x300   : > { %11064 = vmatmul.mubr.f32.vlgmr.msra.gmra.mrb[0].mxu1 %v3902_v52  ;;  %v3962_v53 = vand.u32 4294901760, %v3961_v61  ;;  %v16173_v52 = vld [vmem:[%s18328_s4 + $0x78] sm:$0xff] }
 0x301   : > { %12698 = vmatpush3.bf16.msra.mxu1 %v12695_v10  ;;  %11066 = vmatprep.mubr.f32.mxu1 %v3912_v25  ;;  %v16186_v25 = vsub.f32 %v4584_v56, %v4607_v42  ;;  %v18555_v56 = vld [vmem:[#allocation8_spill] sm:$0xff] }
 0x302   : > { %12700 = vmatprep.subr.bf16.mxu1 %v12699_v31 }
 0x304   : > { %11067 = vmatmul.mubr.f32.gmra.mrb[2].mxu1 %v3922_v16  ;;  %v18553_v16 = vld [vmem:[#allocation6_spill] sm:$0xff] }
 0x305   : > { %11069 = vmatprep.mubr.f32.mxu1 %v3932_v36  ;;  %v16196_v18 = vand.u32 4294901760, %v18553_v16  ;;  %v18385_v36 = vand.u32 4294901760, %v16173_v52 }
 0x308   : > { %11070 = vmatmul.mubr.f32.gmra.mrb[4].mxu1 %v3942_v63 }
 0x309   : > { %11072 = vmatprep.mubr.f32.mxu1 %v3952_v7 }
 0x30c   : > { %11073 = vmatmul.mubr.f32.gmra.mrb[6].mxu1 %v3962_v53  ;;  %v18376_v53 = vand.u32 4294901760, %v16186_v25 }
 0x30d   : > { %11079 = vmatprep.mubr.f32.mxu1 %v15917_v21 }
 0x310   : > { %11080 = vmatmul.mubr.f32.vlgmr.msra.gmra.mrb[0].mxu1 %v15927_v14 }
 0x311   : > { %12702 = vmatpush3.bf16.msra.mxu1 %v12699_v31  ;;  %11082 = vmatprep.mubr.f32.mxu1 %v15933_v12 }
 0x312   : > { %12704 = vmatprep.subr.bf16.mxu1 %v15923_v60 }
 0x314   : > { %11083 = vmatmul.mubr.f32.gmra.mrb[2].mxu1 %v15945_v50 }
 0x315   : > { %11085 = vmatprep.mubr.f32.mxu1 %v15952_v37 }
 0x318   : > { %11086 = vmatmul.mubr.f32.gmra.mrb[4].mxu1 %v15966_v57 }
 0x319   : > { %11088 = vmatprep.mubr.f32.mxu1 %v15973_v62 }
 0x31c   : > { %11089 = vmatmul.mubr.f32.gmra.mrb[6].mxu1 %v15985_v6 }
 0x31d   : > { %11095 = vmatprep.mubr.f32.mxu1 %v15930_v17  ;;  %v16052_v17 = vand.u32 4294901760, %v18550_v47 }
 0x320   : > { %11096 = vmatmul.mubr.f32.vlgmr.msra.gmra.mrb[0].mxu1 %v15941_v48  ;;  %v16073_v48 = vld [vmem:[%s18328_s4 + $0x30] sm:$0xff] }
 0x321   : > { %12706 = vmatpush3.bf16.msra.mxu1 %v15923_v60  ;;  %11098 = vmatprep.mubr.f32.mxu1 %v15950_v2  ;;  %v16082_v2 = vsub.f32 %v18550_v47, %v16052_v17  ;;  %v4616_v43 = vand.u32 4294901760, %v16073_v48  ;;  %v16245_v47 = vsub.f32 %v18553_v16, %v16196_v18  ;;  %v18556_v16 = vld [vmem:[#allocation12_spill] sm:$0xff] }
 0x322   : > { %12708 = vmatprep.subr.bf16.mxu1 %v12707_v41 }
 0x323   : > { %v18381_v30 = vand.u32 4294901760, %v16082_v2 }
 0x324   : > { %11099 = vmatmul.mubr.f32.gmra.mrb[2].mxu1 %v15964_v59  ;;  %v16130_v59 = vld [vmem:[%s18328_s4 + $0x58] sm:$0xff] }
 0x325   : > { %11101 = vmatprep.mubr.f32.mxu1 %v15971_v1  ;;  %v16137_v1 = vsub.f32 %v4582_v49, %v4601_v29  ;;  %v18554_v49 = vld [vmem:[#allocation9_spill] sm:$0xff] }
 0x328   : > { %11102 = vmatmul.mubr.f32.gmra.mrb[4].mxu1 %v15983_v38 }
 0x329   : > { %11104 = vmatprep.mubr.f32.mxu1 %v3949_v39  ;;  %v16168_v39 = vld [vmem:[%s18328_s4 + $0x70] sm:$0xff] }
 0x32c   : > { %11105 = vmatmul.mubr.f32.gmra.mrb[6].mxu1 %v3959_v8 }
 0x32d   : > { %11111 = vmatprep.mubr.f32.mxu1 %v3890_v22  ;;  %v16078_v22 = vld [vmem:[%s18328_s4 + $0x38] sm:$0xff] }
 0x32e   : > { %v4619_v34 = vand.u32 4294901760, %v16078_v22 }
 0x330   : > { %11112 = vmatmul.mubr.f32.vlgmr.msra.gmra.mrb[0].mxu1 %v3900_v20  ;;  %v16115_v3 = vpack.c.bf16 %v4619_v34, %v4616_v43 }
 0x331   : > { %12710 = vmatpush3.bf16.msra.mxu1 %v12707_v41  ;;  %11114 = vmatprep.mubr.f32.mxu1 %v3910_v35  ;;  %v16135_v35 = vsub.f32 %v4581_v4, %v4598_v32  ;;  %v16219_v41 = vsub.f32 %v16057_v27, %v4610_v15  ;;  %v16224_v4 = vsub.f32 %v16062_v11, %v4613_v0  ;;  %v16227_v32 = vand.u32 4294901760, %v18554_v49 }
 0x332   : > { %12712 = vmatprep.subr.bf16.mxu1 %v15923_v60 }
 0x333   : > { %v18380_v28 = vand.u32 4294901760, %v16135_v35 }
 0x334   : > { %11115 = vmatmul.mubr.f32.gmra.mrb[2].mxu1 %v3920_v5  ;;  %v18551_v5 = vld [vmem:[#allocation5_spill] sm:$0xff] }
 0x335   : > { %11117 = vmatprep.mubr.f32.mxu1 %v3930_v58  ;;  %v16159_v38 = vand.u32 4294901760, %v18551_v5  ;;  %v18388_v58 = vand.u32 4294901760, %v16156_v24  ;;  %v4762_v63 = vsub.f32 %v16135_v35, %v18380_v28 }
 0x337   : > { %v16190_v46 = vsub.f32 %v18551_v5, %v16159_v38  ;;  %v4763_v27 = vand.u32 4294901760, %v4762_v63  ;;  %v4783_v5 = vsub.f32 %v16186_v25, %v18376_v53  ;;  %v16279_v63 = vand.u32 4294901760, %v18556_v16 }
 0x338   : > { %11118 = vmatmul.mubr.f32.gmra.mrb[4].mxu1 %v3940_v23 }
 0x339   : > { %11120 = vmatprep.mubr.f32.mxu1 %v3950_v44  ;;  %v18552_v44 = vld [vmem:[#allocation7_spill] sm:$0xff]  ;;  %v18377_v29 = vand.u32 4294901760, %v16190_v46 }
 0x33a   : > { %v16193_v31 = vand.u32 4294901760, %v18552_v44 }
 0x33c   : > { %11121 = vmatmul.mubr.f32.gmra.mrb[6].mxu1 %v3960_v26  ;;  %v18387_v26 = vand.u32 4294901760, %v16168_v39 }
 0x33d   : > { %11127 = vmatprep.mubr.f32.mxu1 %v15917_v21 }
 0x340   : > { %11128 = vmatmul.mubr.f32.vlgmr.msra.gmra.mrb[0].mxu1 %v15927_v14 }
 0x341   : > { %12714 = vmatpush3.bf16.msra.mxu1 %v15923_v60  ;;  %11130 = vmatprep.mubr.f32.mxu1 %v15933_v12  ;;  %v4604_v60 = vand.u32 4294901760, %v4583_v51 }
 0x342   : > { %12716 = vmatprep.subr.bf16.mxu1 %v16035_v54 }
 0x343   : > { %v16066_v10 = vpack.c.bf16 %v4607_v42, %v4604_v60  ;;  %v16184_v8 = vsub.f32 %v4583_v51, %v4604_v60  ;;  %v16232_v51 = vsub.f32 %v18552_v44, %v16193_v31  ;;  %v16235_v60 = vand.u32 4294901760, %v18555_v56 }
 0x344   : > { %11131 = vmatmul.mubr.f32.gmra.mrb[2].mxu1 %v15945_v50  ;;  %v16241_v42 = vpack.c.bf16 %v18385_v36, %v18387_v26  ;;  %v16276_v44 = vsub.f32 %v18554_v49, %v16227_v32 }
 0x345   : > { %11133 = vmatprep.mubr.f32.mxu1 %v15952_v37  ;;  %v18378_v7 = vand.u32 4294901760, %v16184_v8 }
 0x348   : > { %11134 = vmatmul.mubr.f32.gmra.mrb[4].mxu1 %v15966_v57 }
 0x349   : > { %11136 = vmatprep.mubr.f32.mxu1 %v15973_v62 }
 0x34c   : > { %11137 = vmatmul.mubr.f32.gmra.mrb[6].mxu1 %v15985_v6 }
 0x34d   : > { %11143 = vmatprep.mubr.f32.mxu1 %v15917_v21  ;;  %v16092_v21 = vpack.c.bf16 %v4613_v0, %v4610_v15  ;;  %v16251_v15 = vsub.f32 %v16073_v48, %v4616_v43  ;;  %v16256_v0 = vsub.f32 %v16078_v22, %v4619_v34  ;;  %v18383_v48 = vand.u32 4294901760, %v16224_v4 }
 0x34e   : > { %v16268_v43 = vand.u32 4294901760, %v15742_v19  ;;  %v4691_v22 = vsub.f32 %v16190_v46, %v18377_v29  ;;  %v18384_v34 = vand.u32 4294901760, %v16232_v51 }
 0x350   : > { %11144 = vmatmul.mubr.f32.vlgmr.msra.gmra.mrb[0].mxu1 %v15927_v14  ;;  %v16100_v14 = vld [vmem:[%s18328_s4 + $0x40] sm:$0xff] }
 0x351   : > { %12718 = vmatpush3.bf16.msra.mxu1 %v16035_v54  ;;  %11146 = vmatprep.mubr.f32.mxu1 %v15933_v12  ;;  %v16105_v12 = vld [vmem:[%s18328_s4 + $0x48] sm:$0xff]  ;;  %v4622_v45 = vand.u32 4294901760, %v16100_v14 }
 0x352   : > { %12720 = vmatprep.subr.bf16.mxu1 %v16066_v10  ;;  %v4625_v20 = vand.u32 4294901760, %v16105_v12 }
 0x353   : > { %v16288_v53 = vsub.f32 %v16100_v14, %v4622_v45 }
 0x354   : > { %11147 = vmatmul.mubr.f32.gmra.mrb[2].mxu1 %v15945_v50  ;;  %v4681_v50 = vsub.f32 %v16082_v2, %v18381_v30  ;;  %v16144_v33 = vpack.c.bf16 %v4625_v20, %v4622_v45  ;;  %v16293_v29 = vsub.f32 %v16105_v12, %v4625_v20  ;;  %v4784_v30 = vand.u32 4294901760, %v4783_v5 }
 0x355   : > { %12722 = vmatpush3.bf16.msra.mxu1 %v16066_v10  ;;  %11149 = vmatprep.mubr.f32.mxu1 %v15952_v37  ;;  %v16125_v37 = vld [vmem:[%s18328_s4 + $0x50] sm:$0xff]  ;;  %v4797_v12 = vsub.f32 %v16224_v4, %v18383_v48  ;;  %v4692_v45 = vand.u32 4294901760, %v4691_v22  ;;  %v4701_v20 = vsub.f32 %v16232_v51, %v18384_v34  ;;  %v16317_v5 = vsub.f32 %v18556_v16, %v16279_v63 }
 0x356   : > { %12724 = vmatprep.subr.bf16.mxu1 %v16092_v21  ;;  %v4628_v13 = vand.u32 4294901760, %v16125_v37  ;;  %v4682_v9 = vand.u32 4294901760, %v4681_v50  ;;  %v4776_v50 = vsub.f32 %v16184_v8, %v18378_v7  ;;  %v18393_v7 = vand.u32 4294901760, %v16245_v47 }
 0x357   : > { %v18395_v22 = vand.u32 4294901760, %v16293_v29 }
 0x358   : > { %11150 = vmatmul.mubr.f32.gmra.mrb[4].mxu1 %v15966_v57  ;;  %v4631_v57 = vand.u32 4294901760, %v16130_v59  ;;  %v4777_v28 = vand.u32 4294901760, %v4776_v50  ;;  %v16331_v34 = vsub.f32 %v16125_v37, %v4628_v13  ;;  %v4711_v36 = vsub.f32 %v16245_v47, %v18393_v7 }
 0x359   : > { %12726 = vmatpush3.bf16.msra.mxu1 %v16092_v21  ;;  %11152 = vmatprep.mubr.f32.mxu1 %v15973_v62  ;;  %v16151_v62 = vld [vmem:[%s18328_s4 + $0x60] sm:$0xff] }
 0x35a   : > { %12728 = vmatprep.subr.bf16.mxu1 %v16115_v3  ;;  %v18389_v40 = vand.u32 4294901760, %v16151_v62  ;;  %v16182_v23 = vpack.c.bf16 %v4631_v57, %v4628_v13  ;;  %v16336_v16 = vsub.f32 %v16130_v59, %v4631_v57  ;;  %v4750_v13 = vand.u32 4294901760, %v16317_v5 }
 0x35b   : > { %v4825_v57 = vsub.f32 %v16293_v29, %v18395_v22 }
 0x35c   : > { %11153 = vmatmul.mubr.f32.gmra.mrb[6].mxu1 %v15985_v6  ;;  %v18379_v6 = vand.u32 4294901760, %v16137_v1  ;;  %v16205_v55 = vpack.c.bf16 %v18388_v58, %v18389_v40  ;;  %v4798_v58 = vand.u32 4294901760, %v4797_v12  ;;  %v4702_v40 = vand.u32 4294901760, %v4701_v20 }
 0x35d   : > { %12730 = vmatpush3.bf16.msra.mxu1 %v16115_v3  ;;  %11187 = vmatprep.mubr.f32.mxu1 %v4682_v9  ;;  %v18382_v9 = vand.u32 4294901760, %v16219_v41  ;;  %v4831_v12 = vand.u32 4294901760, %v16331_v34  ;;  %v4712_v20 = vand.u32 4294901760, %v4711_v36  ;;  %v4826_v36 = vand.u32 4294901760, %v4825_v57 }
 0x35e   : > { %12732 = vmatprep.subr.bf16.mxu1 %v16144_v33  ;;  %v4769_v61 = vsub.f32 %v16137_v1, %v18379_v6  ;;  %v18386_v6 = vand.u32 4294901760, %v16251_v15 }
 0x35f   : > { %v4790_v14 = vsub.f32 %v16219_v41, %v18382_v9  ;;  %v18394_v9 = vand.u32 4294901760, %v16288_v53 }
 0x360   : > { %v4770_v11 = vand.u32 4294901760, %v4769_v61  ;;  %v16283_v61 = vsub.f32 %v18555_v56, %v16235_v60  ;;  %v18390_v56 = vand.u32 4294901760, %v16256_v0  ;;  %v4804_v48 = vsub.f32 %v16251_v15, %v18386_v6 }
 0x361   : > { %12734 = vmatpush3.bf16.msra.mxu1 %v16144_v33  ;;  %v12751_v6 = vpack.c.bf16 %v4784_v30, %v4777_v28  ;;  %v4791_v26 = vand.u32 4294901760, %v4790_v14  ;;  %v4818_v30 = vsub.f32 %v16288_v53, %v18394_v9  ;;  %v18558_v9 = vand.u32 4294901760, %v16156_v24 }
 0x362   : > { %12736 = vmatprep.subr.bf16.mxu1 %v16182_v23  ;;  %v12747_v49 = vpack.c.bf16 %v4770_v11, %v4763_v27  ;;  %v18392_v27 = vand.u32 4294901760, %v16276_v44  ;;  %v16312_v11 = vsub.f32 %v15742_v19, %v16268_v43  ;;  %v18391_v50 = vand.u32 4294901760, %v16283_v61 }
 0x363   : > { %v4811_v19 = vsub.f32 %v16256_v0, %v18390_v56  ;;  %v4805_v28 = vand.u32 4294901760, %v4804_v48  ;;  %v16365_v22 = vsub.f32 %v16156_v24, %v18558_v9  ;;  %v4832_v24 = vsub.f32 %v16331_v34, %v4831_v12 }
 0x364   : > { %v4721_v56 = vsub.f32 %v16276_v44, %v18392_v27  ;;  %v4740_v37 = vand.u32 4294901760, %v16312_v11  ;;  %v4731_v59 = vsub.f32 %v16283_v61, %v18391_v50  ;;  %v12755_v50 = vpack.c.bf16 %v4798_v58, %v4791_v26 }
 0x365   : > { %12738 = vmatpush3.bf16.msra.mxu1 %v16182_v23  ;;  %v4812_v14 = vand.u32 4294901760, %v4811_v19  ;;  %v18557_v27 = vand.u32 4294901760, %v16151_v62  ;;  %v4751_v58 = vsub.f32 %v16317_v5, %v4750_v13  ;;  %v4819_v26 = vand.u32 4294901760, %v4818_v30 }
 0x366   : > { %12740 = vmatprep.subr.bf16.mxu1 %v16205_v55  ;;  %v4741_v48 = vsub.f32 %v16312_v11, %v4740_v37  ;;  %v18559_v19 = vand.u32 4294901760, %v16168_v39 }
 0x367   : > { %v16360_v7 = vsub.f32 %v16151_v62, %v18557_v27  ;;  %v12759_v62 = vpack.c.bf16 %v4812_v14, %v4805_v28  ;;  %v4852_v27 = vand.u32 4294901760, %v16365_v22  ;;  %v4752_v28 = vand.u32 4294901760, %v4751_v58 }
 0x368   : > { %v4742_v57 = vand.u32 4294901760, %v4741_v48  ;;  %v12763_v14 = vpack.c.bf16 %v4826_v36, %v4819_v26 }
 0x369   : > { %12742 = vmatpush3.bf16.msra.mxu1 %v16205_v55 }
 0x36a   : > { %12744 = vmatprep.subr.bf16.mxu1 %v16241_v42 }
 0x36d   : > { %12746 = vmatpush3.bf16.msra.mxu1 %v16241_v42 }
 0x36e   : > { %12748 = vmatprep.subr.bf16.mxu1 %v12747_v49 }
 0x370   : > { %11188 = vmatmul.mubr.f32.vlgmr.msra.gmra.mrb[0].mxu1 %v4692_v45  ;;  %v18396_v45 = vand.u32 4294901760, %v16336_v16 }
 0x371   : > { %11190 = vmatprep.mubr.f32.mxu1 %v4702_v40  ;;  %12750 = vmatpush3.bf16.msra.mxu1 %v12747_v49  ;;  %v4722_v40 = vand.u32 4294901760, %v4721_v56  ;;  %v4732_v49 = vand.u32 4294901760, %v4731_v59  ;;  %v4845_v56 = vand.u32 4294901760, %v16360_v7  ;;  %v16384_v59 = vsub.f32 %v16168_v39, %v18559_v19 }
 0x372   : > { %12752 = vmatprep.subr.bf16.mxu1 %v12751_v6  ;;  %v4839_v9 = vsub.f32 %v16336_v16, %v18396_v45  ;;  %v4853_v39 = vsub.f32 %v16365_v22, %v4852_v27 }
 0x373   : > { %v4846_v45 = vsub.f32 %v16360_v7, %v4845_v56 }
 0x374   : > { %11191 = vmatmul.mubr.f32.gmra.mrb[2].mxu1 %v4712_v20  ;;  %v4833_v20 = vand.u32 4294901760, %v4832_v24  ;;  %v4854_v58 = vand.u32 4294901760, %v4853_v39 }
 0x375   : > { %11193 = vmatprep.mubr.f32.mxu1 %v4722_v40  ;;  %12754 = vmatpush3.bf16.msra.mxu1 %v12751_v6  ;;  %v18560_v6 = vand.u32 4294901760, %v16173_v52  ;;  %v4840_v40 = vand.u32 4294901760, %v4839_v9 }
 0x376   : > { %12756 = vmatprep.subr.bf16.mxu1 %v12755_v50 }
 0x377   : > { %v16389_v30 = vsub.f32 %v16173_v52, %v18560_v6  ;;  %v4859_v52 = vand.u32 4294901760, %v16384_v59  ;;  %v12783_v6 = vpack.c.bf16 %v16186_v25, %v16184_v8 }
 0x378   : > { %11194 = vmatmul.mubr.f32.gmra.mrb[4].mxu1 %v4732_v49  ;;  %v4847_v49 = vand.u32 4294901760, %v4846_v45  ;;  %v12779_v45 = vpack.c.bf16 %v16137_v1, %v16135_v35 }
 0x379   : > { %11196 = vmatprep.mubr.f32.mxu1 %v4742_v57  ;;  %12758 = vmatpush3.bf16.msra.mxu1 %v12755_v50  ;;  %v4866_v48 = vand.u32 4294901760, %v16389_v30  ;;  %v12767_v50 = vpack.c.bf16 %v4840_v40, %v4833_v20  ;;  %v4860_v26 = vsub.f32 %v16384_v59, %v4859_v52  ;;  %v12787_v57 = vpack.c.bf16 %v16224_v4, %v16219_v41  ;;  %v16423_v20 = vld [vmem:[#allocation2] sm:$0xff]  ;;  %v16425_v40 = vld [vmem:[#allocation2 + $0x8] sm:$0xff] }
 0x37a   : > { %12760 = vmatprep.subr.bf16.mxu1 %v12759_v62  ;;  %v12771_v24 = vpack.c.bf16 %v4854_v58, %v4847_v49  ;;  %v5618_v39 = vand.u32 4294901760, %v16423_v20  ;;  %v12799_v49 = vpack.c.bf16 %v16336_v16, %v16331_v34  ;;  %v5603_v34 = vld [vmem:[#allocation2 + $0x48] sm:$0xff] }
 0x37b   : > { %v4867_v36 = vsub.f32 %v16389_v30, %v4866_v48  ;;  %v4861_v9 = vand.u32 4294901760, %v4860_v26  ;;  %v12803_v26 = vpack.c.bf16 %v16365_v22, %v16360_v7  ;;  %v5605_v22 = vld [vmem:[#allocation2 + $0x58] sm:$0xff] }
 0x37c   : > { %11197 = vmatmul.mubr.f32.gmra.mrb[6].mxu1 %v4752_v28  ;;  %v12791_v28 = vpack.c.bf16 %v16256_v0, %v16251_v15 }
 0x37d   : > { %12762 = vmatpush3.bf16.msra.mxu1 %v12759_v62  ;;  %11231 = vmatprep.mubr.f32.mxu1 %v16052_v17  ;;  %v4868_v19 = vand.u32 4294901760, %v4867_v36  ;;  %v12807_v36 = vpack.c.bf16 %v16389_v30, %v16384_v59  ;;  %v16575_v59 = vld [vmem:[#allocation2 + $0x78] sm:$0xff] }
 0x37e   : > { %12764 = vmatprep.subr.bf16.mxu1 %v12763_v14 }
 0x37f   : > { %v12775_v62 = vpack.c.bf16 %v4868_v19, %v4861_v9  ;;  %v18562_v9 = vand.u32 4294901760, %v16135_v35  ;;  %v18563_v19 = vand.u32 4294901760, %v16137_v1  ;;  %v18568_v35 = vand.u32 4294901760, %v16219_v41 }
 0x380   : > { %v18569_v1 = vand.u32 4294901760, %v16224_v4  ;;  %v18575_v41 = vand.u32 4294901760, %v16288_v53  ;;  %v18576_v4 = vand.u32 4294901760, %v16293_v29 }
 0x381   : > { %12766 = vmatpush3.bf16.msra.mxu1 %v12763_v14  ;;  %v12795_v14 = vpack.c.bf16 %v16293_v29, %v16288_v53  ;;  %v12867_v53 = vpack.c.bf16 %v4852_v27, %v4845_v56  ;;  %v12871_v29 = vpack.c.bf16 %v4866_v48, %v4859_v52  ;;  %v5651_v56 = vand.u32 4294901760, %v5605_v22  ;;  %v16573_v27 = vld [vmem:[#allocation2 + $0x70] sm:$0xff] }
 0x382   : > { %12768 = vmatprep.subr.bf16.mxu1 %v12767_v50 }
 0x385   : > { %12770 = vmatpush3.bf16.msra.mxu1 %v12767_v50  ;;  %v5621_v50 = vand.u32 4294901760, %v16425_v40 }
 0x386   : > { %12772 = vmatprep.subr.bf16.mxu1 %v12771_v24 }
 0x387   : > { %v16436_v58 = vpack.c.bf16 %v5621_v50, %v5618_v39  ;;  %v16580_v30 = vsub.f32 %v16425_v40, %v5621_v50  ;;  %v5663_v40 = vand.u32 4294901760, %v16575_v59 }
 0x389   : > { %12774 = vmatpush3.bf16.msra.mxu1 %v12771_v24  ;;  %12908 = vmatprep.subr.bf16.mxu0 %v16436_v58  ;;  %v18561_v24 = vand.u32 4294901760, %v16082_v2 }
 0x38a   : > { %12776 = vmatprep.subr.bf16.mxu1 %v12775_v62  ;;  %12910 = vmatpush3.bf16.msra.mxu0 %v16436_v58 }
 0x38d   : > { %12778 = vmatpush3.bf16.msra.mxu1 %v12775_v62  ;;  %v18564_v62 = vand.u32 4294901760, %v16184_v8  ;;  %v18571_v8 = vand.u32 4294901760, %v16276_v44 }
 0x38e   : > { %12780 = vmatprep.subr.bf16.mxu1 %v12779_v45 }
 0x390   : > { %11232 = vmatmul.mubr.f32.vlgmr.msra.gmra.mrb[0].mxu1 %v16159_v38 }
 0x391   : > { %11234 = vmatprep.mubr.f32.mxu1 %v16193_v31  ;;  %12782 = vmatpush3.bf16.msra.mxu1 %v12779_v45  ;;  %v18565_v45 = vand.u32 4294901760, %v16186_v25  ;;  %v18572_v25 = vand.u32 4294901760, %v16251_v15  ;;  %v18577_v15 = vand.u32 4294901760, %v16336_v16  ;;  %v16562_v16 = vld [vmem:[#allocation2 + $0x60] sm:$0xff] }
 0x392   : > { %12784 = vmatprep.subr.bf16.mxu1 %v12783_v6  ;;  %v5654_v48 = vand.u32 4294901760, %v16562_v16 }
 0x394   : > { %11235 = vmatmul.mubr.f32.gmra.mrb[2].mxu1 %v16196_v18 }
 0x395   : > { %11237 = vmatprep.mubr.f32.mxu1 %v16227_v32  ;;  %12786 = vmatpush3.bf16.msra.mxu1 %v12783_v6  ;;  %v12847_v6 = vpack.c.bf16 %v18565_v45, %v18564_v62  ;;  %v18411_v45 = vand.u32 4294901760, %v16580_v30 }
 0x396   : > { %12788 = vmatprep.subr.bf16.mxu1 %v12787_v57 }
 0x398   : > { %11238 = vmatmul.mubr.f32.gmra.mrb[4].mxu1 %v16235_v60 }
 0x399   : > { %11240 = vmatprep.mubr.f32.mxu1 %v16268_v43  ;;  %12790 = vmatpush3.bf16.msra.mxu1 %v12787_v57  ;;  %v18566_v57 = vand.u32 4294901760, %v16190_v46 }
 0x39a   : > { %12792 = vmatprep.subr.bf16.mxu1 %v12791_v28 }
 0x39c   : > { %11241 = vmatmul.mubr.f32.gmra.mrb[6].mxu1 %v16279_v63 }
 0x39d   : > { %12794 = vmatpush3.bf16.msra.mxu1 %v12791_v28  ;;  %11275 = vmatprep.mubr.f32.mxu1 %v16082_v2  ;;  %v12843_v2 = vpack.c.bf16 %v18563_v19, %v18562_v9  ;;  %v18567_v28 = vand.u32 4294901760, %v16232_v51  ;;  %v5660_v19 = vand.u32 4294901760, %v16573_v27 }
 0x39e   : > { %12796 = vmatprep.subr.bf16.mxu1 %v12795_v14 }
 0x3a1   : > { %12798 = vmatpush3.bf16.msra.mxu1 %v12795_v14  ;;  %v12851_v14 = vpack.c.bf16 %v18569_v1, %v18568_v35 }
 0x3a2   : > { %12800 = vmatprep.subr.bf16.mxu1 %v12799_v49 }
 0x3a5   : > { %12802 = vmatpush3.bf16.msra.mxu1 %v12799_v49  ;;  %v18570_v49 = vand.u32 4294901760, %v16245_v47 }
 0x3a6   : > { %12804 = vmatprep.subr.bf16.mxu1 %v12803_v26 }
 0x3a9   : > { %12806 = vmatpush3.bf16.msra.mxu1 %v12803_v26  ;;  %v18574_v26 = vand.u32 4294901760, %v16283_v61 }
 0x3aa   : > { %12808 = vmatprep.subr.bf16.mxu1 %v12807_v36 }
 0x3ad   : > { %12810 = vmatpush3.bf16.msra.mxu1 %v12807_v36 }
 0x3ae   : > { %12812 = vmatprep.subr.bf16.mxu1 %v16035_v54 }
 0x3b0   : > { %11276 = vmatmul.mubr.f32.vlgmr.msra.gmra.mrb[0].mxu1 %v16190_v46  ;;  %v18573_v46 = vand.u32 4294901760, %v16256_v0  ;;  %v12863_v0 = vpack.c.bf16 %v18577_v15, %v4831_v12 }
 0x3b1   : > { %11278 = vmatprep.mubr.f32.mxu1 %v16232_v51  ;;  %12814 = vmatpush3.bf16.msra.mxu1 %v16035_v54 }
 0x3b2   : > { %12816 = vmatprep.subr.bf16.mxu1 %v16066_v10  ;;  %v12855_v51 = vpack.c.bf16 %v18573_v46, %v18572_v25 }
 0x3b4   : > { %11279 = vmatmul.mubr.f32.gmra.mrb[2].mxu1 %v16245_v47  ;;  %v12859_v47 = vpack.c.bf16 %v18576_v4, %v18575_v41 }
 0x3b5   : > { %11281 = vmatprep.mubr.f32.mxu1 %v16276_v44  ;;  %12818 = vmatpush3.bf16.msra.mxu1 %v16066_v10  ;;  %v16556_v44 = vld [vmem:[#allocation2 + $0x50] sm:$0xff] }
 0x3b6   : > { %12820 = vmatprep.subr.bf16.mxu1 %v16092_v21  ;;  %v5648_v12 = vand.u32 4294901760, %v16556_v44 }
 0x3b8   : > { %11282 = vmatmul.mubr.f32.gmra.mrb[4].mxu1 %v16283_v61  ;;  %v16600_v62 = vpack.c.bf16 %v5651_v56, %v5648_v12 }
 0x3b9   : > { %11284 = vmatprep.mubr.f32.mxu1 %v16312_v11  ;;  %12822 = vmatpush3.bf16.msra.mxu1 %v16092_v21 }
 0x3ba   : > { %12824 = vmatprep.subr.bf16.mxu1 %v16115_v3 }
 0x3bc   : > { %11285 = vmatmul.mubr.f32.gmra.mrb[6].mxu1 %v16317_v5  ;;  %v5645_v5 = vand.u32 4294901760, %v5603_v34 }
 0x3bd   : > { %12826 = vmatpush3.bf16.msra.mxu1 %v16115_v3  ;;  %11319 = vmatprep.mubr.f32.mxu1 %v18561_v24 }
 0x3be   : > { %12828 = vmatprep.subr.bf16.mxu1 %v16144_v33 }
 0x3c1   : > { %12830 = vmatpush3.bf16.msra.mxu1 %v16144_v33 }
 0x3c2   : > { %12832 = vmatprep.subr.bf16.mxu1 %v16182_v23 }
 0x3c5   : > { %12834 = vmatpush3.bf16.msra.mxu1 %v16182_v23 }
 0x3c6   : > { %12836 = vmatprep.subr.bf16.mxu1 %v16205_v55 }
 0x3c9   : > { %12838 = vmatpush3.bf16.msra.mxu1 %v16205_v55 }
 0x3ca   : > { %12840 = vmatprep.subr.bf16.mxu1 %v16241_v42 }
 0x3cd   : > { %12842 = vmatpush3.bf16.msra.mxu1 %v16241_v42 }
 0x3ce   : > { %12844 = vmatprep.subr.bf16.mxu1 %v12843_v2 }
 0x3d0   : > { %11320 = vmatmul.mubr.f32.vlgmr.msra.gmra.mrb[0].mxu1 %v18566_v57 }
 0x3d1   : > { %11322 = vmatprep.mubr.f32.mxu1 %v18567_v28  ;;  %12846 = vmatpush3.bf16.msra.mxu1 %v12843_v2 }
 0x3d2   : > { %12848 = vmatprep.subr.bf16.mxu1 %v12847_v6 }
 0x3d4   : > { %11323 = vmatmul.mubr.f32.gmra.mrb[2].mxu1 %v18570_v49 }
 0x3d5   : > { %11325 = vmatprep.mubr.f32.mxu1 %v18571_v8  ;;  %12850 = vmatpush3.bf16.msra.mxu1 %v12847_v6 }
 0x3d6   : > { %12852 = vmatprep.subr.bf16.mxu1 %v12851_v14 }
 0x3d8   : > { %11326 = vmatmul.mubr.f32.gmra.mrb[4].mxu1 %v18574_v26 }
 0x3d9   : > { %11328 = vmatprep.mubr.f32.mxu1 %v4740_v37  ;;  %12854 = vmatpush3.bf16.msra.mxu1 %v12851_v14  ;;  %v16567_v37 = vsub.f32 %v16423_v20, %v5618_v39 }
 0x3da   : > { %12856 = vmatprep.subr.bf16.mxu1 %v12855_v51 }
 0x3db   : > { %v18412_v36 = vand.u32 4294901760, %v16567_v37 }
 0x3dc   : > { %11329 = vmatmul.mubr.f32.gmra.mrb[6].mxu1 %v4750_v13  ;;  %v16569_v13 = vld [vmem:[#allocation2 + $0x68] sm:$0xff] }
 0x3dd   : > { %12858 = vmatpush3.bf16.msra.mxu1 %v12855_v51  ;;  %11363 = vmatprep.mubr.f32.mxu1 %v16052_v17  ;;  %v5657_v39 = vand.u32 4294901760, %v16569_v13  ;;  %v5782_v8 = vsub.f32 %v16567_v37, %v18412_v36 }
 0x3de   : > { %12860 = vmatprep.subr.bf16.mxu1 %v12859_v47 }
 0x3df   : > { %v16613_v49 = vpack.c.bf16 %v5657_v39, %v5654_v48 }
 0x3e1   : > { %12862 = vmatpush3.bf16.msra.mxu1 %v12859_v47  ;;  %v5789_v47 = vsub.f32 %v16580_v30, %v18411_v45 }
 0x3e2   : > { %12864 = vmatprep.subr.bf16.mxu1 %v12863_v0 }
 0x3e5   : > { %12866 = vmatpush3.bf16.msra.mxu1 %v12863_v0 }
 0x3e6   : > { %12868 = vmatprep.subr.bf16.mxu1 %v12867_v53 }
 0x3e9   : > { %12870 = vmatpush3.bf16.msra.mxu1 %v12867_v53  ;;  %v16634_v53 = vsub.f32 %v5603_v34, %v5645_v5  ;;  %v5790_v34 = vand.u32 4294901760, %v5789_v47  ;;  %v16699_v47 = vsub.f32 %v16573_v27, %v5660_v19 }
 0x3ea   : > { %12872 = vmatprep.subr.bf16.mxu1 %v12871_v29 }
 0x3eb   : > { %18580 = vst [vmem:[#allocation5_spill] sm:$0xff] %v16699_v47 }
 0x3ed   : > { %12874 = vmatpush3.bf16.msra.mxu1 %v12871_v29 }
 0x3ee   : > { %12876 = vmatprep.subr.bf16.mxu1 %v16035_v54 }
 0x3f0   : > { %11364 = vmatmul.mubr.f32.vlgmr.msra.gmra.mrb[0].mxu1 %v16159_v38 }
 0x3f1   : > { %11366 = vmatprep.mubr.f32.mxu1 %v16193_v31  ;;  %12878 = vmatpush3.bf16.msra.mxu1 %v16035_v54  ;;  %v5596_v54 = vld [vmem:[#allocation2 + $0x10] sm:$0xff] }
 0x3f2   : > { %12880 = vmatprep.subr.bf16.mxu1 %v16066_v10 }
 0x3f4   : > { %11367 = vmatmul.mubr.f32.gmra.mrb[2].mxu1 %v16196_v18 }
 0x3f5   : > { %11369 = vmatprep.mubr.f32.mxu1 %v16227_v32  ;;  %12882 = vmatpush3.bf16.msra.mxu1 %v16066_v10  ;;  %v5598_v10 = vld [vmem:[#allocation2 + $0x20] sm:$0xff] }
 0x3f6   : > { %12884 = vmatprep.subr.bf16.mxu1 %v16092_v21 }
 0x3f8   : > { %11370 = vmatmul.mubr.f32.gmra.mrb[4].mxu1 %v16235_v60 }
 0x3f9   : > { %11372 = vmatprep.mubr.f32.mxu1 %v16268_v43  ;;  %12886 = vmatpush3.bf16.msra.mxu1 %v16092_v21  ;;  %v5624_v21 = vand.u32 4294901760, %v5596_v54 }
 0x3fa   : > { %12888 = vmatprep.subr.bf16.mxu1 %v16115_v3 }
 0x3fc   : > { %11373 = vmatmul.mubr.f32.gmra.mrb[6].mxu1 %v16279_v63 }
 0x3fd   : > { %12890 = vmatpush3.bf16.msra.mxu1 %v16115_v3  ;;  %11407 = vmatprep.mubr.f32.mxu1 %v16052_v17  ;;  %v5597_v17 = vld [vmem:[#allocation2 + $0x18] sm:$0xff] }
 0x3fe   : > { %12892 = vmatprep.subr.bf16.mxu1 %v16144_v33  ;;  %v5627_v3 = vand.u32 4294901760, %v5597_v17 }
 0x400   : > { %v16560_v61 = vsub.f32 %v5597_v17, %v5627_v3 }
 0x401   : > { %12894 = vmatpush3.bf16.msra.mxu1 %v16144_v33  ;;  %v5599_v33 = vld [vmem:[#allocation2 + $0x28] sm:$0xff] }
 0x402   : > { %12896 = vmatprep.subr.bf16.mxu1 %v16182_v23  ;;  %v18409_v24 = vand.u32 4294901760, %v16560_v61 }
 0x404   : > { %v5803_v6 = vsub.f32 %v16560_v61, %v18409_v24 }
 0x405   : > { %12898 = vmatpush3.bf16.msra.mxu1 %v16182_v23  ;;  %v5630_v23 = vand.u32 4294901760, %v5598_v10 }
 0x406   : > { %12900 = vmatprep.subr.bf16.mxu1 %v16205_v55  ;;  %v5804_v25 = vand.u32 4294901760, %v5803_v6 }
 0x407   : > { %v16590_v9 = vsub.f32 %v5598_v10, %v5630_v23 }
 0x409   : > { %12902 = vmatpush3.bf16.msra.mxu1 %v16205_v55  ;;  %v16547_v55 = vpack.c.bf16 %v5627_v3, %v5624_v21  ;;  %v18408_v57 = vand.u32 4294901760, %v16590_v9 }
 0x40a   : > { %12904 = vmatprep.subr.bf16.mxu1 %v16241_v42 }
 0x40b   : > { %12912 = vmatprep.subr.bf16.mxu0 %v16547_v55  ;;  %v5810_v46 = vsub.f32 %v16590_v9, %v18408_v57 }
 0x40c   : > { %12914 = vmatpush3.bf16.msra.mxu0 %v16547_v55 }
 0x40d   : > { %12906 = vmatpush3.bf16.msra.mxu1 %v16241_v42  ;;  %v5811_v0 = vand.u32 4294901760, %v5810_v46 }
 0x410   : > { %11408 = vmatmul.mubr.f32.vlgmr.msra.gmra.mrb[0].mxu1 %v16159_v38  ;;  %v5633_v38 = vand.u32 4294901760, %v5599_v33 }
 0x411   : > { %11410 = vmatprep.mubr.f32.mxu1 %v16193_v31  ;;  %v5600_v31 = vld [vmem:[#allocation2 + $0x30] sm:$0xff] }
 0x412   : > { %v16549_v7 = vpack.c.bf16 %v5633_v38, %v5630_v23  ;;  %v16597_v2 = vsub.f32 %v5599_v33, %v5633_v38 }
 0x414   : > { %11411 = vmatmul.mubr.f32.gmra.mrb[2].mxu1 %v16196_v18  ;;  %v5601_v18 = vld [vmem:[#allocation2 + $0x38] sm:$0xff]  ;;  %12916 = vmatprep.subr.bf16.mxu0 %v16549_v7  ;;  %v18407_v35 = vand.u32 4294901760, %v16597_v2 }
 0x415   : > { %11413 = vmatprep.mubr.f32.mxu1 %v16227_v32  ;;  %v5636_v32 = vand.u32 4294901760, %v5600_v31  ;;  %12918 = vmatpush3.bf16.msra.mxu0 %v16549_v7 }
 0x416   : > { %v5817_v51 = vsub.f32 %v16597_v2, %v18407_v35 }
 0x417   : > { %v16609_v1 = vsub.f32 %v5600_v31, %v5636_v32  ;;  %v16655_v31 = vpack.c.bf16 %v5663_v40, %v5660_v19 }
 0x418   : > { %11414 = vmatmul.mubr.f32.gmra.mrb[4].mxu1 %v16235_v60  ;;  %v5639_v60 = vand.u32 4294901760, %v5601_v18  ;;  %v5818_v29 = vand.u32 4294901760, %v5817_v51 }
 0x419   : > { %11416 = vmatprep.mubr.f32.mxu1 %v16268_v43  ;;  %v5602_v43 = vld [vmem:[#allocation2 + $0x40] sm:$0xff]  ;;  %v18406_v26 = vand.u32 4294901760, %v16609_v1 }
 0x41a   : > { %v16554_v42 = vpack.c.bf16 %v5639_v60, %v5636_v32  ;;  %v5642_v11 = vand.u32 4294901760, %v5602_v43  ;;  %v16611_v14 = vsub.f32 %v5601_v18, %v5639_v60  ;;  %v16645_v3 = vpack.c.bf16 %v5818_v29, %v5811_v0 }
 0x41b   : > { %v16661_v32 = vsub.f32 %v16556_v44, %v5648_v12  ;;  %v16663_v60 = vsub.f32 %v5605_v22, %v5651_v56  ;;  %v16674_v44 = vsub.f32 %v16569_v13, %v5657_v39  ;;  %v16704_v0 = vsub.f32 %v16575_v59, %v5663_v40 }
 0x41c   : > { %11417 = vmatmul.mubr.f32.gmra.mrb[6].mxu1 %v16279_v63  ;;  %v16558_v63 = vsub.f32 %v5596_v54, %v5624_v21  ;;  %12920 = vmatprep.subr.bf16.mxu0 %v16554_v42  ;;  %v16583_v52 = vpack.c.bf16 %v5645_v5, %v5642_v11  ;;  %v18405_v41 = vand.u32 4294901760, %v16611_v14  ;;  %v16626_v4 = vsub.f32 %v5602_v43, %v5642_v11 }
 0x41d   : > { %12922 = vmatpush3.bf16.msra.mxu0 %v16554_v42  ;;  %v5824_v54 = vsub.f32 %v16609_v1, %v18406_v26  ;;  %v18403_v21 = vand.u32 4294901760, %v16634_v53  ;;  %v5783_v43 = vand.u32 4294901760, %v5782_v8  ;;  %v18402_v6 = vand.u32 4294901760, %v16661_v32  ;;  %18579 = vst [vmem:[#allocation11_spill] sm:$0xff] %v16674_v44  ;;  %18581 = vst [vmem:[#allocation7_spill] sm:$0xff] %v16704_v0 }
 0x41e   : > { %v18410_v20 = vand.u32 4294901760, %v16558_v63  ;;  %12924 = vmatprep.subr.bf16.mxu0 %v16583_v52  ;;  %v5831_v17 = vsub.f32 %v16611_v14, %v18405_v41  ;;  %v18404_v10 = vand.u32 4294901760, %v16626_v4  ;;  %v18399_v13 = vand.u32 4294901760, %v16674_v44 }
 0x41f   : > { %v5825_v33 = vand.u32 4294901760, %v5824_v54  ;;  %v5845_v18 = vsub.f32 %v16634_v53, %v18403_v21  ;;  %v5852_v12 = vsub.f32 %v16661_v32, %v18402_v6  ;;  %v16686_v8 = vpack.c.bf16 %v5790_v34, %v5783_v43 }
 0x420   : > { %v5796_v50 = vsub.f32 %v16558_v63, %v18410_v20  ;;  %v5832_v23 = vand.u32 4294901760, %v5831_v17  ;;  %v5838_v38 = vsub.f32 %v16626_v4, %v18404_v10  ;;  %v5873_v51 = vsub.f32 %v16674_v44, %v18399_v13 }
 0x421   : > { %12926 = vmatpush3.bf16.msra.mxu0 %v16583_v52  ;;  %v16728_v34 = vpack.c.bf16 %v16560_v61, %v16558_v63 }
 0x422   : > { %v5797_v28 = vand.u32 4294901760, %v5796_v50  ;;  %12928 = vmatprep.subr.bf16.mxu0 %v16600_v62  ;;  %v16666_v11 = vpack.c.bf16 %v5832_v23, %v5825_v33  ;;  %v5839_v5 = vand.u32 4294901760, %v5838_v38  ;;  %v5846_v50 = vand.u32 4294901760, %v5845_v18 }
 0x423   : > { %v5874_v17 = vand.u32 4294901760, %v5873_v51  ;;  %v18398_v33 = vand.u32 4294901760, %v16699_v47  ;;  %v18397_v23 = vand.u32 4294901760, %v16704_v0  ;;  %v16722_v18 = vpack.c.bf16 %v16580_v30, %v16567_v37 }
 0x424   : > { %v16632_v15 = vpack.c.bf16 %v5804_v25, %v5797_v28  ;;  %v18401_v28 = vand.u32 4294901760, %v16663_v60  ;;  %v16671_v25 = vsub.f32 %v16562_v16, %v5654_v48  ;;  %v16677_v22 = vpack.c.bf16 %v5846_v50, %v5839_v5 }
 0x425   : > { %12930 = vmatpush3.bf16.msra.mxu0 %v16600_v62  ;;  %v5853_v48 = vand.u32 4294901760, %v5852_v12  ;;  %v5880_v27 = vsub.f32 %v16699_v47, %v18398_v33  ;;  %v5887_v59 = vsub.f32 %v16704_v0, %v18397_v23  ;;  %v16732_v5 = vpack.c.bf16 %v16597_v2, %v16590_v9 }
 0x426   : > { %12932 = vmatprep.subr.bf16.mxu0 %v16613_v49  ;;  %18578 = vst [vmem:[#allocation10_spill] sm:$0xff] %v16671_v25  ;;  %v5859_v56 = vsub.f32 %v16663_v60, %v18401_v28  ;;  %v18400_v16 = vand.u32 4294901760, %v16671_v25  ;;  %v16736_v50 = vpack.c.bf16 %v16611_v14, %v16609_v1  ;;  %v16740_v12 = vpack.c.bf16 %v16634_v53, %v16626_v4 }
 0x427   : > { %v5881_v19 = vand.u32 4294901760, %v5880_v27  ;;  %v5888_v40 = vand.u32 4294901760, %v5887_v59 }
 0x428   : > { %v5860_v39 = vand.u32 4294901760, %v5859_v56  ;;  %v5866_v46 = vsub.f32 %v16671_v25, %v18400_v16  ;;  %v16744_v56 = vpack.c.bf16 %v16663_v60, %v16661_v32 }
 0x429   : > { %12934 = vmatpush3.bf16.msra.mxu0 %v16613_v49  ;;  %v16724_v43 = vpack.c.bf16 %v5888_v40, %v5881_v19 }
 0x42a   : > { %12936 = vmatprep.subr.bf16.mxu0 %v16655_v31  ;;  %v16707_v29 = vpack.c.bf16 %v5860_v39, %v5853_v48  ;;  %v5867_v54 = vand.u32 4294901760, %v5866_v46  ;;  %v16748_v48 = vpack.c.bf16 %v16674_v44, %v16671_v25  ;;  %v16752_v39 = vpack.c.bf16 %v16704_v0, %v16699_v47  ;;  %v9706_v46 = vld [vmem:[%s18329_s5] ss:$0 sm:$0xff] }
 0x42c   : > { %v16712_v38 = vpack.c.bf16 %v5874_v17, %v5867_v54 }
 0x42d   : > { %12938 = vmatpush3.bf16.msra.mxu0 %v16655_v31 }
 0x42e   : > { %12940 = vmatprep.subr.bf16.mxu0 %v16686_v8 }
 0x4e3   : > { %v11409_v51 = vpop.f32.mrb[0].mxu1 }
 0x4e4   : > { %v5555_v54 = vadd.f32 %v11409_v51, %v9706_v46  ;;  %v5493_v17 = vpop.f32.mrb[1].mxu1 }
 0x4e5   : > { %v5554_v27 = vadd.f32 %v9706_v46, %v5493_v17 }
 0x4e6   : > { %v5563_v59 = vmul.f32 0.5, %v5555_v54 }
 0x4e7   : > { %v5562_v19 = vmul.f32 0.5, %v5554_v27  ;;  %v11412_v40 = vpop.f32.mrb[2].mxu1 }
 0x4e8   : > { %14134 = vtanh.f32 %v5563_v59  ;;  %v5557_v23 = vadd.f32 %v11412_v40, %v9706_v46  ;;  %v5505_v33 = vpop.f32.mrb[3].mxu1 }
 0x4e9   : > { %14136 = vtanh.f32 %v5562_v19  ;;  %v5556_v13 = vadd.f32 %v9706_v46, %v5505_v33 }
 0x4ea   : > { %v5565_v16 = vmul.f32 0.5, %v5557_v23 }
 0x4eb   : > { %v5564_v28 = vmul.f32 0.5, %v5556_v13  ;;  %v11415_v6 = vpop.f32.mrb[4].mxu1 }
 0x4ec   : > { %14138 = vtanh.f32 %v5565_v16  ;;  %v5559_v21 = vadd.f32 %v11415_v6, %v9706_v46  ;;  %v5517_v10 = vpop.f32.mrb[5].mxu1 }
 0x4ed   : > { %14140 = vtanh.f32 %v5564_v28  ;;  %v5558_v41 = vadd.f32 %v9706_v46, %v5517_v10 }
 0x4ee   : > { %v5567_v26 = vmul.f32 0.5, %v5559_v21 }
 0x4ef   : > { %v5566_v51 = vmul.f32 0.5, %v5558_v41  ;;  %v11418_v35 = vpop.f32.mrb[6].mxu1 }
 0x4f0   : > { %14142 = vtanh.f32 %v5567_v26  ;;  %v5561_v54 = vadd.f32 %v11418_v35, %v9706_v46  ;;  %v5529_v17 = vpop.f32.mrb[7].mxu1 }
 0x4f1   : > { %14144 = vtanh.f32 %v5566_v51  ;;  %v5560_v27 = vadd.f32 %v9706_v46, %v5529_v17 }
 0x4f2   : > { %v14135_v40 = vpop.eup %14134  ;;  %v5569_v57 = vmul.f32 0.5, %v5561_v54 }
 0x4f3   : > { %v14137_v24 = vpop.eup %14136  ;;  %v5579_v33 = vadd.f32 1.0, %v14135_v40  ;;  %v5568_v23 = vmul.f32 0.5, %v5560_v27 }
 0x4f4   : > { %v5578_v13 = vadd.f32 1.0, %v14137_v24  ;;  %14146 = vtanh.f32 %v5569_v57 }
 0x4f5   : > { %v5587_v20 = vmul.f32 %v5579_v33, %v5563_v59  ;;  %14148 = vtanh.f32 %v5568_v23 }
 0x4f6   : > { %v14139_v6 = vpop.eup %14138  ;;  %v5586_v45 = vmul.f32 %v5578_v13, %v5562_v19 }
 0x4f7   : > { %v14141_v10 = vpop.eup %14140  ;;  %v16757_v21 = vand.u32 4294901760, %v5587_v20  ;;  %v5581_v41 = vadd.f32 1.0, %v14139_v6 }
 0x4f8   : > { %v16759_v36 = vand.u32 4294901760, %v5586_v45  ;;  %v5580_v35 = vadd.f32 1.0, %v14141_v10 }
 0x4f9   : > { %v16762_v46 = vsub.f32 %v5587_v20, %v16757_v21  ;;  %v5589_v54 = vmul.f32 %v5581_v41, %v5565_v16 }
 0x4fa   : > { %v14143_v17 = vpop.eup %14142  ;;  %v16765_v27 = vsub.f32 %v5586_v45, %v16759_v36  ;;  %v5588_v24 = vmul.f32 %v5580_v35, %v5564_v28 }
 0x4fb   : > { %v14145_v59 = vpop.eup %14144  ;;  %v18416_v40 = vand.u32 4294901760, %v16762_v46  ;;  %v16768_v19 = vand.u32 4294901760, %v5589_v54  ;;  %v5583_v33 = vadd.f32 1.0, %v14143_v17 }
 0x4fc   : > { %v16770_v13 = vand.u32 4294901760, %v5588_v24  ;;  %v5582_v6 = vadd.f32 1.0, %v14145_v59  ;;  %v18418_v10 = vand.u32 4294901760, %v16765_v27 }
 0x4fd   : > { %v5711_v20 = vsub.f32 %v16762_v46, %v18416_v40  ;;  %v16777_v16 = vsub.f32 %v5589_v54, %v16768_v19  ;;  %v5591_v45 = vmul.f32 %v5583_v33, %v5567_v26 }
 0x4fe   : > { %v14147_v28 = vpop.eup %14146  ;;  %v16780_v41 = vsub.f32 %v5588_v24, %v16770_v13  ;;  %v5590_v35 = vmul.f32 %v5582_v6, %v5566_v51  ;;  %v5701_v17 = vsub.f32 %v16765_v27, %v18418_v10 }
 0x4ff   : > { %v14149_v59 = vpop.eup %14148  ;;  %v16785_v0 = vand.u32 4294901760, %v5591_v45  ;;  %v5585_v47 = vadd.f32 1.0, %v14147_v28  ;;  %v5730_v44 = vand.u32 4294901760, %v16777_v16  ;;  %v5712_v33 = vand.u32 4294901760, %v5711_v20 }
 0x500   : > { %v16788_v40 = vand.u32 4294901760, %v5590_v35  ;;  %v5584_v54 = vadd.f32 1.0, %v14149_v59  ;;  %v5702_v25 = vand.u32 4294901760, %v5701_v17  ;;  %v5720_v26 = vand.u32 4294901760, %v16780_v41 }
 0x501   : > { %v16792_v24 = vsub.f32 %v5591_v45, %v16785_v0  ;;  %v5593_v51 = vmul.f32 %v5585_v47, %v5569_v57  ;;  %v5731_v6 = vsub.f32 %v16777_v16, %v5730_v44 }
 0x502   : > { %v16798_v10 = vsub.f32 %v5590_v35, %v16788_v40  ;;  %v5592_v28 = vmul.f32 %v5584_v54, %v5568_v23  ;;  %11451 = vmatprep.mubr.f32.mxu0 %v5702_v25  ;;  %v5721_v17 = vsub.f32 %v16780_v41, %v5720_v26 }
 0x503   : > { %v16803_v59 = vand.u32 4294901760, %v5593_v51  ;;  %11452 = vmatmul.mubr.f32.vlgmr.msra.gmra.mrb[8].mxu0 %v5712_v33  ;;  %v5750_v20 = vand.u32 4294901760, %v16792_v24  ;;  %v5732_v25 = vand.u32 4294901760, %v5731_v6 }
 0x504   : > { %v16806_v45 = vand.u32 4294901760, %v5592_v28  ;;  %12942 = vmatpush3.bf16.msra.mxu0 %v16686_v8  ;;  %v5722_v57 = vand.u32 4294901760, %v5721_v17  ;;  %v5740_v47 = vand.u32 4294901760, %v16798_v10 }
 0x505   : > { %v16811_v35 = vsub.f32 %v5593_v51, %v16803_v59  ;;  %12944 = vmatprep.subr.bf16.mxu0 %v16632_v15  ;;  %v5751_v23 = vsub.f32 %v16792_v24, %v5750_v20 }
 0x506   : > { %v16818_v54 = vsub.f32 %v5592_v28, %v16806_v45  ;;  %11454 = vmatprep.mubr.f32.mxu0 %v5722_v57  ;;  %v5741_v8 = vsub.f32 %v16798_v10, %v5740_v47 }
 0x507   : > { %11455 = vmatmul.mubr.f32.gmra.mrb[10].mxu0 %v5732_v25  ;;  %v5770_v33 = vand.u32 4294901760, %v16811_v35  ;;  %v5752_v17 = vand.u32 4294901760, %v5751_v23 }
 0x508   : > { %12946 = vmatpush3.bf16.msra.mxu0 %v16632_v15  ;;  %v5742_v51 = vand.u32 4294901760, %v5741_v8  ;;  %v5760_v6 = vand.u32 4294901760, %v16818_v54 }
 0x509   : > { %12948 = vmatprep.subr.bf16.mxu0 %v16645_v3  ;;  %v5771_v28 = vsub.f32 %v16811_v35, %v5770_v33 }
 0x50a   : > { %11457 = vmatprep.mubr.f32.mxu0 %v5742_v51  ;;  %v5761_v57 = vsub.f32 %v16818_v54, %v5760_v6  ;;  %v6603_v51 = vld [vmem:[#allocation2 + $0xd8] sm:$0xff] }
 0x50b   : > { %11458 = vmatmul.mubr.f32.gmra.mrb[12].mxu0 %v5752_v17  ;;  %v5772_v15 = vand.u32 4294901760, %v5771_v28  ;;  %v16995_v28 = vld [vmem:[#allocation2 + $0xe8] sm:$0xff] }
 0x50c   : > { %12950 = vmatpush3.bf16.msra.mxu0 %v16645_v3  ;;  %v5762_v25 = vand.u32 4294901760, %v5761_v57  ;;  %v18582_v3 = vand.u32 4294901760, %v16765_v27 }
 0x50d   : > { %12952 = vmatprep.subr.bf16.mxu0 %v16666_v11 }
 0x50e   : > { %11460 = vmatprep.mubr.f32.mxu0 %v5762_v25  ;;  %v6650_v25 = vand.u32 4294901760, %v6603_v51 }
 0x50f   : > { %11461 = vmatmul.mubr.f32.gmra.mrb[14].mxu0 %v5772_v15  ;;  %v16999_v15 = vld [vmem:[#allocation2 + $0xf0] sm:$0xff] }
 0x510   : > { %12954 = vmatpush3.bf16.msra.mxu0 %v16666_v11  ;;  %11495 = vmatprep.mubr.f32.mxu0 %v16759_v36  ;;  %v18583_v11 = vand.u32 4294901760, %v16567_v37  ;;  %v18588_v37 = vand.u32 4294901760, %v16590_v9  ;;  %v18592_v9 = vand.u32 4294901760, %v16626_v4  ;;  %v18598_v4 = vld [vmem:[#allocation11_spill] sm:$0xff] }
 0x511   : > { %12956 = vmatprep.subr.bf16.mxu0 %v16677_v22 }
 0x514   : > { %12958 = vmatpush3.bf16.msra.mxu0 %v16677_v22  ;;  %v18584_v22 = vand.u32 4294901760, %v16580_v30  ;;  %v18589_v30 = vand.u32 4294901760, %v16597_v2  ;;  %v18593_v2 = vand.u32 4294901760, %v16634_v53 }
 0x515   : > { %12960 = vmatprep.subr.bf16.mxu0 %v16707_v29 }
 0x518   : > { %12962 = vmatpush3.bf16.msra.mxu0 %v16707_v29  ;;  %v13035_v29 = vpack.c.bf16 %v18584_v22, %v18583_v11 }
 0x519   : > { %12964 = vmatprep.subr.bf16.mxu0 %v16712_v38 }
 0x51c   : > { %12966 = vmatpush3.bf16.msra.mxu0 %v16712_v38  ;;  %v18585_v38 = vand.u32 4294901760, %v16558_v63  ;;  %v18590_v63 = vand.u32 4294901760, %v16609_v1  ;;  %v18594_v1 = vand.u32 4294901760, %v16661_v32 }
 0x51d   : > { %12968 = vmatprep.subr.bf16.mxu0 %v16724_v43 }
 0x520   : > { %12970 = vmatpush3.bf16.msra.mxu0 %v16724_v43 }
 0x521   : > { %12972 = vmatprep.subr.bf16.mxu0 %v16722_v18 }
 0x523   : > { %11496 = vmatmul.mubr.f32.vlgmr.msra.gmra.mrb[8].mxu0 %v16757_v21 }
 0x524   : > { %11498 = vmatprep.mubr.f32.mxu0 %v16770_v13  ;;  %12974 = vmatpush3.bf16.msra.mxu0 %v16722_v18  ;;  %v18586_v18 = vand.u32 4294901760, %v16560_v61  ;;  %v18591_v61 = vand.u32 4294901760, %v16611_v14  ;;  %v18595_v14 = vand.u32 4294901760, %v16663_v60  ;;  %v6597_v60 = vld [vmem:[#allocation2 + $0xa8] sm:$0xff] }
 0x525   : > { %12976 = vmatprep.subr.bf16.mxu0 %v16728_v34 }
 0x526   : > { %v13039_v43 = vpack.c.bf16 %v18586_v18, %v18585_v38  ;;  %v6656_v18 = vand.u32 4294901760, %v16995_v28 }
 0x527   : > { %11499 = vmatmul.mubr.f32.gmra.mrb[10].mxu0 %v16768_v19 }
 0x528   : > { %11501 = vmatprep.mubr.f32.mxu0 %v16788_v40  ;;  %12978 = vmatpush3.bf16.msra.mxu0 %v16728_v34  ;;  %v18587_v34 = vand.u32 4294901760, %v16762_v46 }
 0x529   : > { %12980 = vmatprep.subr.bf16.mxu0 %v16732_v5 }
 0x52b   : > { %11502 = vmatmul.mubr.f32.gmra.mrb[12].mxu0 %v16785_v0 }
 0x52c   : > { %11504 = vmatprep.mubr.f32.mxu0 %v16806_v45  ;;  %12982 = vmatpush3.bf16.msra.mxu0 %v16732_v5  ;;  %v13043_v5 = vpack.c.bf16 %v18589_v30, %v18588_v37  ;;  %v6659_v30 = vand.u32 4294901760, %v16999_v15 }
 0x52d   : > { %12984 = vmatprep.subr.bf16.mxu0 %v16736_v50 }
 0x52f   : > { %11505 = vmatmul.mubr.f32.gmra.mrb[14].mxu0 %v16803_v59 }
 0x530   : > { %12986 = vmatpush3.bf16.msra.mxu0 %v16736_v50  ;;  %11539 = vmatprep.mubr.f32.mxu0 %v16765_v27  ;;  %v13047_v50 = vpack.c.bf16 %v18591_v61, %v18590_v63 }
 0x531   : > { %12988 = vmatprep.subr.bf16.mxu0 %v16740_v12 }
 0x534   : > { %12990 = vmatpush3.bf16.msra.mxu0 %v16740_v12  ;;  %v13055_v12 = vpack.c.bf16 %v18595_v14, %v18594_v1 }
 0x535   : > { %12992 = vmatprep.subr.bf16.mxu0 %v16744_v56 }
 0x538   : > { %12994 = vmatpush3.bf16.msra.mxu0 %v16744_v56  ;;  %v18596_v56 = vld [vmem:[#allocation10_spill] sm:$0xff] }
 0x539   : > { %12996 = vmatprep.subr.bf16.mxu0 %v16748_v48 }
 0x53c   : > { %12998 = vmatpush3.bf16.msra.mxu0 %v16748_v48  ;;  %v18597_v48 = vand.u32 4294901760, %v18596_v56 }
 0x53d   : > { %13000 = vmatprep.subr.bf16.mxu0 %v16752_v39 }
 0x540   : > { %13002 = vmatpush3.bf16.msra.mxu0 %v16752_v39  ;;  %v18599_v39 = vand.u32 4294901760, %v18598_v4 }
 0x541   : > { %13004 = vmatprep.subr.bf16.mxu0 %v16436_v58 }
 0x542   : > { %v13059_v53 = vpack.c.bf16 %v18599_v39, %v18597_v48 }
 0x543   : > { %11540 = vmatmul.mubr.f32.vlgmr.msra.gmra.mrb[8].mxu0 %v16762_v46  ;;  %v18600_v46 = vld [vmem:[#allocation5_spill] sm:$0xff] }
 0x544   : > { %11542 = vmatprep.mubr.f32.mxu0 %v16780_v41  ;;  %13006 = vmatpush3.bf16.msra.mxu0 %v16436_v58  ;;  %v18601_v27 = vand.u32 4294901760, %v18600_v46 }
 0x545   : > { %13008 = vmatprep.subr.bf16.mxu0 %v16547_v55 }
 0x547   : > { %11543 = vmatmul.mubr.f32.gmra.mrb[10].mxu0 %v16777_v16 }
 0x548   : > { %11545 = vmatprep.mubr.f32.mxu0 %v16798_v10  ;;  %13010 = vmatpush3.bf16.msra.mxu0 %v16547_v55  ;;  %v18602_v10 = vld [vmem:[#allocation7_spill] sm:$0xff] }
 0x549   : > { %13012 = vmatprep.subr.bf16.mxu0 %v16549_v7  ;;  %v18603_v16 = vand.u32 4294901760, %v18602_v10 }
 0x54b   : > { %11546 = vmatmul.mubr.f32.gmra.mrb[12].mxu0 %v16792_v24  ;;  %v13063_v41 = vpack.c.bf16 %v18603_v16, %v18601_v27  ;;  %v6598_v24 = vld [vmem:[#allocation2 + $0xb0] sm:$0xff] }
 0x54c   : > { %11548 = vmatprep.mubr.f32.mxu0 %v16818_v54  ;;  %13014 = vmatpush3.bf16.msra.mxu0 %v16549_v7 }
 0x54d   : > { %13016 = vmatprep.subr.bf16.mxu0 %v16554_v42 }
 0x54f   : > { %11549 = vmatmul.mubr.f32.gmra.mrb[14].mxu0 %v16811_v35  ;;  %v16985_v35 = vld [vmem:[#allocation2 + $0xd0] sm:$0xff] }
 0x550   : > { %13018 = vmatpush3.bf16.msra.mxu0 %v16554_v42  ;;  %11583 = vmatprep.mubr.f32.mxu0 %v18582_v3  ;;  %v6647_v57 = vand.u32 4294901760, %v16985_v35  ;;  %v17001_v3 = vld [vmem:[#allocation2 + $0xf8] sm:$0xff] }
 0x551   : > { %13020 = vmatprep.subr.bf16.mxu0 %v16583_v52 }
 0x554   : > { %13022 = vmatpush3.bf16.msra.mxu0 %v16583_v52 }
 0x555   : > { %13024 = vmatprep.subr.bf16.mxu0 %v16600_v62 }
 0x558   : > { %13026 = vmatpush3.bf16.msra.mxu0 %v16600_v62 }
 0x559   : > { %13028 = vmatprep.subr.bf16.mxu0 %v16613_v49 }
 0x55c   : > { %13030 = vmatpush3.bf16.msra.mxu0 %v16613_v49 }
 0x55d   : > { %13032 = vmatprep.subr.bf16.mxu0 %v16655_v31 }
 0x560   : > { %13034 = vmatpush3.bf16.msra.mxu0 %v16655_v31 }
 0x561   : > { %13036 = vmatprep.subr.bf16.mxu0 %v13035_v29 }
 0x563   : > { %11584 = vmatmul.mubr.f32.vlgmr.msra.gmra.mrb[8].mxu0 %v18587_v34 }
 0x564   : > { %11586 = vmatprep.mubr.f32.mxu0 %v5720_v26  ;;  %13038 = vmatpush3.bf16.msra.mxu0 %v13035_v29 }
 0x565   : > { %13040 = vmatprep.subr.bf16.mxu0 %v13039_v43 }
 0x567   : > { %11587 = vmatmul.mubr.f32.gmra.mrb[10].mxu0 %v5730_v44  ;;  %v13051_v44 = vpack.c.bf16 %v18593_v2, %v18592_v9 }
 0x568   : > { %11589 = vmatprep.mubr.f32.mxu0 %v5740_v47  ;;  %13042 = vmatpush3.bf16.msra.mxu0 %v13039_v43  ;;  %v6601_v47 = vld [vmem:[#allocation2 + $0xc8] sm:$0xff] }
 0x569   : > { %13044 = vmatprep.subr.bf16.mxu0 %v13043_v5 }
 0x56b   : > { %11590 = vmatmul.mubr.f32.gmra.mrb[12].mxu0 %v5750_v20 }
 0x56c   : > { %11592 = vmatprep.mubr.f32.mxu0 %v5760_v6  ;;  %13046 = vmatpush3.bf16.msra.mxu0 %v13043_v5  ;;  %v16991_v6 = vld [vmem:[#allocation2 + $0xe0] sm:$0xff]  ;;  %v6662_v5 = vand.u32 4294901760, %v17001_v3 }
 0x56d   : > { %13048 = vmatprep.subr.bf16.mxu0 %v13047_v50  ;;  %v6653_v29 = vand.u32 4294901760, %v16991_v6 }
 0x56f   : > { %11593 = vmatmul.mubr.f32.gmra.mrb[14].mxu0 %v5770_v33  ;;  %v6644_v33 = vand.u32 4294901760, %v6601_v47  ;;  %v17036_v48 = vpack.c.bf16 %v6656_v18, %v6653_v29 }
 0x570   : > { %13050 = vmatpush3.bf16.msra.mxu0 %v13047_v50  ;;  %11627 = vmatprep.mubr.f32.mxu0 %v16759_v36  ;;  %v17023_v50 = vpack.c.bf16 %v6650_v25, %v6647_v57 }
 0x571   : > { %13052 = vmatprep.subr.bf16.mxu0 %v13051_v44 }
 0x574   : > { %13054 = vmatpush3.bf16.msra.mxu0 %v13051_v44 }
 0x575   : > { %13056 = vmatprep.subr.bf16.mxu0 %v13055_v12 }
 0x578   : > { %13058 = vmatpush3.bf16.msra.mxu0 %v13055_v12 }
 0x579   : > { %13060 = vmatprep.subr.bf16.mxu0 %v13059_v53 }
 0x57c   : > { %13062 = vmatpush3.bf16.msra.mxu0 %v13059_v53 }
 0x57d   : > { %13064 = vmatprep.subr.bf16.mxu0 %v13063_v41 }
 0x580   : > { %13066 = vmatpush3.bf16.msra.mxu0 %v13063_v41 }
 0x581   : > { %13068 = vmatprep.subr.bf16.mxu0 %v16436_v58 }
 0x583   : > { %11628 = vmatmul.mubr.f32.vlgmr.msra.gmra.mrb[8].mxu0 %v16757_v21 }
 0x584   : > { %11630 = vmatprep.mubr.f32.mxu0 %v16770_v13  ;;  %13070 = vmatpush3.bf16.msra.mxu0 %v16436_v58  ;;  %v6592_v58 = vld [vmem:[#allocation2 + $0x80] sm:$0xff] }
 0x585   : > { %13072 = vmatprep.subr.bf16.mxu0 %v16547_v55 }
 0x587   : > { %11631 = vmatmul.mubr.f32.gmra.mrb[10].mxu0 %v16768_v19 }
 0x588   : > { %11633 = vmatprep.mubr.f32.mxu0 %v16788_v40  ;;  %13074 = vmatpush3.bf16.msra.mxu0 %v16547_v55  ;;  %v6593_v55 = vld [vmem:[#allocation2 + $0x88] sm:$0xff] }
 0x589   : > { %13076 = vmatprep.subr.bf16.mxu0 %v16549_v7  ;;  %v6620_v32 = vand.u32 4294901760, %v6593_v55 }
 0x58b   : > { %11634 = vmatmul.mubr.f32.gmra.mrb[12].mxu0 %v16785_v0  ;;  %v17003_v11 = vsub.f32 %v6593_v55, %v6620_v32 }
 0x58c   : > { %11636 = vmatprep.mubr.f32.mxu0 %v16806_v45  ;;  %13078 = vmatpush3.bf16.msra.mxu0 %v16549_v7  ;;  %v6617_v7 = vand.u32 4294901760, %v6592_v58 }
 0x58d   : > { %13080 = vmatprep.subr.bf16.mxu0 %v16554_v42  ;;  %v18433_v9 = vand.u32 4294901760, %v17003_v11 }
 0x58e   : > { %v16993_v17 = vsub.f32 %v6592_v58, %v6617_v7 }
 0x58f   : > { %11637 = vmatmul.mubr.f32.gmra.mrb[14].mxu0 %v16803_v59  ;;  %v6788_v41 = vsub.f32 %v17003_v11, %v18433_v9 }
 0x590   : > { %13082 = vmatpush3.bf16.msra.mxu0 %v16554_v42  ;;  %11671 = vmatprep.mubr.f32.mxu0 %v16759_v36  ;;  %v16964_v42 = vpack.c.bf16 %v6620_v32, %v6617_v7  ;;  %v6595_v36 = vld [vmem:[#allocation2 + $0x98] sm:$0xff]  ;;  %v18434_v43 = vand.u32 4294901760, %v16993_v17  ;;  %v17057_v7 = vsub.f32 %v6601_v47, %v6644_v33 }
 0x591   : > { %13084 = vmatprep.subr.bf16.mxu0 %v16583_v52  ;;  %v6789_v47 = vand.u32 4294901760, %v6788_v41  ;;  %v17122_v41 = vsub.f32 %v16999_v15, %v6659_v30 }
 0x592   : > { %v6781_v4 = vsub.f32 %v16993_v17, %v18434_v43 }
 0x593   : > { %18606 = vst [vmem:[#allocation8_spill] sm:$0xff] %v17122_v41 }
 0x594   : > { %13086 = vmatpush3.bf16.msra.mxu0 %v16583_v52  ;;  %v6594_v52 = vld [vmem:[#allocation2 + $0x90] sm:$0xff] }
 0x595   : > { %13088 = vmatprep.subr.bf16.mxu0 %v16600_v62 }
 0x598   : > { %13090 = vmatpush3.bf16.msra.mxu0 %v16600_v62  ;;  %v6596_v62 = vld [vmem:[#allocation2 + $0xa0] sm:$0xff] }
 0x599   : > { %13092 = vmatprep.subr.bf16.mxu0 %v16613_v49 }
 0x59c   : > { %13094 = vmatpush3.bf16.msra.mxu0 %v16613_v49  ;;  %v6623_v49 = vand.u32 4294901760, %v6594_v52 }
 0x59d   : > { %13096 = vmatprep.subr.bf16.mxu0 %v16655_v31 }
 0x59e   : > { %v16987_v23 = vsub.f32 %v6594_v52, %v6623_v49 }
 0x5a0   : > { %13098 = vmatpush3.bf16.msra.mxu0 %v16655_v31  ;;  %v6626_v31 = vand.u32 4294901760, %v6595_v36  ;;  %v18432_v38 = vand.u32 4294901760, %v16987_v23 }
 0x5a1   : > { %13100 = vmatprep.subr.bf16.mxu0 %v16964_v42 }
 0x5a2   : > { %v16976_v26 = vpack.c.bf16 %v6626_v31, %v6623_v49  ;;  %v16989_v54 = vsub.f32 %v6595_v36, %v6626_v31  ;;  %v6795_v63 = vsub.f32 %v16987_v23, %v18432_v38  ;;  %v18425_v49 = vand.u32 4294901760, %v17057_v7 }
 0x5a3   : > { %11672 = vmatmul.mubr.f32.vlgmr.msra.gmra.mrb[8].mxu0 %v16757_v21  ;;  %v6629_v21 = vand.u32 4294901760, %v6596_v62 }
 0x5a4   : > { %11674 = vmatprep.mubr.f32.mxu0 %v16770_v13  ;;  %13102 = vmatpush3.bf16.msra.mxu0 %v16964_v42  ;;  %v6632_v13 = vand.u32 4294901760, %v6597_v60  ;;  %v18431_v34 = vand.u32 4294901760, %v16989_v54  ;;  %v6796_v1 = vand.u32 4294901760, %v6795_v63 }
 0x5a5   : > { %13104 = vmatprep.subr.bf16.mxu0 %v16976_v26  ;;  %v17013_v37 = vsub.f32 %v6596_v62, %v6629_v21 }
 0x5a6   : > { %v16978_v20 = vpack.c.bf16 %v6632_v13, %v6629_v21  ;;  %v17020_v61 = vsub.f32 %v6597_v60, %v6632_v13  ;;  %v6802_v2 = vsub.f32 %v16989_v54, %v18431_v34 }
 0x5a7   : > { %11675 = vmatmul.mubr.f32.gmra.mrb[10].mxu0 %v16768_v19  ;;  %v6599_v19 = vld [vmem:[#allocation2 + $0xb8] sm:$0xff]  ;;  %v18430_v44 = vand.u32 4294901760, %v17013_v37 }
 0x5a8   : > { %11677 = vmatprep.mubr.f32.mxu0 %v16788_v40  ;;  %v6635_v40 = vand.u32 4294901760, %v6598_v24  ;;  %13106 = vmatpush3.bf16.msra.mxu0 %v16976_v26  ;;  %v18429_v14 = vand.u32 4294901760, %v17020_v61  ;;  %v6803_v39 = vand.u32 4294901760, %v6802_v2 }
 0x5a9   : > { %13108 = vmatprep.subr.bf16.mxu0 %v16978_v20  ;;  %v6809_v53 = vsub.f32 %v17013_v37, %v18430_v44 }
 0x5aa   : > { %v17032_v12 = vsub.f32 %v6598_v24, %v6635_v40  ;;  %v6816_v46 = vsub.f32 %v17020_v61, %v18429_v14  ;;  %v17055_v58 = vpack.c.bf16 %v6803_v39, %v6796_v1  ;;  %v17078_v24 = vpack.c.bf16 %v6662_v5, %v6659_v30 }
 0x5ab   : > { %11678 = vmatmul.mubr.f32.gmra.mrb[12].mxu0 %v16785_v0  ;;  %v6638_v0 = vand.u32 4294901760, %v6599_v19  ;;  %v6810_v55 = vand.u32 4294901760, %v6809_v53  ;;  %v17094_v39 = vsub.f32 %v16991_v6, %v6653_v29 }
 0x5ac   : > { %11680 = vmatprep.mubr.f32.mxu0 %v16806_v45  ;;  %v6600_v45 = vld [vmem:[#allocation2 + $0xc0] sm:$0xff]  ;;  %13110 = vmatpush3.bf16.msra.mxu0 %v16978_v20  ;;  %v18428_v27 = vand.u32 4294901760, %v17032_v12  ;;  %v6817_v32 = vand.u32 4294901760, %v6816_v46 }
 0x5ad   : > { %v6641_v8 = vand.u32 4294901760, %v6600_v45  ;;  %v17034_v56 = vsub.f32 %v6599_v19, %v6638_v0  ;;  %v6844_v19 = vsub.f32 %v17057_v7, %v18425_v49  ;;  %18604 = vst [vmem:[#allocation6_spill] sm:$0xff] %v17094_v39  ;;  %v18422_v6 = vand.u32 4294901760, %v17094_v39 }
 0x5ae   : > { %v6823_v52 = vsub.f32 %v17032_v12, %v18428_v27  ;;  %v17068_v31 = vpack.c.bf16 %v6817_v32, %v6810_v55  ;;  %v17127_v55 = vsub.f32 %v17001_v3, %v6662_v5 }
 0x5af   : > { %11681 = vmatmul.mubr.f32.gmra.mrb[14].mxu0 %v16803_v59  ;;  %v16983_v59 = vpack.c.bf16 %v6638_v0, %v6635_v40  ;;  %v17006_v22 = vpack.c.bf16 %v6644_v33, %v6641_v8  ;;  %v18427_v10 = vand.u32 4294901760, %v17034_v56  ;;  %v17049_v16 = vsub.f32 %v6600_v45, %v6641_v8 }
 0x5b0   : > { %v6824_v60 = vand.u32 4294901760, %v6823_v52  ;;  %v17084_v40 = vsub.f32 %v16985_v35, %v6647_v57  ;;  %v17086_v0 = vsub.f32 %v6603_v51, %v6650_v25  ;;  %v6782_v45 = vand.u32 4294901760, %v6781_v4  ;;  %18607 = vst [vmem:[#allocation12_spill] sm:$0xff] %v17127_v55 }
 0x5b1   : > { %13112 = vmatprep.subr.bf16.mxu0 %v16983_v59  ;;  %v6830_v36 = vsub.f32 %v17034_v56, %v18427_v10  ;;  %v18426_v62 = vand.u32 4294901760, %v17049_v16  ;;  %v6845_v63 = vand.u32 4294901760, %v6844_v19  ;;  %v17097_v35 = vsub.f32 %v16995_v28, %v6656_v18 }
 0x5b2   : > { %13114 = vmatpush3.bf16.msra.mxu0 %v16983_v59  ;;  %v18424_v2 = vand.u32 4294901760, %v17084_v40  ;;  %v18423_v1 = vand.u32 4294901760, %v17086_v0  ;;  %v17109_v4 = vpack.c.bf16 %v6789_v47, %v6782_v45  ;;  %v6865_v53 = vsub.f32 %v17094_v39, %v18422_v6 }
 0x5b3   : > { %13116 = vmatprep.subr.bf16.mxu0 %v17006_v22  ;;  %v6831_v21 = vand.u32 4294901760, %v6830_v36  ;;  %v6837_v13 = vsub.f32 %v17049_v16, %v18426_v62  ;;  %18605 = vst [vmem:[#allocation9_spill] sm:$0xff] %v17097_v35  ;;  %v18421_v28 = vand.u32 4294901760, %v17097_v35  ;;  %v17145_v19 = vpack.c.bf16 %v17003_v11, %v16993_v17 }
 0x5b4   : > { %v6851_v57 = vsub.f32 %v17084_v40, %v18424_v2  ;;  %v6858_v25 = vsub.f32 %v17086_v0, %v18423_v1  ;;  %v6866_v52 = vand.u32 4294901760, %v6865_v53  ;;  %v17151_v47 = vpack.c.bf16 %v16989_v54, %v16987_v23  ;;  %v9707_v53 = vld [vmem:[%s18331_s7] ss:$0 sm:$0xff] }
 0x5b5   : > { %v17089_v8 = vpack.c.bf16 %v6831_v21, %v6824_v60  ;;  %v6838_v33 = vand.u32 4294901760, %v6837_v13  ;;  %v6872_v46 = vsub.f32 %v17097_v35, %v18421_v28  ;;  %v18420_v60 = vand.u32 4294901760, %v17122_v41 }
 0x5b6   : > { %13118 = vmatpush3.bf16.msra.mxu0 %v17006_v22  ;;  %v6852_v29 = vand.u32 4294901760, %v6851_v57  ;;  %v6859_v18 = vand.u32 4294901760, %v6858_v25  ;;  %v18419_v21 = vand.u32 4294901760, %v17127_v55  ;;  %v17163_v57 = vpack.c.bf16 %v17057_v7, %v17049_v16 }
 0x5b7   : > { %13120 = vmatprep.subr.bf16.mxu0 %v17023_v50  ;;  %v17100_v51 = vpack.c.bf16 %v6845_v63, %v6838_v33  ;;  %v6873_v36 = vand.u32 4294901760, %v6872_v46  ;;  %v6879_v15 = vsub.f32 %v17122_v41, %v18420_v60  ;;  %v17155_v33 = vpack.c.bf16 %v17020_v61, %v17013_v37 }
 0x5b8   : > { %v17130_v32 = vpack.c.bf16 %v6859_v18, %v6852_v29  ;;  %v6886_v3 = vsub.f32 %v17127_v55, %v18419_v21  ;;  %v17159_v63 = vpack.c.bf16 %v17034_v56, %v17032_v12  ;;  %v17167_v25 = vpack.c.bf16 %v17086_v0, %v17084_v40 }
 0x5b9   : > { %v17135_v13 = vpack.c.bf16 %v6873_v36, %v6866_v52  ;;  %v6880_v30 = vand.u32 4294901760, %v6879_v15  ;;  %v17171_v29 = vpack.c.bf16 %v17097_v35, %v17094_v39  ;;  %v17175_v18 = vpack.c.bf16 %v17127_v55, %v17122_v41 }
 0x5ba   : > { %13122 = vmatpush3.bf16.msra.mxu0 %v17023_v50  ;;  %v6887_v5 = vand.u32 4294901760, %v6886_v3 }
 0x5bb   : > { %13124 = vmatprep.subr.bf16.mxu0 %v17036_v48 }
 0x5bc   : > { %v17147_v45 = vpack.c.bf16 %v6887_v5, %v6880_v30 }
 0x5be   : > { %13126 = vmatpush3.bf16.msra.mxu0 %v17036_v48 }
 0x5bf   : > { %13128 = vmatprep.subr.bf16.mxu0 %v17078_v24 }
 0x5c2   : > { %13130 = vmatpush3.bf16.msra.mxu0 %v17078_v24 }
 0x5c3   : > { %13132 = vmatprep.subr.bf16.mxu0 %v17109_v4 }
 0x676   : > { %v11673_v46 = vpop.f32.mrb[8].mxu0 }
 0x677   : > { %v13675_v52 = vadd.f32 %v11673_v46, %v9707_v53  ;;  %v6513_v36 = vpop.f32.mrb[9].mxu0 }
 0x678   : > { %v13676_v15 = vadd.f32 %v9707_v53, %v6513_v36 }
 0x679   : > { %v6560_v3 = vmul.f32 0.5, %v13675_v52 }
 0x67a   : > { %v6559_v30 = vmul.f32 0.5, %v13676_v15  ;;  %v11676_v5 = vpop.f32.mrb[10].mxu0 }
 0x67b   : > { %14150 = vtanh.f32 %v6560_v3  ;;  %v13677_v21 = vadd.f32 %v11676_v5, %v9707_v53  ;;  %v6525_v60 = vpop.f32.mrb[11].mxu0 }
 0x67c   : > { %14152 = vtanh.f32 %v6559_v30  ;;  %v13678_v28 = vadd.f32 %v9707_v53, %v6525_v60 }
 0x67d   : > { %v6562_v6 = vmul.f32 0.5, %v13677_v21 }
 0x67e   : > { %v6561_v1 = vmul.f32 0.5, %v13678_v28  ;;  %v11679_v2 = vpop.f32.mrb[12].mxu0 }
 0x67f   : > { %14154 = vtanh.f32 %v6562_v6  ;;  %v13679_v49 = vadd.f32 %v11679_v2, %v9707_v53  ;;  %v6537_v62 = vpop.f32.mrb[13].mxu0 }
 0x680   : > { %14156 = vtanh.f32 %v6561_v1  ;;  %v13680_v10 = vadd.f32 %v9707_v53, %v6537_v62 }
 0x681   : > { %v6564_v27 = vmul.f32 0.5, %v13679_v49 }
 0x682   : > { %v6563_v46 = vmul.f32 0.5, %v13680_v10  ;;  %v11682_v14 = vpop.f32.mrb[14].mxu0 }
 0x683   : > { %14158 = vtanh.f32 %v6564_v27  ;;  %v13681_v52 = vadd.f32 %v11682_v14, %v9707_v53  ;;  %v6549_v36 = vpop.f32.mrb[15].mxu0 }
 0x684   : > { %14160 = vtanh.f32 %v6563_v46  ;;  %v13682_v15 = vadd.f32 %v9707_v53, %v6549_v36 }
 0x685   : > { %v14151_v5 = vpop.eup %14150  ;;  %v6566_v44 = vmul.f32 0.5, %v13681_v52 }
 0x686   : > { %v14153_v34 = vpop.eup %14152  ;;  %v6576_v60 = vadd.f32 1.0, %v14151_v5  ;;  %v6565_v21 = vmul.f32 0.5, %v13682_v15 }
 0x687   : > { %v6575_v28 = vadd.f32 1.0, %v14153_v34  ;;  %14162 = vtanh.f32 %v6566_v44 }
 0x688   : > { %v6584_v38 = vmul.f32 %v6576_v60, %v6560_v3  ;;  %14164 = vtanh.f32 %v6565_v21 }
 0x689   : > { %v14155_v2 = vpop.eup %14154  ;;  %v6583_v9 = vmul.f32 %v6575_v28, %v6559_v30 }
 0x68a   : > { %v14157_v62 = vpop.eup %14156  ;;  %v17180_v49 = vand.u32 4294901760, %v6584_v38  ;;  %v6578_v10 = vadd.f32 1.0, %v14155_v2 }
 0x68b   : > { %v17182_v43 = vand.u32 4294901760, %v6583_v9  ;;  %v6577_v14 = vadd.f32 1.0, %v14157_v62 }
 0x68c   : > { %v17185_v53 = vsub.f32 %v6584_v38, %v17180_v49  ;;  %v6586_v52 = vmul.f32 %v6578_v10, %v6562_v6 }
 0x68d   : > { %v14159_v36 = vpop.eup %14158  ;;  %v17188_v15 = vsub.f32 %v6583_v9, %v17182_v43  ;;  %v6585_v34 = vmul.f32 %v6577_v14, %v6561_v1 }
 0x68e   : > { %v14161_v3 = vpop.eup %14160  ;;  %v18438_v5 = vand.u32 4294901760, %v17185_v53  ;;  %v17191_v30 = vand.u32 4294901760, %v6586_v52  ;;  %v6580_v60 = vadd.f32 1.0, %v14159_v36 }
 0x68f   : > { %v17193_v28 = vand.u32 4294901760, %v6585_v34  ;;  %v6579_v2 = vadd.f32 1.0, %v14161_v3  ;;  %v18440_v62 = vand.u32 4294901760, %v17188_v15 }
 0x690   : > { %v6710_v38 = vsub.f32 %v17185_v53, %v18438_v5  ;;  %v17200_v6 = vsub.f32 %v6586_v52, %v17191_v30  ;;  %v6588_v9 = vmul.f32 %v6580_v60, %v6564_v27 }
 0x691   : > { %v14163_v1 = vpop.eup %14162  ;;  %v17203_v10 = vsub.f32 %v6585_v34, %v17193_v28  ;;  %v6587_v14 = vmul.f32 %v6579_v2, %v6563_v46  ;;  %v6700_v36 = vsub.f32 %v17188_v15, %v18440_v62 }
 0x692   : > { %v14165_v3 = vpop.eup %14164  ;;  %v17208_v55 = vand.u32 4294901760, %v6588_v9  ;;  %v6582_v41 = vadd.f32 1.0, %v14163_v1  ;;  %v6729_v35 = vand.u32 4294901760, %v17200_v6  ;;  %v6711_v60 = vand.u32 4294901760, %v6710_v38 }
 0x693   : > { %v17211_v5 = vand.u32 4294901760, %v6587_v14  ;;  %v6581_v52 = vadd.f32 1.0, %v14165_v3  ;;  %v6701_v39 = vand.u32 4294901760, %v6700_v36  ;;  %v6719_v27 = vand.u32 4294901760, %v17203_v10 }
 0x694   : > { %v17215_v34 = vsub.f32 %v6588_v9, %v17208_v55  ;;  %v6590_v46 = vmul.f32 %v6582_v41, %v6566_v44  ;;  %v6730_v2 = vsub.f32 %v17200_v6, %v6729_v35 }
 0x695   : > { %v17221_v62 = vsub.f32 %v6587_v14, %v17211_v5  ;;  %v6589_v1 = vmul.f32 %v6581_v52, %v6565_v21  ;;  %11715 = vmatprep.mubr.f32.mxu0 %v6701_v39  ;;  %v6720_v36 = vsub.f32 %v17203_v10, %v6719_v27 }
 0x696   : > { %v17226_v3 = vand.u32 4294901760, %v6590_v46  ;;  %11716 = vmatmul.mubr.f32.vlgmr.msra.gmra.mrb[16].mxu0 %v6711_v60  ;;  %v6749_v38 = vand.u32 4294901760, %v17215_v34  ;;  %v6731_v39 = vand.u32 4294901760, %v6730_v2 }
 0x697   : > { %v17229_v9 = vand.u32 4294901760, %v6589_v1  ;;  %13134 = vmatpush3.bf16.msra.mxu0 %v17109_v4  ;;  %v6721_v44 = vand.u32 4294901760, %v6720_v36  ;;  %v6739_v41 = vand.u32 4294901760, %v17221_v62 }
 0x698   : > { %v17234_v14 = vsub.f32 %v6590_v46, %v17226_v3  ;;  %13136 = vmatprep.subr.bf16.mxu0 %v17055_v58  ;;  %v6750_v21 = vsub.f32 %v17215_v34, %v6749_v38 }
 0x699   : > { %v17241_v52 = vsub.f32 %v6589_v1, %v17229_v9  ;;  %11718 = vmatprep.mubr.f32.mxu0 %v6721_v44  ;;  %v6740_v4 = vsub.f32 %v17221_v62, %v6739_v41 }
 0x69a   : > { %11719 = vmatmul.mubr.f32.gmra.mrb[18].mxu0 %v6731_v39  ;;  %v6769_v60 = vand.u32 4294901760, %v17234_v14  ;;  %v6751_v36 = vand.u32 4294901760, %v6750_v21 }
 0x69b   : > { %13138 = vmatpush3.bf16.msra.mxu0 %v17055_v58  ;;  %v6741_v46 = vand.u32 4294901760, %v6740_v4  ;;  %v6759_v2 = vand.u32 4294901760, %v17241_v52 }
 0x69c   : > { %13140 = vmatprep.subr.bf16.mxu0 %v17068_v31  ;;  %v6770_v1 = vsub.f32 %v17234_v14, %v6769_v60 }
 0x69d   : > { %11721 = vmatprep.mubr.f32.mxu0 %v6741_v46  ;;  %v6760_v44 = vsub.f32 %v17241_v52, %v6759_v2  ;;  %v7602_v46 = vld [vmem:[#allocation2 + $0x158] sm:$0xff] }
 0x69e   : > { %11722 = vmatmul.mubr.f32.gmra.mrb[20].mxu0 %v6751_v36  ;;  %v6771_v58 = vand.u32 4294901760, %v6770_v1  ;;  %v17418_v1 = vld [vmem:[#allocation2 + $0x168] sm:$0xff] }
 0x69f   : > { %13142 = vmatpush3.bf16.msra.mxu0 %v17068_v31  ;;  %v6761_v39 = vand.u32 4294901760, %v6760_v44  ;;  %v18608_v31 = vand.u32 4294901760, %v17188_v15 }
 0x6a0   : > { %13144 = vmatprep.subr.bf16.mxu0 %v17089_v8 }
 0x6a1   : > { %11724 = vmatprep.mubr.f32.mxu0 %v6761_v39  ;;  %v7649_v39 = vand.u32 4294901760, %v7602_v46 }
 0x6a2   : > { %11725 = vmatmul.mubr.f32.gmra.mrb[22].mxu0 %v6771_v58  ;;  %v17422_v58 = vld [vmem:[#allocation2 + $0x170] sm:$0xff] }
 0x6a3   : > { %13146 = vmatpush3.bf16.msra.mxu0 %v17089_v8  ;;  %11759 = vmatprep.mubr.f32.mxu0 %v17182_v43  ;;  %v18609_v8 = vand.u32 4294901760, %v16993_v17  ;;  %v18614_v17 = vand.u32 4294901760, %v17013_v37  ;;  %v18618_v37 = vand.u32 4294901760, %v17049_v16  ;;  %v18624_v16 = vld [vmem:[#allocation9_spill] sm:$0xff] }
 0x6a4   : > { %13148 = vmatprep.subr.bf16.mxu0 %v17100_v51 }
 0x6a7   : > { %13150 = vmatpush3.bf16.msra.mxu0 %v17100_v51  ;;  %v18610_v51 = vand.u32 4294901760, %v17003_v11  ;;  %v18615_v11 = vand.u32 4294901760, %v17020_v61  ;;  %v18619_v61 = vand.u32 4294901760, %v17057_v7 }
 0x6a8   : > { %13152 = vmatprep.subr.bf16.mxu0 %v17130_v32 }
 0x6ab   : > { %13154 = vmatpush3.bf16.msra.mxu0 %v17130_v32  ;;  %v13227_v32 = vpack.c.bf16 %v18610_v51, %v18609_v8 }
 0x6ac   : > { %13156 = vmatprep.subr.bf16.mxu0 %v17135_v13 }
 0x6af   : > { %13158 = vmatpush3.bf16.msra.mxu0 %v17135_v13  ;;  %v18611_v13 = vand.u32 4294901760, %v16987_v23  ;;  %v18616_v23 = vand.u32 4294901760, %v17032_v12  ;;  %v18620_v12 = vand.u32 4294901760, %v17084_v40 }
 0x6b0   : > { %13160 = vmatprep.subr.bf16.mxu0 %v17147_v45 }
 0x6b3   : > { %13162 = vmatpush3.bf16.msra.mxu0 %v17147_v45 }
 0x6b4   : > { %13164 = vmatprep.subr.bf16.mxu0 %v17145_v19 }
 0x6b6   : > { %11760 = vmatmul.mubr.f32.vlgmr.msra.gmra.mrb[16].mxu0 %v17180_v49 }
 0x6b7   : > { %11762 = vmatprep.mubr.f32.mxu0 %v17193_v28  ;;  %13166 = vmatpush3.bf16.msra.mxu0 %v17145_v19  ;;  %v18612_v19 = vand.u32 4294901760, %v16989_v54  ;;  %v18617_v54 = vand.u32 4294901760, %v17034_v56  ;;  %v18621_v56 = vand.u32 4294901760, %v17086_v0  ;;  %v7596_v0 = vld [vmem:[#allocation2 + $0x128] sm:$0xff] }
 0x6b8   : > { %13168 = vmatprep.subr.bf16.mxu0 %v17151_v47 }
 0x6b9   : > { %v13231_v45 = vpack.c.bf16 %v18612_v19, %v18611_v13  ;;  %v7655_v19 = vand.u32 4294901760, %v17418_v1 }
 0x6ba   : > { %11763 = vmatmul.mubr.f32.gmra.mrb[18].mxu0 %v17191_v30 }
 0x6bb   : > { %11765 = vmatprep.mubr.f32.mxu0 %v17211_v5  ;;  %13170 = vmatpush3.bf16.msra.mxu0 %v17151_v47  ;;  %v18613_v47 = vand.u32 4294901760, %v17185_v53 }
 0x6bc   : > { %13172 = vmatprep.subr.bf16.mxu0 %v17155_v33 }
 0x6be   : > { %11766 = vmatmul.mubr.f32.gmra.mrb[20].mxu0 %v17208_v55 }
 0x6bf   : > { %11768 = vmatprep.mubr.f32.mxu0 %v17229_v9  ;;  %13174 = vmatpush3.bf16.msra.mxu0 %v17155_v33  ;;  %v13235_v33 = vpack.c.bf16 %v18615_v11, %v18614_v17  ;;  %v7658_v11 = vand.u32 4294901760, %v17422_v58 }
 0x6c0   : > { %13176 = vmatprep.subr.bf16.mxu0 %v17159_v63 }
 0x6c2   : > { %11769 = vmatmul.mubr.f32.gmra.mrb[22].mxu0 %v17226_v3 }
 0x6c3   : > { %13178 = vmatpush3.bf16.msra.mxu0 %v17159_v63  ;;  %11803 = vmatprep.mubr.f32.mxu0 %v17188_v15  ;;  %v13239_v63 = vpack.c.bf16 %v18617_v54, %v18616_v23 }
 0x6c4   : > { %13180 = vmatprep.subr.bf16.mxu0 %v17163_v57 }
 0x6c7   : > { %13182 = vmatpush3.bf16.msra.mxu0 %v17163_v57  ;;  %v13247_v57 = vpack.c.bf16 %v18621_v56, %v18620_v12 }
 0x6c8   : > { %13184 = vmatprep.subr.bf16.mxu0 %v17167_v25 }
 0x6cb   : > { %13186 = vmatpush3.bf16.msra.mxu0 %v17167_v25  ;;  %v18622_v25 = vld [vmem:[#allocation6_spill] sm:$0xff] }
 0x6cc   : > { %13188 = vmatprep.subr.bf16.mxu0 %v17171_v29 }
 0x6cf   : > { %13190 = vmatpush3.bf16.msra.mxu0 %v17171_v29  ;;  %v18623_v29 = vand.u32 4294901760, %v18622_v25 }
 0x6d0   : > { %13192 = vmatprep.subr.bf16.mxu0 %v17175_v18 }
 0x6d3   : > { %13194 = vmatpush3.bf16.msra.mxu0 %v17175_v18  ;;  %v18625_v18 = vand.u32 4294901760, %v18624_v16 }
 0x6d4   : > { %13196 = vmatprep.subr.bf16.mxu0 %v16964_v42 }
 0x6d5   : > { %v13251_v7 = vpack.c.bf16 %v18625_v18, %v18623_v29 }
 0x6d6   : > { %11804 = vmatmul.mubr.f32.vlgmr.msra.gmra.mrb[16].mxu0 %v17185_v53  ;;  %v18626_v53 = vld [vmem:[#allocation8_spill] sm:$0xff] }
 0x6d7   : > { %11806 = vmatprep.mubr.f32.mxu0 %v17203_v10  ;;  %13198 = vmatpush3.bf16.msra.mxu0 %v16964_v42  ;;  %v18627_v15 = vand.u32 4294901760, %v18626_v53 }
 0x6d8   : > { %13200 = vmatprep.subr.bf16.mxu0 %v16976_v26 }
 0x6da   : > { %11807 = vmatmul.mubr.f32.gmra.mrb[18].mxu0 %v17200_v6 }
 0x6db   : > { %11809 = vmatprep.mubr.f32.mxu0 %v17221_v62  ;;  %13202 = vmatpush3.bf16.msra.mxu0 %v16976_v26  ;;  %v18628_v62 = vld [vmem:[#allocation12_spill] sm:$0xff] }
 0x6dc   : > { %13204 = vmatprep.subr.bf16.mxu0 %v16978_v20  ;;  %v18629_v6 = vand.u32 4294901760, %v18628_v62 }
 0x6de   : > { %11810 = vmatmul.mubr.f32.gmra.mrb[20].mxu0 %v17215_v34  ;;  %v13255_v10 = vpack.c.bf16 %v18629_v6, %v18627_v15  ;;  %v7597_v34 = vld [vmem:[#allocation2 + $0x130] sm:$0xff] }
 0x6df   : > { %11812 = vmatprep.mubr.f32.mxu0 %v17241_v52  ;;  %13206 = vmatpush3.bf16.msra.mxu0 %v16978_v20 }
 0x6e0   : > { %13208 = vmatprep.subr.bf16.mxu0 %v16983_v59 }
 0x6e2   : > { %11813 = vmatmul.mubr.f32.gmra.mrb[22].mxu0 %v17234_v14  ;;  %v17408_v14 = vld [vmem:[#allocation2 + $0x150] sm:$0xff] }
 0x6e3   : > { %13210 = vmatpush3.bf16.msra.mxu0 %v16983_v59  ;;  %11847 = vmatprep.mubr.f32.mxu0 %v18608_v31  ;;  %v7646_v44 = vand.u32 4294901760, %v17408_v14  ;;  %v17424_v31 = vld [vmem:[#allocation2 + $0x178] sm:$0xff] }
 0x6e4   : > { %13212 = vmatprep.subr.bf16.mxu0 %v17006_v22 }
 0x6e7   : > { %13214 = vmatpush3.bf16.msra.mxu0 %v17006_v22 }
 0x6e8   : > { %13216 = vmatprep.subr.bf16.mxu0 %v17023_v50 }
 0x6eb   : > { %13218 = vmatpush3.bf16.msra.mxu0 %v17023_v50 }
 0x6ec   : > { %13220 = vmatprep.subr.bf16.mxu0 %v17036_v48 }
 0x6ef   : > { %13222 = vmatpush3.bf16.msra.mxu0 %v17036_v48 }
 0x6f0   : > { %13224 = vmatprep.subr.bf16.mxu0 %v17078_v24 }
 0x6f3   : > { %13226 = vmatpush3.bf16.msra.mxu0 %v17078_v24 }
 0x6f4   : > { %13228 = vmatprep.subr.bf16.mxu0 %v13227_v32 }
 0x6f6   : > { %11848 = vmatmul.mubr.f32.vlgmr.msra.gmra.mrb[16].mxu0 %v18613_v47 }
 0x6f7   : > { %11850 = vmatprep.mubr.f32.mxu0 %v6719_v27  ;;  %13230 = vmatpush3.bf16.msra.mxu0 %v13227_v32 }
 0x6f8   : > { %13232 = vmatprep.subr.bf16.mxu0 %v13231_v45 }
 0x6fa   : > { %11851 = vmatmul.mubr.f32.gmra.mrb[18].mxu0 %v6729_v35  ;;  %v13243_v35 = vpack.c.bf16 %v18619_v61, %v18618_v37 }
 0x6fb   : > { %11853 = vmatprep.mubr.f32.mxu0 %v6739_v41  ;;  %13234 = vmatpush3.bf16.msra.mxu0 %v13231_v45  ;;  %v7600_v41 = vld [vmem:[#allocation2 + $0x148] sm:$0xff] }
 0x6fc   : > { %13236 = vmatprep.subr.bf16.mxu0 %v13235_v33 }
 0x6fe   : > { %11854 = vmatmul.mubr.f32.gmra.mrb[20].mxu0 %v6749_v38 }
 0x6ff   : > { %11856 = vmatprep.mubr.f32.mxu0 %v6759_v2  ;;  %13238 = vmatpush3.bf16.msra.mxu0 %v13235_v33  ;;  %v17414_v2 = vld [vmem:[#allocation2 + $0x160] sm:$0xff]  ;;  %v7661_v33 = vand.u32 4294901760, %v17424_v31 }
 0x700   : > { %13240 = vmatprep.subr.bf16.mxu0 %v13239_v63  ;;  %v7652_v32 = vand.u32 4294901760, %v17414_v2 }
 0x702   : > { %11857 = vmatmul.mubr.f32.gmra.mrb[22].mxu0 %v6769_v60  ;;  %v7643_v60 = vand.u32 4294901760, %v7600_v41  ;;  %v17459_v29 = vpack.c.bf16 %v7655_v19, %v7652_v32 }
 0x703   : > { %13242 = vmatpush3.bf16.msra.mxu0 %v13239_v63  ;;  %11891 = vmatprep.mubr.f32.mxu0 %v17182_v43  ;;  %v17446_v63 = vpack.c.bf16 %v7649_v39, %v7646_v44 }
 0x704   : > { %13244 = vmatprep.subr.bf16.mxu0 %v13243_v35 }
 0x707   : > { %13246 = vmatpush3.bf16.msra.mxu0 %v13243_v35 }
 0x708   : > { %13248 = vmatprep.subr.bf16.mxu0 %v13247_v57 }
 0x70b   : > { %13250 = vmatpush3.bf16.msra.mxu0 %v13247_v57 }
 0x70c   : > { %13252 = vmatprep.subr.bf16.mxu0 %v13251_v7 }
 0x70f   : > { %13254 = vmatpush3.bf16.msra.mxu0 %v13251_v7 }
 0x710   : > { %13256 = vmatprep.subr.bf16.mxu0 %v13255_v10 }
 0x713   : > { %13258 = vmatpush3.bf16.msra.mxu0 %v13255_v10 }
 0x714   : > { %13260 = vmatprep.subr.bf16.mxu0 %v16964_v42 }
 0x716   : > { %11892 = vmatmul.mubr.f32.vlgmr.msra.gmra.mrb[16].mxu0 %v17180_v49 }
 0x717   : > { %11894 = vmatprep.mubr.f32.mxu0 %v17193_v28  ;;  %13262 = vmatpush3.bf16.msra.mxu0 %v16964_v42  ;;  %v7591_v42 = vld [vmem:[#allocation2 + $0x100] sm:$0xff] }
 0x718   : > { %13264 = vmatprep.subr.bf16.mxu0 %v16976_v26 }
 0x71a   : > { %11895 = vmatmul.mubr.f32.gmra.mrb[18].mxu0 %v17191_v30 }
 0x71b   : > { %11897 = vmatprep.mubr.f32.mxu0 %v17211_v5  ;;  %13266 = vmatpush3.bf16.msra.mxu0 %v16976_v26  ;;  %v7592_v26 = vld [vmem:[#allocation2 + $0x108] sm:$0xff] }
 0x71c   : > { %13268 = vmatprep.subr.bf16.mxu0 %v16978_v20  ;;  %v7619_v40 = vand.u32 4294901760, %v7592_v26 }
 0x71e   : > { %11898 = vmatmul.mubr.f32.gmra.mrb[20].mxu0 %v17208_v55  ;;  %v17426_v8 = vsub.f32 %v7592_v26, %v7619_v40 }
 0x71f   : > { %11900 = vmatprep.mubr.f32.mxu0 %v17229_v9  ;;  %13270 = vmatpush3.bf16.msra.mxu0 %v16978_v20  ;;  %v7616_v20 = vand.u32 4294901760, %v7591_v42 }
 0x720   : > { %13272 = vmatprep.subr.bf16.mxu0 %v16983_v59  ;;  %v18455_v37 = vand.u32 4294901760, %v17426_v8 }
 0x721   : > { %v17416_v36 = vsub.f32 %v7591_v42, %v7616_v20 }
 0x722   : > { %11901 = vmatmul.mubr.f32.gmra.mrb[22].mxu0 %v17226_v3  ;;  %v7787_v10 = vsub.f32 %v17426_v8, %v18455_v37 }
 0x723   : > { %13274 = vmatpush3.bf16.msra.mxu0 %v16983_v59  ;;  %11935 = vmatprep.mubr.f32.mxu0 %v17182_v43  ;;  %v17387_v59 = vpack.c.bf16 %v7619_v40, %v7616_v20  ;;  %v7594_v43 = vld [vmem:[#allocation2 + $0x118] sm:$0xff]  ;;  %v18456_v45 = vand.u32 4294901760, %v17416_v36  ;;  %v17480_v20 = vsub.f32 %v7600_v41, %v7643_v60 }
 0x724   : > { %13276 = vmatprep.subr.bf16.mxu0 %v17006_v22  ;;  %v7788_v41 = vand.u32 4294901760, %v7787_v10  ;;  %v17545_v10 = vsub.f32 %v17422_v58, %v7658_v11 }
 0x725   : > { %v7780_v16 = vsub.f32 %v17416_v36, %v18456_v45 }
 0x726   : > { %18632 = vst [vmem:[#allocation5_spill] sm:$0xff] %v17545_v10 }
 0x727   : > { %13278 = vmatpush3.bf16.msra.mxu0 %v17006_v22  ;;  %v7593_v22 = vld [vmem:[#allocation2 + $0x110] sm:$0xff] }
 0x728   : > { %13280 = vmatprep.subr.bf16.mxu0 %v17023_v50 }
 0x72b   : > { %13282 = vmatpush3.bf16.msra.mxu0 %v17023_v50  ;;  %v7595_v50 = vld [vmem:[#allocation2 + $0x120] sm:$0xff] }
 0x72c   : > { %13284 = vmatprep.subr.bf16.mxu0 %v17036_v48 }
 0x72f   : > { %13286 = vmatpush3.bf16.msra.mxu0 %v17036_v48  ;;  %v7622_v48 = vand.u32 4294901760, %v7593_v22 }
 0x730   : > { %13288 = vmatprep.subr.bf16.mxu0 %v17078_v24 }
 0x731   : > { %v17410_v21 = vsub.f32 %v7593_v22, %v7622_v48 }
 0x733   : > { %13290 = vmatpush3.bf16.msra.mxu0 %v17078_v24  ;;  %v7625_v24 = vand.u32 4294901760, %v7594_v43  ;;  %v18454_v13 = vand.u32 4294901760, %v17410_v21 }
 0x734   : > { %13292 = vmatprep.subr.bf16.mxu0 %v17387_v59 }
 0x735   : > { %v17399_v27 = vpack.c.bf16 %v7625_v24, %v7622_v48  ;;  %v17412_v52 = vsub.f32 %v7594_v43, %v7625_v24  ;;  %v7794_v23 = vsub.f32 %v17410_v21, %v18454_v13  ;;  %v18447_v48 = vand.u32 4294901760, %v17480_v20 }
 0x736   : > { %11936 = vmatmul.mubr.f32.vlgmr.msra.gmra.mrb[16].mxu0 %v17180_v49  ;;  %v7628_v49 = vand.u32 4294901760, %v7595_v50 }
 0x737   : > { %11938 = vmatprep.mubr.f32.mxu0 %v17193_v28  ;;  %13294 = vmatpush3.bf16.msra.mxu0 %v17387_v59  ;;  %v7631_v28 = vand.u32 4294901760, %v7596_v0  ;;  %v18453_v47 = vand.u32 4294901760, %v17412_v52  ;;  %v7795_v12 = vand.u32 4294901760, %v7794_v23 }
 0x738   : > { %13296 = vmatprep.subr.bf16.mxu0 %v17399_v27  ;;  %v17436_v17 = vsub.f32 %v7595_v50, %v7628_v49 }
 0x739   : > { %v17401_v38 = vpack.c.bf16 %v7631_v28, %v7628_v49  ;;  %v17443_v54 = vsub.f32 %v7596_v0, %v7631_v28  ;;  %v7801_v61 = vsub.f32 %v17412_v52, %v18453_v47 }
 0x73a   : > { %11939 = vmatmul.mubr.f32.gmra.mrb[18].mxu0 %v17191_v30  ;;  %v7598_v30 = vld [vmem:[#allocation2 + $0x138] sm:$0xff]  ;;  %v18452_v35 = vand.u32 4294901760, %v17436_v17 }
 0x73b   : > { %11941 = vmatprep.mubr.f32.mxu0 %v17211_v5  ;;  %v7634_v5 = vand.u32 4294901760, %v7597_v34  ;;  %13298 = vmatpush3.bf16.msra.mxu0 %v17399_v27  ;;  %v18451_v56 = vand.u32 4294901760, %v17443_v54  ;;  %v7802_v18 = vand.u32 4294901760, %v7801_v61 }
 0x73c   : > { %13300 = vmatprep.subr.bf16.mxu0 %v17401_v38  ;;  %v7808_v7 = vsub.f32 %v17436_v17, %v18452_v35 }
 0x73d   : > { %v17455_v57 = vsub.f32 %v7597_v34, %v7634_v5  ;;  %v7815_v53 = vsub.f32 %v17443_v54, %v18451_v56  ;;  %v17478_v42 = vpack.c.bf16 %v7802_v18, %v7795_v12  ;;  %v17501_v34 = vpack.c.bf16 %v7661_v33, %v7658_v11 }
 0x73e   : > { %11942 = vmatmul.mubr.f32.gmra.mrb[20].mxu0 %v17208_v55  ;;  %v7637_v55 = vand.u32 4294901760, %v7598_v30  ;;  %v7809_v26 = vand.u32 4294901760, %v7808_v7  ;;  %v17517_v18 = vsub.f32 %v17414_v2, %v7652_v32 }
 0x73f   : > { %11944 = vmatprep.mubr.f32.mxu0 %v17229_v9  ;;  %v7599_v9 = vld [vmem:[#allocation2 + $0x140] sm:$0xff]  ;;  %13302 = vmatpush3.bf16.msra.mxu0 %v17401_v38  ;;  %v18450_v15 = vand.u32 4294901760, %v17455_v57  ;;  %v7816_v40 = vand.u32 4294901760, %v7815_v53 }
 0x740   : > { %v7640_v4 = vand.u32 4294901760, %v7599_v9  ;;  %v17457_v25 = vsub.f32 %v7598_v30, %v7637_v55  ;;  %v7843_v30 = vsub.f32 %v17480_v20, %v18447_v48  ;;  %18630 = vst [vmem:[#allocation10_spill] sm:$0xff] %v17517_v18  ;;  %v18444_v2 = vand.u32 4294901760, %v17517_v18 }
 0x741   : > { %v7822_v22 = vsub.f32 %v17455_v57, %v18450_v15  ;;  %v17491_v24 = vpack.c.bf16 %v7816_v40, %v7809_v26  ;;  %v17550_v26 = vsub.f32 %v17424_v31, %v7661_v33 }
 0x742   : > { %11945 = vmatmul.mubr.f32.gmra.mrb[22].mxu0 %v17226_v3  ;;  %v17406_v3 = vpack.c.bf16 %v7637_v55, %v7634_v5  ;;  %v17429_v51 = vpack.c.bf16 %v7643_v60, %v7640_v4  ;;  %v18449_v62 = vand.u32 4294901760, %v17457_v25  ;;  %v17472_v6 = vsub.f32 %v7599_v9, %v7640_v4 }
 0x743   : > { %v7823_v0 = vand.u32 4294901760, %v7822_v22  ;;  %v17507_v5 = vsub.f32 %v17408_v14, %v7646_v44  ;;  %v17509_v55 = vsub.f32 %v7602_v46, %v7649_v39  ;;  %v7781_v9 = vand.u32 4294901760, %v7780_v16  ;;  %18633 = vst [vmem:[#allocation7_spill] sm:$0xff] %v17550_v26 }
 0x744   : > { %13304 = vmatprep.subr.bf16.mxu0 %v17406_v3  ;;  %v7829_v43 = vsub.f32 %v17457_v25, %v18449_v62  ;;  %v18448_v50 = vand.u32 4294901760, %v17472_v6  ;;  %v7844_v23 = vand.u32 4294901760, %v7843_v30  ;;  %v17520_v14 = vsub.f32 %v17418_v1, %v7655_v19 }
 0x745   : > { %13306 = vmatpush3.bf16.msra.mxu0 %v17406_v3  ;;  %v18446_v61 = vand.u32 4294901760, %v17507_v5  ;;  %v18445_v12 = vand.u32 4294901760, %v17509_v55  ;;  %v17532_v16 = vpack.c.bf16 %v7788_v41, %v7781_v9  ;;  %v7864_v7 = vsub.f32 %v17517_v18, %v18444_v2 }
 0x746   : > { %13308 = vmatprep.subr.bf16.mxu0 %v17429_v51  ;;  %v7830_v49 = vand.u32 4294901760, %v7829_v43  ;;  %v7836_v28 = vsub.f32 %v17472_v6, %v18448_v50  ;;  %18631 = vst [vmem:[#allocation11_spill] sm:$0xff] %v17520_v14  ;;  %v18443_v1 = vand.u32 4294901760, %v17520_v14  ;;  %v17568_v30 = vpack.c.bf16 %v17426_v8, %v17416_v36 }
 0x747   : > { %v7850_v44 = vsub.f32 %v17507_v5, %v18446_v61  ;;  %v7857_v39 = vsub.f32 %v17509_v55, %v18445_v12  ;;  %v7865_v22 = vand.u32 4294901760, %v7864_v7  ;;  %v17574_v41 = vpack.c.bf16 %v17412_v52, %v17410_v21  ;;  %v9709_v7 = vld [vmem:[%s18331_s7 + $0x1] ss:$0 sm:$0xff] }
 0x748   : > { %v17512_v4 = vpack.c.bf16 %v7830_v49, %v7823_v0  ;;  %v7837_v60 = vand.u32 4294901760, %v7836_v28  ;;  %v7871_v53 = vsub.f32 %v17520_v14, %v18443_v1  ;;  %v18442_v0 = vand.u32 4294901760, %v17545_v10 }
 0x749   : > { %13310 = vmatpush3.bf16.msra.mxu0 %v17429_v51  ;;  %v7851_v32 = vand.u32 4294901760, %v7850_v44  ;;  %v7858_v19 = vand.u32 4294901760, %v7857_v39  ;;  %v18441_v49 = vand.u32 4294901760, %v17550_v26  ;;  %v17586_v44 = vpack.c.bf16 %v17480_v20, %v17472_v6 }
 0x74a   : > { %13312 = vmatprep.subr.bf16.mxu0 %v17446_v63  ;;  %v17523_v46 = vpack.c.bf16 %v7844_v23, %v7837_v60  ;;  %v7872_v43 = vand.u32 4294901760, %v7871_v53  ;;  %v7878_v58 = vsub.f32 %v17545_v10, %v18442_v0  ;;  %v17578_v60 = vpack.c.bf16 %v17443_v54, %v17436_v17 }
 0x74b   : > { %v17553_v40 = vpack.c.bf16 %v7858_v19, %v7851_v32  ;;  %v7885_v31 = vsub.f32 %v17550_v26, %v18441_v49  ;;  %v17582_v23 = vpack.c.bf16 %v17457_v25, %v17455_v57  ;;  %v17590_v39 = vpack.c.bf16 %v17509_v55, %v17507_v5 }
 0x74c   : > { %v17558_v28 = vpack.c.bf16 %v7872_v43, %v7865_v22  ;;  %v7879_v11 = vand.u32 4294901760, %v7878_v58  ;;  %v17594_v32 = vpack.c.bf16 %v17520_v14, %v17517_v18  ;;  %v17598_v19 = vpack.c.bf16 %v17550_v26, %v17545_v10 }
 0x74d   : > { %13314 = vmatpush3.bf16.msra.mxu0 %v17446_v63  ;;  %v7886_v33 = vand.u32 4294901760, %v7885_v31 }
 0x74e   : > { %13316 = vmatprep.subr.bf16.mxu0 %v17459_v29 }
 0x74f   : > { %v17570_v9 = vpack.c.bf16 %v7886_v33, %v7879_v11 }
 0x751   : > { %13318 = vmatpush3.bf16.msra.mxu0 %v17459_v29 }
 0x752   : > { %13320 = vmatprep.subr.bf16.mxu0 %v17501_v34 }
 0x755   : > { %13322 = vmatpush3.bf16.msra.mxu0 %v17501_v34 }
 0x756   : > { %13324 = vmatprep.subr.bf16.mxu0 %v17532_v16 }
 0x809   : > { %v11937_v53 = vpop.f32.mrb[16].mxu0 }
 0x80a   : > { %v13683_v22 = vadd.f32 %v11937_v53, %v9709_v7  ;;  %v7512_v43 = vpop.f32.mrb[17].mxu0 }
 0x80b   : > { %v13684_v58 = vadd.f32 %v9709_v7, %v7512_v43 }
 0x80c   : > { %v7559_v31 = vmul.f32 0.5, %v13683_v22 }
 0x80d   : > { %v7558_v11 = vmul.f32 0.5, %v13684_v58  ;;  %v11940_v33 = vpop.f32.mrb[18].mxu0 }
 0x80e   : > { %14166 = vtanh.f32 %v7559_v31  ;;  %v13685_v49 = vadd.f32 %v11940_v33, %v9709_v7  ;;  %v7524_v0 = vpop.f32.mrb[19].mxu0 }
 0x80f   : > { %14168 = vtanh.f32 %v7558_v11  ;;  %v13686_v1 = vadd.f32 %v9709_v7, %v7524_v0 }
 0x810   : > { %v7561_v2 = vmul.f32 0.5, %v13685_v49 }
 0x811   : > { %v7560_v12 = vmul.f32 0.5, %v13686_v1  ;;  %v11943_v61 = vpop.f32.mrb[20].mxu0 }
 0x812   : > { %14170 = vtanh.f32 %v7561_v2  ;;  %v13687_v48 = vadd.f32 %v11943_v61, %v9709_v7  ;;  %v7536_v50 = vpop.f32.mrb[21].mxu0 }
 0x813   : > { %14172 = vtanh.f32 %v7560_v12  ;;  %v13688_v62 = vadd.f32 %v9709_v7, %v7536_v50 }
 0x814   : > { %v7563_v15 = vmul.f32 0.5, %v13687_v48 }
 0x815   : > { %v7562_v53 = vmul.f32 0.5, %v13688_v62  ;;  %v11946_v56 = vpop.f32.mrb[22].mxu0 }
 0x816   : > { %14174 = vtanh.f32 %v7563_v15  ;;  %v13689_v22 = vadd.f32 %v11946_v56, %v9709_v7  ;;  %v7548_v43 = vpop.f32.mrb[23].mxu0 }
 0x817   : > { %14176 = vtanh.f32 %v7562_v53  ;;  %v13690_v58 = vadd.f32 %v9709_v7, %v7548_v43 }
 0x818   : > { %v14167_v33 = vpop.eup %14166  ;;  %v7565_v35 = vmul.f32 0.5, %v13689_v22 }
 0x819   : > { %v14169_v47 = vpop.eup %14168  ;;  %v7575_v0 = vadd.f32 1.0, %v14167_v33  ;;  %v7564_v49 = vmul.f32 0.5, %v13690_v58 }
 0x81a   : > { %v7574_v1 = vadd.f32 1.0, %v14169_v47  ;;  %14178 = vtanh.f32 %v7565_v35 }
 0x81b   : > { %v7583_v13 = vmul.f32 %v7575_v0, %v7559_v31  ;;  %14180 = vtanh.f32 %v7564_v49 }
 0x81c   : > { %v14171_v61 = vpop.eup %14170  ;;  %v7582_v37 = vmul.f32 %v7574_v1, %v7558_v11 }
 0x81d   : > { %v14173_v50 = vpop.eup %14172  ;;  %v17603_v48 = vand.u32 4294901760, %v7583_v13  ;;  %v7577_v62 = vadd.f32 1.0, %v14171_v61 }
 0x81e   : > { %v17605_v45 = vand.u32 4294901760, %v7582_v37  ;;  %v7576_v56 = vadd.f32 1.0, %v14173_v50 }
 0x81f   : > { %v17608_v7 = vsub.f32 %v7583_v13, %v17603_v48  ;;  %v7585_v22 = vmul.f32 %v7577_v62, %v7561_v2 }
 0x820   : > { %v14175_v43 = vpop.eup %14174  ;;  %v17611_v58 = vsub.f32 %v7582_v37, %v17605_v45  ;;  %v7584_v47 = vmul.f32 %v7576_v56, %v7560_v12 }
 0x821   : > { %v14177_v31 = vpop.eup %14176  ;;  %v18460_v33 = vand.u32 4294901760, %v17608_v7  ;;  %v17614_v11 = vand.u32 4294901760, %v7585_v22  ;;  %v7579_v0 = vadd.f32 1.0, %v14175_v43 }
 0x822   : > { %v17616_v1 = vand.u32 4294901760, %v7584_v47  ;;  %v7578_v61 = vadd.f32 1.0, %v14177_v31  ;;  %v18462_v50 = vand.u32 4294901760, %v17611_v58 }
 0x823   : > { %v7709_v13 = vsub.f32 %v17608_v7, %v18460_v33  ;;  %v17623_v2 = vsub.f32 %v7585_v22, %v17614_v11  ;;  %v7587_v37 = vmul.f32 %v7579_v0, %v7563_v15 }
 0x824   : > { %v14179_v12 = vpop.eup %14178  ;;  %v17626_v62 = vsub.f32 %v7584_v47, %v17616_v1  ;;  %v7586_v56 = vmul.f32 %v7578_v61, %v7562_v53  ;;  %v7699_v43 = vsub.f32 %v17611_v58, %v18462_v50 }
 0x825   : > { %v14181_v31 = vpop.eup %14180  ;;  %v17631_v26 = vand.u32 4294901760, %v7587_v37  ;;  %v7581_v10 = vadd.f32 1.0, %v14179_v12  ;;  %v7728_v14 = vand.u32 4294901760, %v17623_v2  ;;  %v7710_v0 = vand.u32 4294901760, %v7709_v13 }
 0x826   : > { %v17634_v33 = vand.u32 4294901760, %v7586_v56  ;;  %v7580_v22 = vadd.f32 1.0, %v14181_v31  ;;  %v7700_v18 = vand.u32 4294901760, %v7699_v43  ;;  %v7718_v15 = vand.u32 4294901760, %v17626_v62 }
 0x827   : > { %v17638_v47 = vsub.f32 %v7587_v37, %v17631_v26  ;;  %v7589_v53 = vmul.f32 %v7581_v10, %v7565_v35  ;;  %v7729_v61 = vsub.f32 %v17623_v2, %v7728_v14 }
 0x828   : > { %v17644_v50 = vsub.f32 %v7586_v56, %v17634_v33  ;;  %v7588_v12 = vmul.f32 %v7580_v22, %v7564_v49  ;;  %11979 = vmatprep.mubr.f32.mxu0 %v7700_v18  ;;  %v7719_v43 = vsub.f32 %v17626_v62, %v7718_v15 }
 0x829   : > { %v17649_v31 = vand.u32 4294901760, %v7589_v53  ;;  %11980 = vmatmul.mubr.f32.vlgmr.msra.gmra.mrb[24].mxu0 %v7710_v0  ;;  %v7748_v13 = vand.u32 4294901760, %v17638_v47  ;;  %v7730_v18 = vand.u32 4294901760, %v7729_v61 }
 0x82a   : > { %v17652_v37 = vand.u32 4294901760, %v7588_v12  ;;  %13326 = vmatpush3.bf16.msra.mxu0 %v17532_v16  ;;  %v7720_v35 = vand.u32 4294901760, %v7719_v43  ;;  %v7738_v10 = vand.u32 4294901760, %v17644_v50 }
 0x82b   : > { %v17657_v56 = vsub.f32 %v7589_v53, %v17649_v31  ;;  %13328 = vmatprep.subr.bf16.mxu0 %v17478_v42  ;;  %v7749_v49 = vsub.f32 %v17638_v47, %v7748_v13 }
 0x82c   : > { %v17664_v22 = vsub.f32 %v7588_v12, %v17652_v37  ;;  %11982 = vmatprep.mubr.f32.mxu0 %v7720_v35  ;;  %v7739_v16 = vsub.f32 %v17644_v50, %v7738_v10 }
 0x82d   : > { %11983 = vmatmul.mubr.f32.gmra.mrb[26].mxu0 %v7730_v18  ;;  %v7768_v0 = vand.u32 4294901760, %v17657_v56  ;;  %v7750_v43 = vand.u32 4294901760, %v7749_v49 }
 0x82e   : > { %13330 = vmatpush3.bf16.msra.mxu0 %v17478_v42  ;;  %v7740_v53 = vand.u32 4294901760, %v7739_v16  ;;  %v7758_v61 = vand.u32 4294901760, %v17664_v22 }
 0x82f   : > { %13332 = vmatprep.subr.bf16.mxu0 %v17491_v24  ;;  %v7769_v12 = vsub.f32 %v17657_v56, %v7768_v0 }
 0x830   : > { %11985 = vmatprep.mubr.f32.mxu0 %v7740_v53  ;;  %v7759_v35 = vsub.f32 %v17664_v22, %v7758_v61  ;;  %v8600_v53 = vld [vmem:[%s18332_s8 + $0x58] sm:$0xff] }
 0x831   : > { %11986 = vmatmul.mubr.f32.gmra.mrb[28].mxu0 %v7750_v43  ;;  %v7770_v42 = vand.u32 4294901760, %v7769_v12  ;;  %v17896_v12 = vld [vmem:[%s18332_s8 + $0x68] sm:$0xff] }
 0x832   : > { %13334 = vmatpush3.bf16.msra.mxu0 %v17491_v24  ;;  %v7760_v18 = vand.u32 4294901760, %v7759_v35  ;;  %v17708_v24 = vld [vmem:[%s18332_s8] sm:$0xff] }
 0x833   : > { %13336 = vmatprep.subr.bf16.mxu0 %v17512_v4 }
 0x834   : > { %11988 = vmatprep.mubr.f32.mxu0 %v7760_v18  ;;  %v8646_v18 = vand.u32 4294901760, %v8600_v53 }
 0x835   : > { %11989 = vmatmul.mubr.f32.gmra.mrb[30].mxu0 %v7770_v42  ;;  %v17903_v42 = vld [vmem:[%s18332_s8 + $0x70] sm:$0xff] }
 0x836   : > { %13338 = vmatpush3.bf16.msra.mxu0 %v17512_v4  ;;  %12023 = vmatprep.mubr.f32.mxu0 %v17605_v45  ;;  %v17713_v4 = vld [vmem:[%s18332_s8 + $0x8] sm:$0xff] }
 0x837   : > { %13340 = vmatprep.subr.bf16.mxu0 %v17523_v46 }
 0x83a   : > { %13342 = vmatpush3.bf16.msra.mxu0 %v17523_v46  ;;  %v8613_v46 = vand.u32 4294901760, %v17708_v24 }
 0x83b   : > { %13344 = vmatprep.subr.bf16.mxu0 %v17553_v40 }
 0x83c   : > { %v17891_v43 = vsub.f32 %v17708_v24, %v8613_v46  ;;  %v17908_v24 = vld [vmem:[%s18332_s8 + $0x78] sm:$0xff] }
 0x83e   : > { %13346 = vmatpush3.bf16.msra.mxu0 %v17553_v40  ;;  %v8616_v40 = vand.u32 4294901760, %v17713_v4 }
 0x83f   : > { %13348 = vmatprep.subr.bf16.mxu0 %v17558_v28 }
 0x842   : > { %13350 = vmatpush3.bf16.msra.mxu0 %v17558_v28  ;;  %v17724_v28 = vpack.c.bf16 %v8616_v40, %v8613_v46  ;;  %v17913_v46 = vsub.f32 %v17713_v4, %v8616_v40  ;;  %v8658_v4 = vand.u32 4294901760, %v17908_v24 }
 0x843   : > { %13352 = vmatprep.subr.bf16.mxu0 %v17570_v9 }
 0x844   : > { %13484 = vmatprep.subr.bf16.mxu1 %v17724_v28 }
 0x845   : > { %13486 = vmatpush3.bf16.msra.mxu1 %v17724_v28 }
 0x846   : > { %13354 = vmatpush3.bf16.msra.mxu0 %v17570_v9  ;;  %v18635_v9 = vand.u32 4294901760, %v17416_v36  ;;  %v18640_v36 = vand.u32 4294901760, %v17436_v17  ;;  %v18644_v17 = vand.u32 4294901760, %v17472_v6  ;;  %v18650_v6 = vld [vmem:[#allocation11_spill] sm:$0xff] }
 0x847   : > { %13356 = vmatprep.subr.bf16.mxu0 %v17568_v30 }
 0x849   : > { %12024 = vmatmul.mubr.f32.vlgmr.msra.gmra.mrb[24].mxu0 %v17603_v48 }
 0x84a   : > { %12026 = vmatprep.mubr.f32.mxu0 %v17616_v1  ;;  %13358 = vmatpush3.bf16.msra.mxu0 %v17568_v30  ;;  %v18634_v30 = vand.u32 4294901760, %v17611_v58 }
 0x84b   : > { %13360 = vmatprep.subr.bf16.mxu0 %v17574_v41 }
 0x84d   : > { %12027 = vmatmul.mubr.f32.gmra.mrb[26].mxu0 %v17614_v11 }
 0x84e   : > { %12029 = vmatprep.mubr.f32.mxu0 %v17634_v33  ;;  %13362 = vmatpush3.bf16.msra.mxu0 %v17574_v41  ;;  %v18636_v41 = vand.u32 4294901760, %v17426_v8  ;;  %v18641_v8 = vand.u32 4294901760, %v17443_v54  ;;  %v18645_v54 = vand.u32 4294901760, %v17480_v20 }
 0x84f   : > { %13364 = vmatprep.subr.bf16.mxu0 %v17578_v60 }
 0x851   : > { %12030 = vmatmul.mubr.f32.gmra.mrb[28].mxu0 %v17631_v26 }
 0x852   : > { %12032 = vmatprep.mubr.f32.mxu0 %v17652_v37  ;;  %13366 = vmatpush3.bf16.msra.mxu0 %v17578_v60  ;;  %v13419_v60 = vpack.c.bf16 %v18636_v41, %v18635_v9 }
 0x853   : > { %13368 = vmatprep.subr.bf16.mxu0 %v17582_v23 }
 0x855   : > { %12033 = vmatmul.mubr.f32.gmra.mrb[30].mxu0 %v17649_v31 }
 0x856   : > { %13370 = vmatpush3.bf16.msra.mxu0 %v17582_v23  ;;  %12067 = vmatprep.mubr.f32.mxu0 %v17611_v58  ;;  %v18637_v23 = vand.u32 4294901760, %v17410_v21  ;;  %v18642_v21 = vand.u32 4294901760, %v17455_v57  ;;  %v18646_v57 = vand.u32 4294901760, %v17507_v5  ;;  %v8595_v5 = vld [vmem:[%s18332_s8 + $0x30] sm:$0xff] }
 0x857   : > { %13372 = vmatprep.subr.bf16.mxu0 %v17586_v44 }
 0x85a   : > { %13374 = vmatpush3.bf16.msra.mxu0 %v17586_v44  ;;  %v18638_v44 = vand.u32 4294901760, %v17412_v52  ;;  %v18643_v52 = vand.u32 4294901760, %v17457_v25  ;;  %v18647_v25 = vand.u32 4294901760, %v17509_v55  ;;  %v8596_v55 = vld [vmem:[%s18332_s8 + $0x38] sm:$0xff] }
 0x85b   : > { %13376 = vmatprep.subr.bf16.mxu0 %v17590_v39 }
 0x85c   : > { %v13439_v58 = vpack.c.bf16 %v18647_v25, %v18646_v57 }
 0x85e   : > { %13378 = vmatpush3.bf16.msra.mxu0 %v17590_v39  ;;  %v13423_v39 = vpack.c.bf16 %v18638_v44, %v18637_v23  ;;  %v18478_v23 = vand.u32 4294901760, %v17891_v43 }
 0x85f   : > { %13380 = vmatprep.subr.bf16.mxu0 %v17594_v32 }
 0x860   : > { %v8777_v25 = vsub.f32 %v17891_v43, %v18478_v23 }
 0x862   : > { %13382 = vmatpush3.bf16.msra.mxu0 %v17594_v32  ;;  %v18639_v32 = vand.u32 4294901760, %v17608_v7 }
 0x863   : > { %13384 = vmatprep.subr.bf16.mxu0 %v17598_v19 }
 0x866   : > { %13386 = vmatpush3.bf16.msra.mxu0 %v17598_v19  ;;  %v13427_v19 = vpack.c.bf16 %v18641_v8, %v18640_v36 }
 0x867   : > { %13388 = vmatprep.subr.bf16.mxu0 %v17387_v59 }
 0x869   : > { %12068 = vmatmul.mubr.f32.vlgmr.msra.gmra.mrb[24].mxu0 %v17608_v7  ;;  %v13431_v7 = vpack.c.bf16 %v18643_v52, %v18642_v21 }
 0x86a   : > { %12070 = vmatprep.mubr.f32.mxu0 %v17626_v62  ;;  %13390 = vmatpush3.bf16.msra.mxu0 %v17387_v59  ;;  %v18651_v62 = vand.u32 4294901760, %v18650_v6 }
 0x86b   : > { %13392 = vmatprep.subr.bf16.mxu0 %v17399_v27 }
 0x86d   : > { %12071 = vmatmul.mubr.f32.gmra.mrb[26].mxu0 %v17623_v2 }
 0x86e   : > { %12073 = vmatprep.mubr.f32.mxu0 %v17644_v50  ;;  %13394 = vmatpush3.bf16.msra.mxu0 %v17399_v27  ;;  %v18648_v50 = vld [vmem:[#allocation10_spill] sm:$0xff] }
 0x86f   : > { %13396 = vmatprep.subr.bf16.mxu0 %v17401_v38  ;;  %v18649_v2 = vand.u32 4294901760, %v18648_v50 }
 0x871   : > { %12074 = vmatmul.mubr.f32.gmra.mrb[28].mxu0 %v17638_v47  ;;  %v13443_v20 = vpack.c.bf16 %v18651_v62, %v18649_v2 }
 0x872   : > { %12076 = vmatprep.mubr.f32.mxu0 %v17664_v22  ;;  %13398 = vmatpush3.bf16.msra.mxu0 %v17401_v38 }
 0x873   : > { %13400 = vmatprep.subr.bf16.mxu0 %v17406_v3 }
 0x875   : > { %12077 = vmatmul.mubr.f32.gmra.mrb[30].mxu0 %v17657_v56 }
 0x876   : > { %13402 = vmatpush3.bf16.msra.mxu0 %v17406_v3  ;;  %12111 = vmatprep.mubr.f32.mxu0 %v18634_v30 }
 0x877   : > { %13404 = vmatprep.subr.bf16.mxu0 %v17429_v51 }
 0x87a   : > { %13406 = vmatpush3.bf16.msra.mxu0 %v17429_v51 }
 0x87b   : > { %13408 = vmatprep.subr.bf16.mxu0 %v17446_v63 }
 0x87e   : > { %13410 = vmatpush3.bf16.msra.mxu0 %v17446_v63 }
 0x87f   : > { %13412 = vmatprep.subr.bf16.mxu0 %v17459_v29 }
 0x882   : > { %13414 = vmatpush3.bf16.msra.mxu0 %v17459_v29 }
 0x883   : > { %13416 = vmatprep.subr.bf16.mxu0 %v17501_v34 }
 0x886   : > { %13418 = vmatpush3.bf16.msra.mxu0 %v17501_v34 }
 0x887   : > { %13420 = vmatprep.subr.bf16.mxu0 %v13419_v60 }
 0x889   : > { %12112 = vmatmul.mubr.f32.vlgmr.msra.gmra.mrb[24].mxu0 %v18639_v32  ;;  %v8655_v32 = vand.u32 4294901760, %v17903_v42 }
 0x88a   : > { %12114 = vmatprep.mubr.f32.mxu0 %v7718_v15  ;;  %13422 = vmatpush3.bf16.msra.mxu0 %v13419_v60  ;;  %v18652_v15 = vld [vmem:[#allocation5_spill] sm:$0xff]  ;;  %v8652_v60 = vand.u32 4294901760, %v17896_v12 }
 0x88b   : > { %13424 = vmatprep.subr.bf16.mxu0 %v13423_v39  ;;  %v18653_v47 = vand.u32 4294901760, %v18652_v15 }
 0x88d   : > { %12115 = vmatmul.mubr.f32.gmra.mrb[26].mxu0 %v7728_v14  ;;  %v13435_v14 = vpack.c.bf16 %v18645_v54, %v18644_v17 }
 0x88e   : > { %12117 = vmatprep.mubr.f32.mxu0 %v7738_v10  ;;  %13426 = vmatpush3.bf16.msra.mxu0 %v13423_v39 }
 0x88f   : > { %13428 = vmatprep.subr.bf16.mxu0 %v13427_v19 }
 0x891   : > { %12118 = vmatmul.mubr.f32.gmra.mrb[28].mxu0 %v7748_v13  ;;  %v18654_v13 = vld [vmem:[#allocation7_spill] sm:$0xff] }
 0x892   : > { %12120 = vmatprep.mubr.f32.mxu0 %v7758_v61  ;;  %13430 = vmatpush3.bf16.msra.mxu0 %v13427_v19  ;;  %v18655_v10 = vand.u32 4294901760, %v18654_v13  ;;  %v17886_v61 = vld [vmem:[%s18332_s8 + $0x60] sm:$0xff]  ;;  %v18477_v19 = vand.u32 4294901760, %v17913_v46 }
 0x893   : > { %13432 = vmatprep.subr.bf16.mxu0 %v13431_v7  ;;  %v8649_v9 = vand.u32 4294901760, %v17886_v61 }
 0x894   : > { %v13447_v56 = vpack.c.bf16 %v18655_v10, %v18653_v47  ;;  %v8784_v15 = vsub.f32 %v17913_v46, %v18477_v19 }
 0x895   : > { %12121 = vmatmul.mubr.f32.gmra.mrb[30].mxu0 %v7768_v0  ;;  %v17946_v57 = vpack.c.bf16 %v8652_v60, %v8649_v9 }
 0x896   : > { %13434 = vmatpush3.bf16.msra.mxu0 %v13431_v7  ;;  %12155 = vmatprep.mubr.f32.mxu0 %v17605_v45 }
 0x897   : > { %13436 = vmatprep.subr.bf16.mxu0 %v13435_v14 }
 0x89a   : > { %13438 = vmatpush3.bf16.msra.mxu0 %v13435_v14 }
 0x89b   : > { %13440 = vmatprep.subr.bf16.mxu0 %v13439_v58 }
 0x89e   : > { %13442 = vmatpush3.bf16.msra.mxu0 %v13439_v58 }
 0x89f   : > { %13444 = vmatprep.subr.bf16.mxu0 %v13443_v20 }
 0x8a2   : > { %13446 = vmatpush3.bf16.msra.mxu0 %v13443_v20 }
 0x8a3   : > { %13448 = vmatprep.subr.bf16.mxu0 %v13447_v56 }
 0x8a6   : > { %13450 = vmatpush3.bf16.msra.mxu0 %v13447_v56 }
 0x8a7   : > { %13452 = vmatprep.subr.bf16.mxu0 %v17387_v59 }
 0x8a9   : > { %12156 = vmatmul.mubr.f32.vlgmr.msra.gmra.mrb[24].mxu0 %v17603_v48 }
 0x8aa   : > { %12158 = vmatprep.mubr.f32.mxu0 %v17616_v1  ;;  %13454 = vmatpush3.bf16.msra.mxu0 %v17387_v59  ;;  %v8591_v59 = vld [vmem:[%s18332_s8 + $0x10] sm:$0xff] }
 0x8ab   : > { %13456 = vmatprep.subr.bf16.mxu0 %v17399_v27 }
 0x8ad   : > { %12159 = vmatmul.mubr.f32.gmra.mrb[26].mxu0 %v17614_v11 }
 0x8ae   : > { %12161 = vmatprep.mubr.f32.mxu0 %v17634_v33  ;;  %13458 = vmatpush3.bf16.msra.mxu0 %v17399_v27  ;;  %v8592_v27 = vld [vmem:[%s18332_s8 + $0x18] sm:$0xff] }
 0x8af   : > { %13460 = vmatprep.subr.bf16.mxu0 %v17401_v38 }
 0x8b1   : > { %12162 = vmatmul.mubr.f32.gmra.mrb[28].mxu0 %v17631_v26 }
 0x8b2   : > { %12164 = vmatprep.mubr.f32.mxu0 %v17652_v37  ;;  %13462 = vmatpush3.bf16.msra.mxu0 %v17401_v38  ;;  %v8593_v38 = vld [vmem:[%s18332_s8 + $0x20] sm:$0xff] }
 0x8b3   : > { %13464 = vmatprep.subr.bf16.mxu0 %v17406_v3 }
 0x8b5   : > { %12165 = vmatmul.mubr.f32.gmra.mrb[30].mxu0 %v17649_v31 }
 0x8b6   : > { %13466 = vmatpush3.bf16.msra.mxu0 %v17406_v3  ;;  %12199 = vmatprep.mubr.f32.mxu0 %v17605_v45  ;;  %v8619_v3 = vand.u32 4294901760, %v8591_v59  ;;  %v8594_v45 = vld [vmem:[%s18332_s8 + $0x28] sm:$0xff] }
 0x8b7   : > { %13468 = vmatprep.subr.bf16.mxu0 %v17429_v51 }
 0x8b8   : > { %v17876_v49 = vsub.f32 %v8591_v59, %v8619_v3 }
 0x8ba   : > { %13470 = vmatpush3.bf16.msra.mxu0 %v17429_v51  ;;  %v8622_v51 = vand.u32 4294901760, %v8592_v27  ;;  %v18476_v41 = vand.u32 4294901760, %v17876_v49 }
 0x8bb   : > { %13472 = vmatprep.subr.bf16.mxu0 %v17446_v63 }
 0x8bc   : > { %v17878_v22 = vsub.f32 %v8592_v27, %v8622_v51  ;;  %v8791_v40 = vsub.f32 %v17876_v49, %v18476_v41 }
 0x8be   : > { %13474 = vmatpush3.bf16.msra.mxu0 %v17446_v63  ;;  %v8625_v63 = vand.u32 4294901760, %v8593_v38  ;;  %v18475_v44 = vand.u32 4294901760, %v17878_v22  ;;  %v8792_v7 = vand.u32 4294901760, %v8791_v40 }
 0x8bf   : > { %13476 = vmatprep.subr.bf16.mxu0 %v17459_v29 }
 0x8c0   : > { %v17923_v39 = vsub.f32 %v8593_v38, %v8625_v63  ;;  %v8798_v21 = vsub.f32 %v17878_v22, %v18475_v44 }
 0x8c2   : > { %13478 = vmatpush3.bf16.msra.mxu0 %v17459_v29  ;;  %v8628_v29 = vand.u32 4294901760, %v8594_v45  ;;  %v18474_v52 = vand.u32 4294901760, %v17923_v39  ;;  %v8799_v58 = vand.u32 4294901760, %v8798_v21 }
 0x8c3   : > { %13480 = vmatprep.subr.bf16.mxu0 %v17501_v34 }
 0x8c4   : > { %v17930_v36 = vsub.f32 %v8594_v45, %v8628_v29  ;;  %v8805_v50 = vsub.f32 %v17923_v39, %v18474_v52  ;;  %v17965_v47 = vpack.c.bf16 %v8799_v58, %v8792_v7  ;;  %v18004_v58 = vsub.f32 %v17886_v61, %v8649_v9 }
 0x8c6   : > { %13482 = vmatpush3.bf16.msra.mxu0 %v17501_v34  ;;  %v17850_v34 = vpack.c.bf16 %v8622_v51, %v8619_v3  ;;  %v18473_v17 = vand.u32 4294901760, %v17930_v36  ;;  %v8806_v13 = vand.u32 4294901760, %v8805_v50  ;;  %18656 = vst [vmem:[#allocation6_spill] sm:$0xff] %v18004_v58  ;;  %v18466_v61 = vand.u32 4294901760, %v18004_v58 }
 0x8c8   : > { %13488 = vmatprep.subr.bf16.mxu1 %v17850_v34  ;;  %v8812_v2 = vsub.f32 %v17930_v36, %v18473_v17  ;;  %v8861_v50 = vsub.f32 %v18004_v58, %v18466_v61 }
 0x8c9   : > { %12200 = vmatmul.mubr.f32.vlgmr.msra.gmra.mrb[24].mxu0 %v17603_v48  ;;  %v8631_v48 = vand.u32 4294901760, %v8595_v5  ;;  %13490 = vmatpush3.bf16.msra.mxu1 %v17850_v34 }
 0x8ca   : > { %12202 = vmatprep.mubr.f32.mxu0 %v17616_v1  ;;  %v8597_v1 = vld [vmem:[%s18332_s8 + $0x40] sm:$0xff]  ;;  %v8813_v56 = vand.u32 4294901760, %v8812_v2 }
 0x8cb   : > { %v8637_v16 = vand.u32 4294901760, %v8597_v1  ;;  %v17942_v54 = vsub.f32 %v8595_v5, %v8631_v48  ;;  %v17988_v5 = vpack.c.bf16 %v8658_v4, %v8655_v32 }
 0x8cc   : > { %v17978_v51 = vpack.c.bf16 %v8813_v56, %v8806_v13  ;;  %v18037_v13 = vsub.f32 %v17908_v24, %v8658_v4 }
 0x8cd   : > { %12203 = vmatmul.mubr.f32.gmra.mrb[26].mxu0 %v17614_v11  ;;  %v18472_v6 = vand.u32 4294901760, %v17942_v54  ;;  %v17959_v20 = vsub.f32 %v8597_v1, %v8637_v16  ;;  %v8778_v1 = vand.u32 4294901760, %v8777_v25 }
 0x8ce   : > { %12205 = vmatprep.mubr.f32.mxu0 %v17634_v33  ;;  %v8634_v33 = vand.u32 4294901760, %v8596_v55  ;;  %18659 = vst [vmem:[#allocation12_spill] sm:$0xff] %v18037_v13 }
 0x8cf   : > { %v8819_v59 = vsub.f32 %v17942_v54, %v18472_v6  ;;  %v18470_v38 = vand.u32 4294901760, %v17959_v20 }
 0x8d0   : > { %v17863_v11 = vpack.c.bf16 %v8634_v33, %v8631_v48  ;;  %v17944_v14 = vsub.f32 %v8596_v55, %v8634_v33  ;;  %v17996_v33 = vsub.f32 %v8600_v53, %v8646_v18 }
 0x8d1   : > { %12206 = vmatmul.mubr.f32.gmra.mrb[28].mxu0 %v17631_v26  ;;  %v17858_v26 = vpack.c.bf16 %v8628_v29, %v8625_v63  ;;  %v8820_v45 = vand.u32 4294901760, %v8819_v59  ;;  %v8833_v29 = vsub.f32 %v17959_v20, %v18470_v38  ;;  %v8862_v59 = vand.u32 4294901760, %v8861_v50  ;;  %v9711_v50 = vld [vmem:[%s18331_s7 + $0x2] ss:$0 sm:$0xff] }
 0x8d2   : > { %12208 = vmatprep.mubr.f32.mxu0 %v17652_v37  ;;  %v17874_v37 = vld [vmem:[%s18332_s8 + $0x50] sm:$0xff]  ;;  %v18471_v62 = vand.u32 4294901760, %v17944_v14  ;;  %v18467_v7 = vand.u32 4294901760, %v17996_v33 }
 0x8d3   : > { %13492 = vmatprep.subr.bf16.mxu1 %v17858_v26  ;;  %v8643_v35 = vand.u32 4294901760, %v17874_v37 }
 0x8d4   : > { %13494 = vmatpush3.bf16.msra.mxu1 %v17858_v26  ;;  %v8826_v27 = vsub.f32 %v17944_v14, %v18471_v62 }
 0x8d5   : > { %12209 = vmatmul.mubr.f32.gmra.mrb[30].mxu0 %v17649_v31  ;;  %v8598_v31 = vld [vmem:[%s18332_s8 + $0x48] sm:$0xff]  ;;  %13496 = vmatprep.subr.bf16.mxu1 %v17863_v11  ;;  %v17933_v8 = vpack.c.bf16 %v8646_v18, %v8643_v35  ;;  %v17994_v48 = vsub.f32 %v17874_v37, %v8643_v35  ;;  %v18007_v37 = vsub.f32 %v17896_v12, %v8652_v60 }
 0x8d6   : > { %v8640_v0 = vand.u32 4294901760, %v8598_v31  ;;  %v8827_v63 = vand.u32 4294901760, %v8826_v27  ;;  %v8854_v18 = vsub.f32 %v17996_v33, %v18467_v7 }
 0x8d7   : > { %v18468_v21 = vand.u32 4294901760, %v17994_v48  ;;  %18657 = vst [vmem:[#allocation9_spill] sm:$0xff] %v18007_v37  ;;  %v18465_v12 = vand.u32 4294901760, %v18007_v37 }
 0x8d8   : > { %v17916_v30 = vpack.c.bf16 %v8640_v0, %v8637_v16  ;;  %13498 = vmatpush3.bf16.msra.mxu1 %v17863_v11  ;;  %v17967_v10 = vsub.f32 %v8598_v31, %v8640_v0  ;;  %v8785_v31 = vand.u32 4294901760, %v8784_v15  ;;  %v17999_v16 = vpack.c.bf16 %v8827_v63, %v8820_v45 }
 0x8d9   : > { %v8834_v0 = vand.u32 4294901760, %v8833_v29  ;;  %v8847_v35 = vsub.f32 %v17994_v48, %v18468_v21  ;;  %v8855_v60 = vand.u32 4294901760, %v8854_v18  ;;  %v8868_v2 = vsub.f32 %v18007_v37, %v18465_v12 }
 0x8da   : > { %13500 = vmatprep.subr.bf16.mxu1 %v17916_v30  ;;  %v18469_v3 = vand.u32 4294901760, %v17967_v10  ;;  %v18019_v25 = vpack.c.bf16 %v8785_v31, %v8778_v1  ;;  %v18032_v15 = vsub.f32 %v17903_v42, %v8655_v32  ;;  %v18463_v63 = vand.u32 4294901760, %v18037_v13 }
 0x8db   : > { %v8848_v9 = vand.u32 4294901760, %v8847_v35  ;;  %v8869_v27 = vand.u32 4294901760, %v8868_v2  ;;  %v18061_v31 = vpack.c.bf16 %v17878_v22, %v17876_v49  ;;  %v18073_v35 = vpack.c.bf16 %v17967_v10, %v17959_v20 }
 0x8dc   : > { %13502 = vmatpush3.bf16.msra.mxu1 %v17916_v30  ;;  %v8840_v55 = vsub.f32 %v17967_v10, %v18469_v3  ;;  %18658 = vst [vmem:[#allocation8_spill] sm:$0xff] %v18032_v15  ;;  %v18464_v45 = vand.u32 4294901760, %v18032_v15  ;;  %v8882_v24 = vsub.f32 %v18037_v13, %v18463_v63  ;;  %v18077_v18 = vpack.c.bf16 %v17996_v33, %v17994_v48 }
 0x8dd   : > { %13504 = vmatprep.subr.bf16.mxu1 %v17933_v8  ;;  %v18040_v56 = vpack.c.bf16 %v8855_v60, %v8848_v9  ;;  %v18045_v29 = vpack.c.bf16 %v8869_v27, %v8862_v59  ;;  %v18081_v9 = vpack.c.bf16 %v18007_v37, %v18004_v58  ;;  %v18085_v60 = vpack.c.bf16 %v18037_v13, %v18032_v15 }
 0x8de   : > { %v8841_v40 = vand.u32 4294901760, %v8840_v55  ;;  %v8875_v42 = vsub.f32 %v18032_v15, %v18464_v45  ;;  %v8883_v4 = vand.u32 4294901760, %v8882_v24  ;;  %v18055_v55 = vpack.c.bf16 %v17913_v46, %v17891_v43 }
 0x8e0   : > { %13506 = vmatpush3.bf16.msra.mxu1 %v17933_v8  ;;  %v18010_v53 = vpack.c.bf16 %v8841_v40, %v8834_v0  ;;  %v8876_v32 = vand.u32 4294901760, %v8875_v42  ;;  %v18065_v0 = vpack.c.bf16 %v17930_v36, %v17923_v39  ;;  %v18069_v40 = vpack.c.bf16 %v17944_v14, %v17942_v54 }
 0x8e1   : > { %13508 = vmatprep.subr.bf16.mxu1 %v17946_v57 }
 0x8e2   : > { %v18057_v1 = vpack.c.bf16 %v8883_v4, %v8876_v32 }
 0x8e4   : > { %13510 = vmatpush3.bf16.msra.mxu1 %v17946_v57 }
 0x8e5   : > { %13512 = vmatprep.subr.bf16.mxu1 %v17988_v5 }
 0x8e8   : > { %13514 = vmatpush3.bf16.msra.mxu1 %v17988_v5 }
 0x8e9   : > { %13516 = vmatprep.subr.bf16.mxu1 %v18019_v25 }
 0x99c   : > { %v12201_v2 = vpop.f32.mrb[24].mxu0 }
 0x99d   : > { %v13691_v59 = vadd.f32 %v12201_v2, %v9711_v50  ;;  %v8511_v27 = vpop.f32.mrb[25].mxu0 }
 0x99e   : > { %v13692_v42 = vadd.f32 %v9711_v50, %v8511_v27 }
 0x99f   : > { %v8558_v24 = vmul.f32 0.5, %v13691_v59 }
 0x9a0   : > { %v8557_v32 = vmul.f32 0.5, %v13692_v42  ;;  %v12204_v4 = vpop.f32.mrb[26].mxu0 }
 0x9a1   : > { %14182 = vtanh.f32 %v8558_v24  ;;  %v13693_v63 = vadd.f32 %v12204_v4, %v9711_v50  ;;  %v8523_v45 = vpop.f32.mrb[27].mxu0 }
 0x9a2   : > { %14184 = vtanh.f32 %v8557_v32  ;;  %v13694_v12 = vadd.f32 %v9711_v50, %v8523_v45 }
 0x9a3   : > { %v8560_v61 = vmul.f32 0.5, %v13693_v63 }
 0x9a4   : > { %v8559_v7 = vmul.f32 0.5, %v13694_v12  ;;  %v12207_v21 = vpop.f32.mrb[28].mxu0 }
 0x9a5   : > { %14186 = vtanh.f32 %v8560_v61  ;;  %v13695_v3 = vadd.f32 %v12207_v21, %v9711_v50  ;;  %v8535_v38 = vpop.f32.mrb[29].mxu0 }
 0x9a6   : > { %14188 = vtanh.f32 %v8559_v7  ;;  %v13696_v62 = vadd.f32 %v9711_v50, %v8535_v38 }
 0x9a7   : > { %v8562_v6 = vmul.f32 0.5, %v13695_v3 }
 0x9a8   : > { %v8561_v2 = vmul.f32 0.5, %v13696_v62  ;;  %v12210_v17 = vpop.f32.mrb[30].mxu0 }
 0x9a9   : > { %14190 = vtanh.f32 %v8562_v6  ;;  %v13697_v59 = vadd.f32 %v12210_v17, %v9711_v50  ;;  %v8547_v27 = vpop.f32.mrb[31].mxu0 }
 0x9aa   : > { %14192 = vtanh.f32 %v8561_v2  ;;  %v13698_v42 = vadd.f32 %v9711_v50, %v8547_v27 }
 0x9ab   : > { %v14183_v4 = vpop.eup %14182  ;;  %v8564_v52 = vmul.f32 0.5, %v13697_v59 }
 0x9ac   : > { %v14185_v44 = vpop.eup %14184  ;;  %v8574_v45 = vadd.f32 1.0, %v14183_v4  ;;  %v8563_v63 = vmul.f32 0.5, %v13698_v42 }
 0x9ad   : > { %v8573_v12 = vadd.f32 1.0, %v14185_v44  ;;  %14194 = vtanh.f32 %v8564_v52 }
 0x9ae   : > { %v8582_v41 = vmul.f32 %v8574_v45, %v8558_v24  ;;  %14196 = vtanh.f32 %v8563_v63 }
 0x9af   : > { %v14187_v21 = vpop.eup %14186  ;;  %v8581_v19 = vmul.f32 %v8573_v12, %v8557_v32 }
 0x9b0   : > { %v14189_v38 = vpop.eup %14188  ;;  %v18090_v3 = vand.u32 4294901760, %v8582_v41  ;;  %v8576_v62 = vadd.f32 1.0, %v14187_v21 }
 0x9b1   : > { %v18092_v23 = vand.u32 4294901760, %v8581_v19  ;;  %v8575_v17 = vadd.f32 1.0, %v14189_v38 }
 0x9b2   : > { %v18095_v50 = vsub.f32 %v8582_v41, %v18090_v3  ;;  %v8584_v59 = vmul.f32 %v8576_v62, %v8560_v61 }
 0x9b3   : > { %v14191_v27 = vpop.eup %14190  ;;  %v18098_v42 = vsub.f32 %v8581_v19, %v18092_v23  ;;  %v8583_v44 = vmul.f32 %v8575_v17, %v8559_v7 }
 0x9b4   : > { %v14193_v24 = vpop.eup %14192  ;;  %v18482_v4 = vand.u32 4294901760, %v18095_v50  ;;  %v18101_v32 = vand.u32 4294901760, %v8584_v59  ;;  %v8578_v45 = vadd.f32 1.0, %v14191_v27 }
 0x9b5   : > { %v18103_v12 = vand.u32 4294901760, %v8583_v44  ;;  %v8577_v21 = vadd.f32 1.0, %v14193_v24  ;;  %v18484_v38 = vand.u32 4294901760, %v18098_v42 }
 0x9b6   : > { %v8706_v41 = vsub.f32 %v18095_v50, %v18482_v4  ;;  %v18110_v61 = vsub.f32 %v8584_v59, %v18101_v32  ;;  %v8586_v19 = vmul.f32 %v8578_v45, %v8562_v6 }
 0x9b7   : > { %v14195_v7 = vpop.eup %14194  ;;  %v18113_v62 = vsub.f32 %v8583_v44, %v18103_v12  ;;  %v8585_v17 = vmul.f32 %v8577_v21, %v8561_v2  ;;  %v8696_v27 = vsub.f32 %v18098_v42, %v18484_v38 }
 0x9b8   : > { %v14197_v24 = vpop.eup %14196  ;;  %v18118_v13 = vand.u32 4294901760, %v8586_v19  ;;  %v8580_v15 = vadd.f32 1.0, %v14195_v7  ;;  %v8725_v37 = vand.u32 4294901760, %v18110_v61  ;;  %v8707_v45 = vand.u32 4294901760, %v8706_v41 }
 0x9b9   : > { %v18121_v4 = vand.u32 4294901760, %v8585_v17  ;;  %v8579_v59 = vadd.f32 1.0, %v14197_v24  ;;  %v8697_v58 = vand.u32 4294901760, %v8696_v27  ;;  %v8715_v6 = vand.u32 4294901760, %v18113_v62 }
 0x9ba   : > { %v18125_v44 = vsub.f32 %v8586_v19, %v18118_v13  ;;  %v8588_v2 = vmul.f32 %v8580_v15, %v8564_v52  ;;  %v8726_v21 = vsub.f32 %v18110_v61, %v8725_v37 }
 0x9bb   : > { %v18131_v38 = vsub.f32 %v8585_v17, %v18121_v4  ;;  %v8587_v7 = vmul.f32 %v8579_v59, %v8563_v63  ;;  %12243 = vmatprep.mubr.f32.mxu1 %v8697_v58  ;;  %v8716_v27 = vsub.f32 %v18113_v62, %v8715_v6 }
 0x9bc   : > { %v18136_v24 = vand.u32 4294901760, %v8588_v2  ;;  %12244 = vmatmul.mubr.f32.vlgmr.msra.gmra.mrb[8].mxu1 %v8707_v45  ;;  %v8745_v41 = vand.u32 4294901760, %v18125_v44  ;;  %v8727_v58 = vand.u32 4294901760, %v8726_v21 }
 0x9bd   : > { %v18139_v19 = vand.u32 4294901760, %v8587_v7  ;;  %13518 = vmatpush3.bf16.msra.mxu1 %v18019_v25  ;;  %v8717_v52 = vand.u32 4294901760, %v8716_v27  ;;  %v8735_v15 = vand.u32 4294901760, %v18131_v38 }
 0x9be   : > { %v18144_v17 = vsub.f32 %v8588_v2, %v18136_v24  ;;  %13520 = vmatprep.subr.bf16.mxu1 %v17965_v47  ;;  %v8746_v63 = vsub.f32 %v18125_v44, %v8745_v41 }
 0x9bf   : > { %v18151_v59 = vsub.f32 %v8587_v7, %v18139_v19  ;;  %12246 = vmatprep.mubr.f32.mxu1 %v8717_v52  ;;  %v8736_v25 = vsub.f32 %v18131_v38, %v8735_v15 }
 0x9c0   : > { %12247 = vmatmul.mubr.f32.gmra.mrb[10].mxu1 %v8727_v58  ;;  %v8765_v45 = vand.u32 4294901760, %v18144_v17  ;;  %v8747_v27 = vand.u32 4294901760, %v8746_v63 }
 0x9c1   : > { %13522 = vmatpush3.bf16.msra.mxu1 %v17965_v47  ;;  %v8737_v2 = vand.u32 4294901760, %v8736_v25  ;;  %v8755_v21 = vand.u32 4294901760, %v18151_v59 }
 0x9c2   : > { %13524 = vmatprep.subr.bf16.mxu1 %v17978_v51  ;;  %v8766_v7 = vsub.f32 %v18144_v17, %v8765_v45 }
 0x9c3   : > { %12249 = vmatprep.mubr.f32.mxu1 %v8737_v2  ;;  %v8756_v52 = vsub.f32 %v18151_v59, %v8755_v21 }
 0x9c4   : > { %12250 = vmatmul.mubr.f32.gmra.mrb[12].mxu1 %v8747_v27  ;;  %v8767_v47 = vand.u32 4294901760, %v8766_v7 }
 0x9c5   : > { %13526 = vmatpush3.bf16.msra.mxu1 %v17978_v51  ;;  %v8757_v58 = vand.u32 4294901760, %v8756_v52  ;;  %v18660_v51 = vand.u32 4294901760, %v18098_v42 }
 0x9c6   : > { %13528 = vmatprep.subr.bf16.mxu1 %v17999_v16 }
 0x9c7   : > { %12252 = vmatprep.mubr.f32.mxu1 %v8757_v58 }
 0x9c8   : > { %12253 = vmatmul.mubr.f32.gmra.mrb[14].mxu1 %v8767_v47 }
 0x9c9   : > { %13530 = vmatpush3.bf16.msra.mxu1 %v17999_v16  ;;  %12287 = vmatprep.mubr.f32.mxu1 %v18092_v23  ;;  %v18661_v16 = vand.u32 4294901760, %v17891_v43  ;;  %v18666_v43 = vand.u32 4294901760, %v17923_v39  ;;  %v18670_v39 = vand.u32 4294901760, %v17959_v20  ;;  %v18676_v20 = vld [vmem:[#allocation9_spill] sm:$0xff] }
 0x9ca   : > { %13532 = vmatprep.subr.bf16.mxu1 %v18010_v53 }
 0x9cd   : > { %13534 = vmatpush3.bf16.msra.mxu1 %v18010_v53  ;;  %v18662_v53 = vand.u32 4294901760, %v17913_v46  ;;  %v18667_v46 = vand.u32 4294901760, %v17930_v36  ;;  %v18671_v36 = vand.u32 4294901760, %v17967_v10 }
 0x9ce   : > { %13536 = vmatprep.subr.bf16.mxu1 %v18040_v56 }
 0x9d1   : > { %13538 = vmatpush3.bf16.msra.mxu1 %v18040_v56  ;;  %v13611_v56 = vpack.c.bf16 %v18662_v53, %v18661_v16 }
 0x9d2   : > { %13540 = vmatprep.subr.bf16.mxu1 %v18045_v29 }
 0x9d5   : > { %13542 = vmatpush3.bf16.msra.mxu1 %v18045_v29  ;;  %v18663_v29 = vand.u32 4294901760, %v17876_v49  ;;  %v18668_v49 = vand.u32 4294901760, %v17942_v54  ;;  %v18672_v54 = vand.u32 4294901760, %v17994_v48 }
 0x9d6   : > { %13544 = vmatprep.subr.bf16.mxu1 %v18057_v1 }
 0x9d9   : > { %13546 = vmatpush3.bf16.msra.mxu1 %v18057_v1 }
 0x9da   : > { %13548 = vmatprep.subr.bf16.mxu1 %v18055_v55 }
 0x9dc   : > { %12288 = vmatmul.mubr.f32.vlgmr.msra.gmra.mrb[8].mxu1 %v18090_v3 }
 0x9dd   : > { %12290 = vmatprep.mubr.f32.mxu1 %v18103_v12  ;;  %13550 = vmatpush3.bf16.msra.mxu1 %v18055_v55  ;;  %v18664_v55 = vand.u32 4294901760, %v17878_v22  ;;  %v18669_v22 = vand.u32 4294901760, %v17944_v14  ;;  %v18673_v14 = vand.u32 4294901760, %v17996_v33 }
 0x9de   : > { %13552 = vmatprep.subr.bf16.mxu1 %v18061_v31 }
 0x9df   : > { %v13615_v1 = vpack.c.bf16 %v18664_v55, %v18663_v29 }
 0x9e0   : > { %12291 = vmatmul.mubr.f32.gmra.mrb[10].mxu1 %v18101_v32 }
 0x9e1   : > { %12293 = vmatprep.mubr.f32.mxu1 %v18121_v4  ;;  %13554 = vmatpush3.bf16.msra.mxu1 %v18061_v31  ;;  %v18665_v31 = vand.u32 4294901760, %v18095_v50 }
 0x9e2   : > { %13556 = vmatprep.subr.bf16.mxu1 %v18065_v0 }
 0x9e4   : > { %12294 = vmatmul.mubr.f32.gmra.mrb[12].mxu1 %v18118_v13 }
 0x9e5   : > { %12296 = vmatprep.mubr.f32.mxu1 %v18139_v19  ;;  %13558 = vmatpush3.bf16.msra.mxu1 %v18065_v0  ;;  %v13619_v0 = vpack.c.bf16 %v18667_v46, %v18666_v43 }
 0x9e6   : > { %13560 = vmatprep.subr.bf16.mxu1 %v18069_v40 }
 0x9e8   : > { %12297 = vmatmul.mubr.f32.gmra.mrb[14].mxu1 %v18136_v24 }
 0x9e9   : > { %13562 = vmatpush3.bf16.msra.mxu1 %v18069_v40  ;;  %12331 = vmatprep.mubr.f32.mxu1 %v18098_v42  ;;  %v13623_v40 = vpack.c.bf16 %v18669_v22, %v18668_v49 }
 0x9ea   : > { %13564 = vmatprep.subr.bf16.mxu1 %v18073_v35 }
 0x9ed   : > { %13566 = vmatpush3.bf16.msra.mxu1 %v18073_v35  ;;  %v13631_v35 = vpack.c.bf16 %v18673_v14, %v18672_v54 }
 0x9ee   : > { %13568 = vmatprep.subr.bf16.mxu1 %v18077_v18 }
 0x9f1   : > { %13570 = vmatpush3.bf16.msra.mxu1 %v18077_v18  ;;  %v18674_v18 = vld [vmem:[#allocation6_spill] sm:$0xff] }
 0x9f2   : > { %13572 = vmatprep.subr.bf16.mxu1 %v18081_v9 }
 0x9f5   : > { %13574 = vmatpush3.bf16.msra.mxu1 %v18081_v9  ;;  %v18675_v9 = vand.u32 4294901760, %v18674_v18 }
 0x9f6   : > { %13576 = vmatprep.subr.bf16.mxu1 %v18085_v60 }
 0x9f9   : > { %13578 = vmatpush3.bf16.msra.mxu1 %v18085_v60  ;;  %v18677_v60 = vand.u32 4294901760, %v18676_v20 }
 0x9fa   : > { %13580 = vmatprep.subr.bf16.mxu1 %v17724_v28 }
 0x9fb   : > { %v13635_v10 = vpack.c.bf16 %v18677_v60, %v18675_v9 }
 0x9fc   : > { %12332 = vmatmul.mubr.f32.vlgmr.msra.gmra.mrb[8].mxu1 %v18095_v50  ;;  %v18678_v50 = vld [vmem:[#allocation8_spill] sm:$0xff] }
 0x9fd   : > { %12334 = vmatprep.mubr.f32.mxu1 %v18113_v62  ;;  %13582 = vmatpush3.bf16.msra.mxu1 %v17724_v28  ;;  %v18679_v42 = vand.u32 4294901760, %v18678_v50 }
 0x9fe   : > { %13584 = vmatprep.subr.bf16.mxu1 %v17850_v34 }
 0xa00   : > { %12335 = vmatmul.mubr.f32.gmra.mrb[10].mxu1 %v18110_v61 }
 0xa01   : > { %12337 = vmatprep.mubr.f32.mxu1 %v18131_v38  ;;  %13586 = vmatpush3.bf16.msra.mxu1 %v17850_v34  ;;  %v18680_v38 = vld [vmem:[#allocation12_spill] sm:$0xff] }
 0xa02   : > { %13588 = vmatprep.subr.bf16.mxu1 %v17858_v26  ;;  %v18681_v61 = vand.u32 4294901760, %v18680_v38 }
 0xa04   : > { %12338 = vmatmul.mubr.f32.gmra.mrb[12].mxu1 %v18125_v44  ;;  %v13639_v62 = vpack.c.bf16 %v18681_v61, %v18679_v42 }
 0xa05   : > { %12340 = vmatprep.mubr.f32.mxu1 %v18151_v59  ;;  %13590 = vmatpush3.bf16.msra.mxu1 %v17858_v26 }
 0xa06   : > { %13592 = vmatprep.subr.bf16.mxu1 %v17863_v11 }
 0xa08   : > { %12341 = vmatmul.mubr.f32.gmra.mrb[14].mxu1 %v18144_v17 }
 0xa09   : > { %13594 = vmatpush3.bf16.msra.mxu1 %v17863_v11  ;;  %12375 = vmatprep.mubr.f32.mxu1 %v18660_v51 }
 0xa0a   : > { %13596 = vmatprep.subr.bf16.mxu1 %v17916_v30 }
 0xa0d   : > { %13598 = vmatpush3.bf16.msra.mxu1 %v17916_v30 }
 0xa0e   : > { %13600 = vmatprep.subr.bf16.mxu1 %v17933_v8 }
 0xa11   : > { %13602 = vmatpush3.bf16.msra.mxu1 %v17933_v8 }
 0xa12   : > { %13604 = vmatprep.subr.bf16.mxu1 %v17946_v57 }
 0xa15   : > { %13606 = vmatpush3.bf16.msra.mxu1 %v17946_v57 }
 0xa16   : > { %13608 = vmatprep.subr.bf16.mxu1 %v17988_v5 }
 0xa19   : > { %13610 = vmatpush3.bf16.msra.mxu1 %v17988_v5 }
 0xa1a   : > { %13612 = vmatprep.subr.bf16.mxu1 %v13611_v56 }
 0xa1c   : > { %12376 = vmatmul.mubr.f32.vlgmr.msra.gmra.mrb[8].mxu1 %v18665_v31 }
 0xa1d   : > { %12378 = vmatprep.mubr.f32.mxu1 %v8715_v6  ;;  %13614 = vmatpush3.bf16.msra.mxu1 %v13611_v56 }
 0xa1e   : > { %13616 = vmatprep.subr.bf16.mxu1 %v13615_v1 }
 0xa20   : > { %12379 = vmatmul.mubr.f32.gmra.mrb[10].mxu1 %v8725_v37  ;;  %v13627_v37 = vpack.c.bf16 %v18671_v36, %v18670_v39 }
 0xa21   : > { %12381 = vmatprep.mubr.f32.mxu1 %v8735_v15  ;;  %13618 = vmatpush3.bf16.msra.mxu1 %v13615_v1 }
 0xa22   : > { %13620 = vmatprep.subr.bf16.mxu1 %v13619_v0 }
 0xa24   : > { %12382 = vmatmul.mubr.f32.gmra.mrb[12].mxu1 %v8745_v41 }
 0xa25   : > { %12384 = vmatprep.mubr.f32.mxu1 %v8755_v21  ;;  %13622 = vmatpush3.bf16.msra.mxu1 %v13619_v0 }
 0xa26   : > { %13624 = vmatprep.subr.bf16.mxu1 %v13623_v40 }
 0xa28   : > { %12385 = vmatmul.mubr.f32.gmra.mrb[14].mxu1 %v8765_v45 }
 0xa29   : > { %13626 = vmatpush3.bf16.msra.mxu1 %v13623_v40  ;;  %12419 = vmatprep.mubr.f32.mxu1 %v18092_v23 }
 0xa2a   : > { %13628 = vmatprep.subr.bf16.mxu1 %v13627_v37 }
 0xa2d   : > { %13630 = vmatpush3.bf16.msra.mxu1 %v13627_v37 }
 0xa2e   : > { %13632 = vmatprep.subr.bf16.mxu1 %v13631_v35 }
 0xa31   : > { %13634 = vmatpush3.bf16.msra.mxu1 %v13631_v35 }
 0xa32   : > { %13636 = vmatprep.subr.bf16.mxu1 %v13635_v10 }
 0xa35   : > { %13638 = vmatpush3.bf16.msra.mxu1 %v13635_v10 }
 0xa36   : > { %13640 = vmatprep.subr.bf16.mxu1 %v13639_v62 }
 0xa39   : > { %13642 = vmatpush3.bf16.msra.mxu1 %v13639_v62 }
 0xa3a   : > { %13644 = vmatprep.subr.bf16.mxu1 %v17724_v28 }
 0xa3c   : > { %12420 = vmatmul.mubr.f32.vlgmr.msra.gmra.mrb[8].mxu1 %v18090_v3 }
 0xa3d   : > { %12422 = vmatprep.mubr.f32.mxu1 %v18103_v12  ;;  %13646 = vmatpush3.bf16.msra.mxu1 %v17724_v28  ;;  %v9712_v28 = vld [vmem:[%s18333_s9] ss:$0 sm:$0xff] }
 0xa3e   : > { %13648 = vmatprep.subr.bf16.mxu1 %v17850_v34 }
 0xa40   : > { %12423 = vmatmul.mubr.f32.gmra.mrb[10].mxu1 %v18101_v32 }
 0xa41   : > { %12425 = vmatprep.mubr.f32.mxu1 %v18121_v4  ;;  %13650 = vmatpush3.bf16.msra.mxu1 %v17850_v34 }
 0xa42   : > { %13652 = vmatprep.subr.bf16.mxu1 %v17858_v26 }
 0xa44   : > { %12426 = vmatmul.mubr.f32.gmra.mrb[12].mxu1 %v18118_v13 }
 0xa45   : > { %12428 = vmatprep.mubr.f32.mxu1 %v18139_v19  ;;  %13654 = vmatpush3.bf16.msra.mxu1 %v17858_v26 }
 0xa46   : > { %13656 = vmatprep.subr.bf16.mxu1 %v17863_v11 }
 0xa48   : > { %12429 = vmatmul.mubr.f32.gmra.mrb[14].mxu1 %v18136_v24 }
 0xa49   : > { %13658 = vmatpush3.bf16.msra.mxu1 %v17863_v11  ;;  %12463 = vmatprep.mubr.f32.mxu1 %v18092_v23 }
 0xa4a   : > { %13660 = vmatprep.subr.bf16.mxu1 %v17916_v30 }
 0xa4d   : > { %13662 = vmatpush3.bf16.msra.mxu1 %v17916_v30 }
 0xa4e   : > { %13664 = vmatprep.subr.bf16.mxu1 %v17933_v8 }
 0xa51   : > { %13666 = vmatpush3.bf16.msra.mxu1 %v17933_v8 }
 0xa52   : > { %13668 = vmatprep.subr.bf16.mxu1 %v17946_v57 }
 0xa55   : > { %13670 = vmatpush3.bf16.msra.mxu1 %v17946_v57 }
 0xa56   : > { %13672 = vmatprep.subr.bf16.mxu1 %v17988_v5 }
 0xa59   : > { %13674 = vmatpush3.bf16.msra.mxu1 %v17988_v5 }
 0xa5c   : > { %12464 = vmatmul.mubr.f32.vlgmr.msra.gmra.mrb[8].mxu1 %v18090_v3 }
 0xa5d   : > { %12466 = vmatprep.mubr.f32.mxu1 %v18103_v12 }
 0xa60   : > { %12467 = vmatmul.mubr.f32.gmra.mrb[10].mxu1 %v18101_v32 }
 0xa61   : > { %12469 = vmatprep.mubr.f32.mxu1 %v18121_v4 }
 0xa64   : > { %12470 = vmatmul.mubr.f32.gmra.mrb[12].mxu1 %v18118_v13 }
 0xa65   : > { %12472 = vmatprep.mubr.f32.mxu1 %v18139_v19 }
 0xa68   : > { %12473 = vmatmul.mubr.f32.gmra.mrb[14].mxu1 %v18136_v24 }
 0xb2f   : > { %v12465_v34 = vpop.f32.mrb[8].mxu1 }
 0xb30   : > { %v13699_v26 = vadd.f32 %v12465_v34, %v9712_v28  ;;  %v9508_v11 = vpop.f32.mrb[9].mxu1 }
 0xb31   : > { %v13700_v30 = vadd.f32 %v9712_v28, %v9508_v11 }
 0xb32   : > { %9556 = vst.msk [vmem:[%s376_s19 + $0x8] sm:$0xff] %vm9554_vm0, %v13699_v26 }
 0xb33   : > { %9555 = vst.msk [vmem:[%s376_s19] sm:$0xff] %vm9554_vm0, %v13700_v30  ;;  %v12468_v23 = vpop.f32.mrb[10].mxu1 }
 0xb34   : > { %v13701_v8 = vadd.f32 %v12468_v23, %v9712_v28  ;;  %v9520_v57 = vpop.f32.mrb[11].mxu1 }
 0xb35   : > { %v13702_v5 = vadd.f32 %v9712_v28, %v9520_v57 }
 0xb36   : > { %9558 = vst.msk [vmem:[%s376_s19 + $0x18] sm:$0xff] %vm9554_vm0, %v13701_v8 }
 0xb37   : > { %9557 = vst.msk [vmem:[%s376_s19 + $0x10] sm:$0xff] %vm9554_vm0, %v13702_v5  ;;  %v12471_v48 = vpop.f32.mrb[12].mxu1 }
 0xb38   : > { %v13703_v33 = vadd.f32 %v12471_v48, %v9712_v28  ;;  %v9532_v13 = vpop.f32.mrb[13].mxu1 }
 0xb39   : > { %v13704_v3 = vadd.f32 %v9712_v28, %v9532_v13 }
 0xb3a   : > { %9560 = vst.msk [vmem:[%s376_s19 + $0x28] sm:$0xff] %vm9554_vm0, %v13703_v33 }
 0xb3b   : > { %9559 = vst.msk [vmem:[%s376_s19 + $0x20] sm:$0xff] %vm9554_vm0, %v13704_v3  ;;  %v12474_v4 = vpop.f32.mrb[14].mxu1 }
 0xb3c   : > { %v13705_v32 = vadd.f32 %v12474_v4, %v9712_v28  ;;  %v9544_v12 = vpop.f32.mrb[15].mxu1 }
 0xb3d   : > { %v13706_v6 = vadd.f32 %v9712_v28, %v9544_v12 }
 0xb3e   : > { %9562 = vst.msk [vmem:[%s376_s19 + $0x38] sm:$0xff] %vm9554_vm0, %v13705_v32 }
 0xb3f   : > { %9561 = vst.msk [vmem:[%s376_s19 + $0x30] sm:$0xff] %vm9554_vm0, %v13706_v6 }
 0xb40 PF: > { %s21_s13 = sadd.s32 1, %s14244_s13  }
 0xb41   : > { %p18_p3 = scmp.ge.s32.totalorder %s21_s13, 4  }
 0xb43   :  { %20 = sbr.rel (!%p18_p3) target bundleno = 1 (0x1), region = 99 }
 0xb4a   :  { %9585 = vsyncpa [#allocation3], 1 }
 0xb4b   :  { %9587 = vsyncpa [#allocation3 + $0x1], 1 }

</bundles_post_ra>
